<compile_context>
chip_gen: v6e
topology: v6e:2x2x1
jax: 0.10.0
libtpu: 0.0.40
codegen_flags: <defaults>
</compile_context>

<pallas_src>
import jax
import jax.numpy as jnp
from jax import lax
from jax.experimental import pallas as pl
from jax.experimental.pallas import tpu as pltpu

EPS = 1e-5
LANE = 128
STATS_ROWS = 8  # sublane-aligned stats slab: row0 = sum, row1 = sum of squares


def _round_up(x, m):
    return (x + m - 1) // m * m


def _pick_row_tile(rows, cap=1024):
    """Largest multiple-of-8 divisor of `rows` <= cap giving >= 2 grid steps."""
    if rows >= 16:
        start = min(cap, rows // 2)
        start -= start % 8
        for t in range(start, 0, -8):
            if rows % t == 0:
                return t
    return rows


def _pad_lane(a, to, axis=-1):
    pad = to - a.shape[axis]
    if pad == 0:
        return a
    widths = [(0, 0)] * a.ndim
    widths[axis] = (0, pad)
    return jnp.pad(a, widths)


def _partial_stats(x2d):
    """Per-channel partial [sum; sum_of_squares] of a (rows, C) slab -> (1, 8, C)."""
    c = x2d.shape[-1]
    s = jnp.sum(x2d, axis=0, keepdims=True)
    q = jnp.sum(x2d * x2d, axis=0, keepdims=True)
    z = jnp.zeros((STATS_ROWS - 2, c), jnp.float32)
    return jnp.concatenate([s, q, z], axis=0)[None]


# ---------------------------------------------------------------------------
# Pass A: 1x1 conv (ins -> mids).  Emits raw conv output + partial BN1 stats.
# ---------------------------------------------------------------------------
def _conv1x1_stats_kernel(x_ref, w_ref, y_ref, s_ref):
    y = jnp.dot(x_ref[...].astype(jnp.bfloat16), w_ref[...],
                preferred_element_type=jnp.float32)
    y_ref[...] = y
    s_ref[...] = _partial_stats(y)


# ---------------------------------------------------------------------------
# Pass B: fused BN1 affine + ReLU, in-VMEM ReflectPad(1), depthwise 3x3.
# One image per grid step.  Emits raw depthwise output + partial BN2 stats.
# ---------------------------------------------------------------------------
def _dw3x3_stats_kernel(y_ref, sc_ref, sh_ref, wd_ref, d_ref, s_ref):
    y = y_ref[...]                                   # (1, H, W, C) f32
    _, h, w, c = y.shape
    sc = sc_ref[...].reshape(1, 1, 1, c)
    sh = sh_ref[...].reshape(1, 1, 1, c)
    a = jnp.maximum(y * sc + sh, 0.0)                # BN1 affine + ReLU (one select)

    # ReflectionPad2d(1) entirely in VMEM (no HBM round trip).
    a = jnp.concatenate([a[:, :, 1:2, :], a, a[:, :, w - 2:w - 1, :]], axis=2)
    a = jnp.concatenate([a[:, 1:2, :, :], a, a[:, h - 2:h - 1, :, :]], axis=1)

    wd = wd_ref[...]                                 # (9, C)
    # 9-tap MAC; initialize with tap 0 (no separate zero-init pass).
    acc = a[:, 0:h, 0:w, :] * wd[0:1, :].reshape(1, 1, 1, c)
    for k in range(1, 9):
        dh, dw = divmod(k, 3)
        acc = acc + a[:, dh:dh + h, dw:dw + w, :] * wd[k:k + 1, :].reshape(1, 1, 1, c)
    # TODO(synk): if the W-shifted slices materialize retiled VMEM copies,
    #             switch to pltpu.roll-based sublane shifts.

    d_ref[...] = acc
    s_ref[...] = _partial_stats(acc.reshape(h * w, c))


# ---------------------------------------------------------------------------
# Pass C: fused BN2 affine + ReLU, 1x1 conv (mids -> outs).
# Emits raw pointwise output + partial BN3 stats.
# ---------------------------------------------------------------------------
def _pw1x1_stats_kernel(d_ref, sc_ref, sh_ref, w_ref, o_ref, s_ref):
    z = jnp.maximum(d_ref[...] * sc_ref[...] + sh_ref[...], 0.0)
    o = jnp.dot(z.astype(jnp.bfloat16), w_ref[...],
                preferred_element_type=jnp.float32)
    o_ref[...] = o
    s_ref[...] = _partial_stats(o)


def _affine_from_stats(stats, gamma, beta, count):
    """stats: (G, 8, C) partial sums.  Returns BN scale/shift, each (1, C)."""
    s = jnp.sum(stats, axis=0)                       # (8, C)
    mean = s[0:1] / count                            # (1, C)
    var = s[1:2] / count - mean * mean               # biased variance
    scale = gamma * lax.rsqrt(var + EPS)
    shift = beta - mean * scale
    return scale, shift


@jax.jit
def layer131_forward(x_nchw, params):
    """x_nchw: (N, Cin, H, W) float32 -> (N, Cout, H, W) float32."""
    w1, g1, b1, wd, g2, b2, wp, g3, b3 = params
    n, cin, h, w = x_nchw.shape
    cmid, cout = w1.shape[1], wp.shape[1]
    cmid_p, cout_p = _round_up(cmid, LANE), _round_up(cout, LANE)
    rows = n * h * w

    # Lane-pad weights / BN params; cast matmul weights to bf16.
    w1b = _pad_lane(w1, cmid_p).astype(jnp.bfloat16)                  # (Cin, Cmid_p)
    wdp = _pad_lane(wd, cmid_p)                                       # (9, Cmid_p)
    wpb = _pad_lane(_pad_lane(wp, cout_p), cmid_p, axis=0).astype(jnp.bfloat16)
    g1p, b1p = _pad_lane(g1, cmid_p), _pad_lane(b1, cmid_p)
    g2p, b2p = _pad_lane(g2, cmid_p), _pad_lane(b2, cmid_p)
    g3p, b3p = _pad_lane(g3, cout_p), _pad_lane(b3, cout_p)

    # NCHW -> (N*H*W, Cin): channels on the lane axis.
    x2d = jnp.transpose(x_nchw, (0, 2, 3, 1)).reshape(rows, cin)

    tr = _pick_row_tile(rows)
    g_rows = rows // tr
    cparams = pltpu.CompilerParams(
        dimension_semantics=("parallel",),
        vmem_limit_bytes=32 * 1024 * 1024)

    # ---- Pass A: 1x1 conv + partial BN1 stats ------------------------------
    y_raw, st1 = pl.pallas_call(
        _conv1x1_stats_kernel,
        grid=(g_rows,),
        in_specs=[
            pl.BlockSpec((tr, cin), lambda i: (i, 0)),
            pl.BlockSpec((cin, cmid_p), lambda i: (0, 0)),
        ],
        out_specs=(
            pl.BlockSpec((tr, cmid_p), lambda i: (i, 0)),
            pl.BlockSpec((1, STATS_ROWS, cmid_p), lambda i: (i, 0, 0)),
        ),
        out_shape=(
            jax.ShapeDtypeStruct((rows, cmid_p), jnp.float32),
            jax.ShapeDtypeStruct((g_rows, STATS_ROWS, cmid_p), jnp.float32),
        ),
        compiler_params=cparams,
        cost_estimate=pl.CostEstimate(
            flops=2 * rows * cin * cmid_p, transcendentals=0,
            bytes_accessed=4 * rows * (cin + cmid_p)),
    )(x2d, w1b)
    sc1, sh1 = _affine_from_stats(st1, g1p, b1p, rows)

    # ---- Pass B: BN1+ReLU -> reflect-pad -> depthwise 3x3 + BN2 stats ------
    y4d = y_raw.reshape(n, h, w, cmid_p)             # free (contiguous) reshape
    d4d, st2 = pl.pallas_call(
        _dw3x3_stats_kernel,
        grid=(n,),
        in_specs=[
            pl.BlockSpec((1, h, w, cmid_p), lambda i: (i, 0, 0, 0)),
            pl.BlockSpec((1, cmid_p), lambda i: (0, 0)),
            pl.BlockSpec((1, cmid_p), lambda i: (0, 0)),
            pl.BlockSpec((9, cmid_p), lambda i: (0, 0)),
        ],
        out_specs=(
            pl.BlockSpec((1, h, w, cmid_p), lambda i: (i, 0, 0, 0)),
            pl.BlockSpec((1, STATS_ROWS, cmid_p), lambda i: (i, 0, 0)),
        ),
        out_shape=(
            jax.ShapeDtypeStruct((n, h, w, cmid_p), jnp.float32),
            jax.ShapeDtypeStruct((n, STATS_ROWS, cmid_p), jnp.float32),
        ),
        compiler_params=cparams,
        cost_estimate=pl.CostEstimate(
            flops=2 * 9 * rows * cmid_p, transcendentals=0,
            bytes_accessed=4 * 2 * rows * cmid_p),
    )(y4d, sc1, sh1, wdp)
    sc2, sh2 = _affine_from_stats(st2, g2p, b2p, rows)

    # ---- Pass C: BN2+ReLU -> 1x1 conv + partial BN3 stats ------------------
    d2d = d4d.reshape(rows, cmid_p)                  # free (contiguous) reshape
    o_raw, st3 = pl.pallas_call(
        _pw1x1_stats_kernel,
        grid=(g_rows,),
        in_specs=[
            pl.BlockSpec((tr, cmid_p), lambda i: (i, 0)),
            pl.BlockSpec((1, cmid_p), lambda i: (0, 0)),
            pl.BlockSpec((1, cmid_p), lambda i: (0, 0)),
            pl.BlockSpec((cmid_p, cout_p), lambda i: (0, 0)),
        ],
        out_specs=(
            pl.BlockSpec((tr, cout_p), lambda i: (i, 0)),
            pl.BlockSpec((1, STATS_ROWS, cout_p), lambda i: (i, 0, 0)),
        ),
        out_shape=(
            jax.ShapeDtypeStruct((rows, cout_p), jnp.float32),
            jax.ShapeDtypeStruct((g_rows, STATS_ROWS, cout_p), jnp.float32),
        ),
        compiler_params=cparams,
        cost_estimate=pl.CostEstimate(
            flops=2 * rows * cmid_p * cout_p, transcendentals=0,
            bytes_accessed=4 * rows * (cmid_p + cout_p)),
    )(d2d, sc2, sh2, wpb)
    sc3, sh3 = _affine_from_stats(st3, g3p, b3p, rows)

    # BN3 affine + channel-unpad + NHWC->NCHW fused into one XLA pass.
    out = (o_raw * sc3 + sh3)[:, :cout]
    return jnp.transpose(out.reshape(n, h, w, cout), (0, 3, 1, 2))


# ---------------------------------------------------------------------------
# Pure-JAX reference mirroring the kernel math (bf16 matmul operands, f32
# accumulation, biased training-mode batch statistics, eps=1e-5).
# ---------------------------------------------------------------------------
def layer131_reference(x_nchw, params):
    w1, g1, b1, wd, g2, b2, wp, g3, b3 = params
    n, cin, h, w = x_nchw.shape
    cmid = w1.shape[1]
    rows = n * h * w

    def bn(x2d, gamma, beta):
        mean = jnp.sum(x2d, axis=0, keepdims=True) / rows
        var = jnp.sum(x2d * x2d, axis=0, keepdims=True) / rows - mean * mean
        scale = gamma * lax.rsqrt(var + EPS)
        return x2d * scale + (beta - mean * scale)

    x2d = jnp.transpose(x_nchw, (0, 2, 3, 1)).reshape(rows, cin)
    y = jnp.dot(x2d.astype(jnp.bfloat16), w1.astype(jnp.bfloat16),
                preferred_element_type=jnp.float32)
    y = jnp.maximum(bn(y, g1, b1), 0.0).reshape(n, h, w, cmid)
    yp = jnp.concatenate([y[:, :, 1:2, :], y, y[:, :, -2:-1, :]], axis=2)
    yp = jnp.concatenate([yp[:, 1:2, :, :], yp, yp[:, -2:-1, :, :]], axis=1)
    acc = jnp.zeros((n, h, w, cmid), jnp.float32)
    for k in range(9):
        dh, dw = divmod(k, 3)
        acc = acc + yp[:, dh:dh + h, dw:dw + w, :] * wd[k][None, None, None, :]
    z = jnp.maximum(bn(acc.reshape(rows, cmid), g2, b2), 0.0)
    o = jnp.dot(z.astype(jnp.bfloat16), wp.astype(jnp.bfloat16),
                preferred_element_type=jnp.float32)
    o = bn(o, g3, b3)
    return jnp.transpose(o.reshape(n, h, w, -1), (0, 3, 1, 2))


def init_params(key, cin, cmid, cout):
    ks = jax.random.split(key, 9)
    # PyTorch conv weight shapes: (cmid,cin,1,1), (cmid,1,3,3), (cout,cmid,1,1)
    w1_t = jax.random.normal(ks[0], (cmid, cin), jnp.float32) * 0.2
    wd_t = jax.random.normal(ks[1], (cmid, 3, 3), jnp.float32) * 0.2
    wp_t = jax.random.normal(ks[2], (cout, cmid), jnp.float32) * 0.2
    # Kernel-friendly layouts.
    w1 = w1_t.T                                              # (Cin, Cmid)
    wd = jnp.transpose(wd_t, (1, 2, 0)).reshape(9, cmid)     # (9, Cmid): wd[dh*3+dw, c]
    wp = wp_t.T                                              # (Cmid, Cout)
    g1 = (1.0 + 0.1 * jax.random.normal(ks[3], (1, cmid))).astype(jnp.float32)
    b1 = (0.1 * jax.random.normal(ks[4], (1, cmid))).astype(jnp.float32)
    g2 = (1.0 + 0.1 * jax.random.normal(ks[5], (1, cmid))).astype(jnp.float32)
    b2 = (0.1 * jax.random.normal(ks[6], (1, cmid))).astype(jnp.float32)
    g3 = (1.0 + 0.1 * jax.random.normal(ks[7], (1, cout))).astype(jnp.float32)
    b3 = (0.1 * jax.random.normal(ks[8], (1, cout))).astype(jnp.float32)
    return (w1, g1, b1, wd, g2, b2, wp, g3, b3)


if __name__ == "__main__":
    key = jax.random.PRNGKey(0)
    kx, kp = jax.random.split(key)

    N, CIN, H, W = 2, 4, 16, 16
    CMID, COUT = 8, 4

    x = jax.random.normal(kx, (N, CIN, H, W), jnp.float32)
    params = init_params(kp, CIN, CMID, COUT)

    out = jax.block_until_ready(layer131_forward(x, params))
    ref = layer131_reference(x, params)

    assert out.shape == (N, COUT, H, W)
    err = float(jnp.max(jnp.abs(out - ref)))
    assert jnp.allclose(out, ref, rtol=1e-3, atol=1e-3), f"mismatch vs reference, max abs err={err}"

    print("KERNEL_OK")
</pallas_src>

<mosaic_0001>
module attributes {stable_mosaic.version = 11 : i64} {
  func.func @_conv1x1_stats_kernel(%arg0: i32, %arg1: memref<256x4xf32, #tpu.memory_space<vmem>>, %arg2: memref<4x128xbf16, #tpu.memory_space<vmem>>, %arg3: memref<256x128xf32, #tpu.memory_space<vmem>>, %arg4: memref<1x8x128xf32, #tpu.memory_space<vmem>>) attributes {dimension_semantics = [#tpu.dimension_semantics<parallel>], iteration_bounds = array<i64: 2>, scalar_prefetch = 0 : i64, scratch_operands = 0 : i64, tpu.core_type = #tpu.core_type<tc>, window_params = [{transform_indices = @transform_0, window_bounds = array<i64: 256, 4>}, {pipeline_mode = #tpu.pipeline_mode<synchronous>, transform_indices = @transform_1, window_bounds = array<i64: 4, 128>}, {transform_indices = @transform_2, window_bounds = array<i64: 256, 128>}, {transform_indices = @transform_3, window_bounds = array<i64: 1, 8, 128>}]} {
    %c0 = arith.constant 0 : index
    %c0_0 = arith.constant 0 : index
    %0 = vector.load %arg1[%c0, %c0_0] : memref<256x4xf32, #tpu.memory_space<vmem>>, vector<256x4xf32>
    %1 = arith.truncf %0 : vector<256x4xf32> to vector<256x4xbf16>
    %c0_1 = arith.constant 0 : index
    %c0_2 = arith.constant 0 : index
    %2 = vector.load %arg2[%c0_1, %c0_2] : memref<4x128xbf16, #tpu.memory_space<vmem>>, vector<4x128xbf16>
    %cst = arith.constant dense<0.000000e+00> : vector<256x128xf32>
    %3 = tpu.matmul %1, %2, %cst {dimension_numbers = #tpu.dot_dimension_numbers<[1], [0], [0], [1], [0, 0, 1, 1], [], []>} : vector<256x4xbf16>, vector<4x128xbf16>, vector<256x128xf32> -> vector<256x128xf32>
    %c0_3 = arith.constant 0 : index
    %c0_4 = arith.constant 0 : index
    %4 = vector.load %arg3[%c0_3, %c0_4] : memref<256x128xf32, #tpu.memory_space<vmem>>, vector<256x128xf32>
    tpu.vector_store %arg3[%c0_3, %c0_4], %3 {strides = array<i32>} : memref<256x128xf32, #tpu.memory_space<vmem>>, vector<256x128xf32>,
    %cst_5 = arith.constant dense<0.000000e+00> : vector<128xf32>
    %5 = vector.multi_reduction <add>, %3, %cst_5 [0] : vector<256x128xf32> to vector<128xf32>
    %6 = vector.shape_cast %5 : vector<128xf32> to vector<1x128xf32>
    %7 = arith.mulf %3, %3 : vector<256x128xf32>
    %cst_6 = arith.constant dense<0.000000e+00> : vector<128xf32>
    %8 = vector.multi_reduction <add>, %7, %cst_6 [0] : vector<256x128xf32> to vector<128xf32>
    %9 = vector.shape_cast %8 : vector<128xf32> to vector<1x128xf32>
    %cst_7 = arith.constant 0.000000e+00 : f32
    %10 = vector.broadcast %cst_7 : f32 to vector<6x128xf32>
    %11 = tpu.concatenate %6, %9, %10 in 0 : vector<1x128xf32>, vector<1x128xf32>, vector<6x128xf32> -> vector<8x128xf32>
    %12 = vector.shape_cast %11 : vector<8x128xf32> to vector<1x8x128xf32>
    %c0_8 = arith.constant 0 : index
    %c0_9 = arith.constant 0 : index
    %c0_10 = arith.constant 0 : index
    %13 = vector.load %arg4[%c0_8, %c0_9, %c0_10] : memref<1x8x128xf32, #tpu.memory_space<vmem>>, vector<1x8x128xf32>
    tpu.vector_store %arg4[%c0_8, %c0_9, %c0_10], %12 {strides = array<i32>} : memref<1x8x128xf32, #tpu.memory_space<vmem>>, vector<1x8x128xf32>,
    return
  }
  func.func @transform_0(%arg0: i32) -> (i32, i32) {
    %c0_i32 = arith.constant 0 : i32
    %c0_i32_0 = arith.constant 0 : i32
    return %arg0, %c0_i32 : i32, i32
  }
  func.func @transform_1(%arg0: i32) -> (i32, i32) {
    %c0_i32 = arith.constant 0 : i32
    %c0_i32_0 = arith.constant 0 : i32
    %c0_i32_1 = arith.constant 0 : i32
    return %c0_i32, %c0_i32_0 : i32, i32
  }
  func.func @transform_2(%arg0: i32) -> (i32, i32) {
    %c0_i32 = arith.constant 0 : i32
    %c0_i32_0 = arith.constant 0 : i32
    return %arg0, %c0_i32 : i32, i32
  }
  func.func @transform_3(%arg0: i32) -> (i32, i32, i32) {
    %c0_i32 = arith.constant 0 : i32
    %c0_i32_0 = arith.constant 0 : i32
    %c0_i32_1 = arith.constant 0 : i32
    return %arg0, %c0_i32, %c0_i32_0 : i32, i32, i32
  }
}

module attributes {stable_mosaic.version = 11 : i64} {
  func.func @_dw3x3_stats_kernel(%arg0: i32, %arg1: memref<1x16x16x128xf32, #tpu.memory_space<vmem>>, %arg2: memref<1x128xf32, #tpu.memory_space<vmem>>, %arg3: memref<1x128xf32, #tpu.memory_space<vmem>>, %arg4: memref<9x128xf32, #tpu.memory_space<vmem>>, %arg5: memref<1x16x16x128xf32, #tpu.memory_space<vmem>>, %arg6: memref<1x8x128xf32, #tpu.memory_space<vmem>>) attributes {dimension_semantics = [#tpu.dimension_semantics<parallel>], iteration_bounds = array<i64: 2>, scalar_prefetch = 0 : i64, scratch_operands = 0 : i64, tpu.core_type = #tpu.core_type<tc>, window_params = [{transform_indices = @transform_0, window_bounds = array<i64: 1, 16, 16, 128>}, {pipeline_mode = #tpu.pipeline_mode<synchronous>, transform_indices = @transform_1, window_bounds = array<i64: 1, 128>}, {pipeline_mode = #tpu.pipeline_mode<synchronous>, transform_indices = @transform_2, window_bounds = array<i64: 1, 128>}, {pipeline_mode = #tpu.pipeline_mode<synchronous>, transform_indices = @transform_3, window_bounds = array<i64: 9, 128>}, {transform_indices = @transform_4, window_bounds = array<i64: 1, 16, 16, 128>}, {transform_indices = @transform_5, window_bounds = array<i64: 1, 8, 128>}]} {
    %c0 = arith.constant 0 : index
    %c0_0 = arith.constant 0 : index
    %c0_1 = arith.constant 0 : index
    %c0_2 = arith.constant 0 : index
    %0 = vector.load %arg1[%c0, %c0_0, %c0_1, %c0_2] : memref<1x16x16x128xf32, #tpu.memory_space<vmem>>, vector<1x16x16x128xf32>
    %c0_3 = arith.constant 0 : index
    %c0_4 = arith.constant 0 : index
    %1 = vector.load %arg2[%c0_3, %c0_4] : memref<1x128xf32, #tpu.memory_space<vmem>>, vector<1x128xf32>
    %2 = vector.shape_cast %1 : vector<1x128xf32> to vector<1x1x1x128xf32>
    %c0_5 = arith.constant 0 : index
    %c0_6 = arith.constant 0 : index
    %3 = vector.load %arg3[%c0_5, %c0_6] : memref<1x128xf32, #tpu.memory_space<vmem>>, vector<1x128xf32>
    %4 = vector.shape_cast %3 : vector<1x128xf32> to vector<1x1x1x128xf32>
    %5 = vector.broadcast %2 : vector<1x1x1x128xf32> to vector<1x16x16x128xf32>
    %6 = arith.mulf %0, %5 : vector<1x16x16x128xf32>
    %7 = vector.broadcast %4 : vector<1x1x1x128xf32> to vector<1x16x16x128xf32>
    %8 = arith.addf %6, %7 : vector<1x16x16x128xf32>
    %cst = arith.constant 0.000000e+00 : f32
    %9 = vector.broadcast %cst : f32 to vector<1x16x16x128xf32>
    %10 = arith.maximumf %8, %9 : vector<1x16x16x128xf32>
    %11 = vector.extract_strided_slice %10 {offsets = [0, 0, 1, 0], sizes = [1, 16, 1, 128], strides = [1, 1, 1, 1]} : vector<1x16x16x128xf32> to vector<1x16x1x128xf32>
    %12 = vector.extract_strided_slice %10 {offsets = [0, 0, 14, 0], sizes = [1, 16, 1, 128], strides = [1, 1, 1, 1]} : vector<1x16x16x128xf32> to vector<1x16x1x128xf32>
    %13 = tpu.concatenate %11, %10, %12 in 2 : vector<1x16x1x128xf32>, vector<1x16x16x128xf32>, vector<1x16x1x128xf32> -> vector<1x16x18x128xf32>
    %14 = vector.extract_strided_slice %13 {offsets = [0, 1, 0, 0], sizes = [1, 1, 18, 128], strides = [1, 1, 1, 1]} : vector<1x16x18x128xf32> to vector<1x1x18x128xf32>
    %15 = vector.extract_strided_slice %13 {offsets = [0, 14, 0, 0], sizes = [1, 1, 18, 128], strides = [1, 1, 1, 1]} : vector<1x16x18x128xf32> to vector<1x1x18x128xf32>
    %16 = tpu.concatenate %14, %13, %15 in 1 : vector<1x1x18x128xf32>, vector<1x16x18x128xf32>, vector<1x1x18x128xf32> -> vector<1x18x18x128xf32>
    %c0_7 = arith.constant 0 : index
    %c0_8 = arith.constant 0 : index
    %17 = vector.load %arg4[%c0_7, %c0_8] : memref<9x128xf32, #tpu.memory_space<vmem>>, vector<9x128xf32>
    %18 = vector.extract_strided_slice %16 {offsets = [0, 0, 0, 0], sizes = [1, 16, 16, 128], strides = [1, 1, 1, 1]} : vector<1x18x18x128xf32> to vector<1x16x16x128xf32>
    %19 = vector.extract_strided_slice %17 {offsets = [0, 0], sizes = [1, 128], strides = [1, 1]} : vector<9x128xf32> to vector<1x128xf32>
    %20 = vector.shape_cast %19 : vector<1x128xf32> to vector<1x1x1x128xf32>
    %21 = vector.broadcast %20 : vector<1x1x1x128xf32> to vector<1x16x16x128xf32>
    %22 = arith.mulf %18, %21 : vector<1x16x16x128xf32>
    %23 = vector.extract_strided_slice %16 {offsets = [0, 0, 1, 0], sizes = [1, 16, 16, 128], strides = [1, 1, 1, 1]} : vector<1x18x18x128xf32> to vector<1x16x16x128xf32>
    %24 = vector.extract_strided_slice %17 {offsets = [1, 0], sizes = [1, 128], strides = [1, 1]} : vector<9x128xf32> to vector<1x128xf32>
    %25 = vector.shape_cast %24 : vector<1x128xf32> to vector<1x1x1x128xf32>
    %26 = vector.broadcast %25 : vector<1x1x1x128xf32> to vector<1x16x16x128xf32>
    %27 = arith.mulf %23, %26 : vector<1x16x16x128xf32>
    %28 = arith.addf %22, %27 : vector<1x16x16x128xf32>
    %29 = vector.extract_strided_slice %16 {offsets = [0, 0, 2, 0], sizes = [1, 16, 16, 128], strides = [1, 1, 1, 1]} : vector<1x18x18x128xf32> to vector<1x16x16x128xf32>
    %30 = vector.extract_strided_slice %17 {offsets = [2, 0], sizes = [1, 128], strides = [1, 1]} : vector<9x128xf32> to vector<1x128xf32>
    %31 = vector.shape_cast %30 : vector<1x128xf32> to vector<1x1x1x128xf32>
    %32 = vector.broadcast %31 : vector<1x1x1x128xf32> to vector<1x16x16x128xf32>
    %33 = arith.mulf %29, %32 : vector<1x16x16x128xf32>
    %34 = arith.addf %28, %33 : vector<1x16x16x128xf32>
    %35 = vector.extract_strided_slice %16 {offsets = [0, 1, 0, 0], sizes = [1, 16, 16, 128], strides = [1, 1, 1, 1]} : vector<1x18x18x128xf32> to vector<1x16x16x128xf32>
    %36 = vector.extract_strided_slice %17 {offsets = [3, 0], sizes = [1, 128], strides = [1, 1]} : vector<9x128xf32> to vector<1x128xf32>
    %37 = vector.shape_cast %36 : vector<1x128xf32> to vector<1x1x1x128xf32>
    %38 = vector.broadcast %37 : vector<1x1x1x128xf32> to vector<1x16x16x128xf32>
    %39 = arith.mulf %35, %38 : vector<1x16x16x128xf32>
    %40 = arith.addf %34, %39 : vector<1x16x16x128xf32>
    %41 = vector.extract_strided_slice %16 {offsets = [0, 1, 1, 0], sizes = [1, 16, 16, 128], strides = [1, 1, 1, 1]} : vector<1x18x18x128xf32> to vector<1x16x16x128xf32>
    %42 = vector.extract_strided_slice %17 {offsets = [4, 0], sizes = [1, 128], strides = [1, 1]} : vector<9x128xf32> to vector<1x128xf32>
    %43 = vector.shape_cast %42 : vector<1x128xf32> to vector<1x1x1x128xf32>
    %44 = vector.broadcast %43 : vector<1x1x1x128xf32> to vector<1x16x16x128xf32>
    %45 = arith.mulf %41, %44 : vector<1x16x16x128xf32>
    %46 = arith.addf %40, %45 : vector<1x16x16x128xf32>
    %47 = vector.extract_strided_slice %16 {offsets = [0, 1, 2, 0], sizes = [1, 16, 16, 128], strides = [1, 1, 1, 1]} : vector<1x18x18x128xf32> to vector<1x16x16x128xf32>
    %48 = vector.extract_strided_slice %17 {offsets = [5, 0], sizes = [1, 128], strides = [1, 1]} : vector<9x128xf32> to vector<1x128xf32>
    %49 = vector.shape_cast %48 : vector<1x128xf32> to vector<1x1x1x128xf32>
    %50 = vector.broadcast %49 : vector<1x1x1x128xf32> to vector<1x16x16x128xf32>
    %51 = arith.mulf %47, %50 : vector<1x16x16x128xf32>
    %52 = arith.addf %46, %51 : vector<1x16x16x128xf32>
    %53 = vector.extract_strided_slice %16 {offsets = [0, 2, 0, 0], sizes = [1, 16, 16, 128], strides = [1, 1, 1, 1]} : vector<1x18x18x128xf32> to vector<1x16x16x128xf32>
    %54 = vector.extract_strided_slice %17 {offsets = [6, 0], sizes = [1, 128], strides = [1, 1]} : vector<9x128xf32> to vector<1x128xf32>
    %55 = vector.shape_cast %54 : vector<1x128xf32> to vector<1x1x1x128xf32>
    %56 = vector.broadcast %55 : vector<1x1x1x128xf32> to vector<1x16x16x128xf32>
    %57 = arith.mulf %53, %56 : vector<1x16x16x128xf32>
    %58 = arith.addf %52, %57 : vector<1x16x16x128xf32>
    %59 = vector.extract_strided_slice %16 {offsets = [0, 2, 1, 0], sizes = [1, 16, 16, 128], strides = [1, 1, 1, 1]} : vector<1x18x18x128xf32> to vector<1x16x16x128xf32>
    %60 = vector.extract_strided_slice %17 {offsets = [7, 0], sizes = [1, 128], strides = [1, 1]} : vector<9x128xf32> to vector<1x128xf32>
    %61 = vector.shape_cast %60 : vector<1x128xf32> to vector<1x1x1x128xf32>
    %62 = vector.broadcast %61 : vector<1x1x1x128xf32> to vector<1x16x16x128xf32>
    %63 = arith.mulf %59, %62 : vector<1x16x16x128xf32>
    %64 = arith.addf %58, %63 : vector<1x16x16x128xf32>
    %65 = vector.extract_strided_slice %16 {offsets = [0, 2, 2, 0], sizes = [1, 16, 16, 128], strides = [1, 1, 1, 1]} : vector<1x18x18x128xf32> to vector<1x16x16x128xf32>
    %66 = vector.extract_strided_slice %17 {offsets = [8, 0], sizes = [1, 128], strides = [1, 1]} : vector<9x128xf32> to vector<1x128xf32>
    %67 = vector.shape_cast %66 : vector<1x128xf32> to vector<1x1x1x128xf32>
    %68 = vector.broadcast %67 : vector<1x1x1x128xf32> to vector<1x16x16x128xf32>
    %69 = arith.mulf %65, %68 : vector<1x16x16x128xf32>
    %70 = arith.addf %64, %69 : vector<1x16x16x128xf32>
    %c0_9 = arith.constant 0 : index
    %c0_10 = arith.constant 0 : index
    %c0_11 = arith.constant 0 : index
    %c0_12 = arith.constant 0 : index
    %71 = vector.load %arg5[%c0_9, %c0_10, %c0_11, %c0_12] : memref<1x16x16x128xf32, #tpu.memory_space<vmem>>, vector<1x16x16x128xf32>
    tpu.vector_store %arg5[%c0_9, %c0_10, %c0_11, %c0_12], %70 {strides = array<i32>} : memref<1x16x16x128xf32, #tpu.memory_space<vmem>>, vector<1x16x16x128xf32>,
    %72 = vector.shape_cast %70 : vector<1x16x16x128xf32> to vector<256x128xf32>
    %cst_13 = arith.constant dense<0.000000e+00> : vector<128xf32>
    %73 = vector.multi_reduction <add>, %72, %cst_13 [0] : vector<256x128xf32> to vector<128xf32>
    %74 = vector.shape_cast %73 : vector<128xf32> to vector<1x128xf32>
    %75 = arith.mulf %72, %72 : vector<256x128xf32>
    %cst_14 = arith.constant dense<0.000000e+00> : vector<128xf32>
    %76 = vector.multi_reduction <add>, %75, %cst_14 [0] : vector<256x128xf32> to vector<128xf32>
    %77 = vector.shape_cast %76 : vector<128xf32> to vector<1x128xf32>
    %cst_15 = arith.constant 0.000000e+00 : f32
    %78 = vector.broadcast %cst_15 : f32 to vector<6x128xf32>
    %79 = tpu.concatenate %74, %77, %78 in 0 : vector<1x128xf32>, vector<1x128xf32>, vector<6x128xf32> -> vector<8x128xf32>
    %80 = vector.shape_cast %79 : vector<8x128xf32> to vector<1x8x128xf32>
    %c0_16 = arith.constant 0 : index
    %c0_17 = arith.constant 0 : index
    %c0_18 = arith.constant 0 : index
    %81 = vector.load %arg6[%c0_16, %c0_17, %c0_18] : memref<1x8x128xf32, #tpu.memory_space<vmem>>, vector<1x8x128xf32>
    tpu.vector_store %arg6[%c0_16, %c0_17, %c0_18], %80 {strides = array<i32>} : memref<1x8x128xf32, #tpu.memory_space<vmem>>, vector<1x8x128xf32>,
    return
  }
  func.func @transform_0(%arg0: i32) -> (i32, i32, i32, i32) {
    %c0_i32 = arith.constant 0 : i32
    %c0_i32_0 = arith.constant 0 : i32
    %c0_i32_1 = arith.constant 0 : i32
    %c0_i32_2 = arith.constant 0 : i32
    return %arg0, %c0_i32, %c0_i32_0, %c0_i32_1 : i32, i32, i32, i32
  }
  func.func @transform_1(%arg0: i32) -> (i32, i32) {
    %c0_i32 = arith.constant 0 : i32
    %c0_i32_0 = arith.constant 0 : i32
    %c0_i32_1 = arith.constant 0 : i32
    return %c0_i32, %c0_i32_0 : i32, i32
  }
  func.func @transform_2(%arg0: i32) -> (i32, i32) {
    %c0_i32 = arith.constant 0 : i32
    %c0_i32_0 = arith.constant 0 : i32
    %c0_i32_1 = arith.constant 0 : i32
    return %c0_i32, %c0_i32_0 : i32, i32
  }
  func.func @transform_3(%arg0: i32) -> (i32, i32) {
    %c0_i32 = arith.constant 0 : i32
    %c0_i32_0 = arith.constant 0 : i32
    %c0_i32_1 = arith.constant 0 : i32
    return %c0_i32, %c0_i32_0 : i32, i32
  }
  func.func @transform_4(%arg0: i32) -> (i32, i32, i32, i32) {
    %c0_i32 = arith.constant 0 : i32
    %c0_i32_0 = arith.constant 0 : i32
    %c0_i32_1 = arith.constant 0 : i32
    %c0_i32_2 = arith.constant 0 : i32
    return %arg0, %c0_i32, %c0_i32_0, %c0_i32_1 : i32, i32, i32, i32
  }
  func.func @transform_5(%arg0: i32) -> (i32, i32, i32) {
    %c0_i32 = arith.constant 0 : i32
    %c0_i32_0 = arith.constant 0 : i32
    %c0_i32_1 = arith.constant 0 : i32
    return %arg0, %c0_i32, %c0_i32_0 : i32, i32, i32
  }
}

module attributes {stable_mosaic.version = 11 : i64} {
  func.func @_pw1x1_stats_kernel(%arg0: i32, %arg1: memref<256x128xf32, #tpu.memory_space<vmem>>, %arg2: memref<1x128xf32, #tpu.memory_space<vmem>>, %arg3: memref<1x128xf32, #tpu.memory_space<vmem>>, %arg4: memref<128x128xbf16, #tpu.memory_space<vmem>>, %arg5: memref<256x128xf32, #tpu.memory_space<vmem>>, %arg6: memref<1x8x128xf32, #tpu.memory_space<vmem>>) attributes {dimension_semantics = [#tpu.dimension_semantics<parallel>], iteration_bounds = array<i64: 2>, scalar_prefetch = 0 : i64, scratch_operands = 0 : i64, tpu.core_type = #tpu.core_type<tc>, window_params = [{transform_indices = @transform_0, window_bounds = array<i64: 256, 128>}, {pipeline_mode = #tpu.pipeline_mode<synchronous>, transform_indices = @transform_1, window_bounds = array<i64: 1, 128>}, {pipeline_mode = #tpu.pipeline_mode<synchronous>, transform_indices = @transform_2, window_bounds = array<i64: 1, 128>}, {pipeline_mode = #tpu.pipeline_mode<synchronous>, transform_indices = @transform_3, window_bounds = array<i64: 128, 128>}, {transform_indices = @transform_4, window_bounds = array<i64: 256, 128>}, {transform_indices = @transform_5, window_bounds = array<i64: 1, 8, 128>}]} {
    %c0 = arith.constant 0 : index
    %c0_0 = arith.constant 0 : index
    %0 = vector.load %arg1[%c0, %c0_0] : memref<256x128xf32, #tpu.memory_space<vmem>>, vector<256x128xf32>
    %c0_1 = arith.constant 0 : index
    %c0_2 = arith.constant 0 : index
    %1 = vector.load %arg2[%c0_1, %c0_2] : memref<1x128xf32, #tpu.memory_space<vmem>>, vector<1x128xf32>
    %2 = vector.broadcast %1 : vector<1x128xf32> to vector<256x128xf32>
    %3 = arith.mulf %0, %2 : vector<256x128xf32>
    %c0_3 = arith.constant 0 : index
    %c0_4 = arith.constant 0 : index
    %4 = vector.load %arg3[%c0_3, %c0_4] : memref<1x128xf32, #tpu.memory_space<vmem>>, vector<1x128xf32>
    %5 = vector.broadcast %4 : vector<1x128xf32> to vector<256x128xf32>
    %6 = arith.addf %3, %5 : vector<256x128xf32>
    %cst = arith.constant 0.000000e+00 : f32
    %7 = vector.broadcast %cst : f32 to vector<256x128xf32>
    %8 = arith.maximumf %6, %7 : vector<256x128xf32>
    %9 = arith.truncf %8 : vector<256x128xf32> to vector<256x128xbf16>
    %c0_5 = arith.constant 0 : index
    %c0_6 = arith.constant 0 : index
    %10 = vector.load %arg4[%c0_5, %c0_6] : memref<128x128xbf16, #tpu.memory_space<vmem>>, vector<128x128xbf16>
    %cst_7 = arith.constant dense<0.000000e+00> : vector<256x128xf32>
    %11 = tpu.matmul %9, %10, %cst_7 {dimension_numbers = #tpu.dot_dimension_numbers<[1], [0], [0], [1], [0, 0, 1, 1], [], []>} : vector<256x128xbf16>, vector<128x128xbf16>, vector<256x128xf32> -> vector<256x128xf32>
    %c0_8 = arith.constant 0 : index
    %c0_9 = arith.constant 0 : index
    %12 = vector.load %arg5[%c0_8, %c0_9] : memref<256x128xf32, #tpu.memory_space<vmem>>, vector<256x128xf32>
    tpu.vector_store %arg5[%c0_8, %c0_9], %11 {strides = array<i32>} : memref<256x128xf32, #tpu.memory_space<vmem>>, vector<256x128xf32>,
    %cst_10 = arith.constant dense<0.000000e+00> : vector<128xf32>
    %13 = vector.multi_reduction <add>, %11, %cst_10 [0] : vector<256x128xf32> to vector<128xf32>
    %14 = vector.shape_cast %13 : vector<128xf32> to vector<1x128xf32>
    %15 = arith.mulf %11, %11 : vector<256x128xf32>
    %cst_11 = arith.constant dense<0.000000e+00> : vector<128xf32>
    %16 = vector.multi_reduction <add>, %15, %cst_11 [0] : vector<256x128xf32> to vector<128xf32>
    %17 = vector.shape_cast %16 : vector<128xf32> to vector<1x128xf32>
    %cst_12 = arith.constant 0.000000e+00 : f32
    %18 = vector.broadcast %cst_12 : f32 to vector<6x128xf32>
    %19 = tpu.concatenate %14, %17, %18 in 0 : vector<1x128xf32>, vector<1x128xf32>, vector<6x128xf32> -> vector<8x128xf32>
    %20 = vector.shape_cast %19 : vector<8x128xf32> to vector<1x8x128xf32>
    %c0_13 = arith.constant 0 : index
    %c0_14 = arith.constant 0 : index
    %c0_15 = arith.constant 0 : index
    %21 = vector.load %arg6[%c0_13, %c0_14, %c0_15] : memref<1x8x128xf32, #tpu.memory_space<vmem>>, vector<1x8x128xf32>
    tpu.vector_store %arg6[%c0_13, %c0_14, %c0_15], %20 {strides = array<i32>} : memref<1x8x128xf32, #tpu.memory_space<vmem>>, vector<1x8x128xf32>,
    return
  }
  func.func @transform_0(%arg0: i32) -> (i32, i32) {
    %c0_i32 = arith.constant 0 : i32
    %c0_i32_0 = arith.constant 0 : i32
    return %arg0, %c0_i32 : i32, i32
  }
  func.func @transform_1(%arg0: i32) -> (i32, i32) {
    %c0_i32 = arith.constant 0 : i32
    %c0_i32_0 = arith.constant 0 : i32
    %c0_i32_1 = arith.constant 0 : i32
    return %c0_i32, %c0_i32_0 : i32, i32
  }
  func.func @transform_2(%arg0: i32) -> (i32, i32) {
    %c0_i32 = arith.constant 0 : i32
    %c0_i32_0 = arith.constant 0 : i32
    %c0_i32_1 = arith.constant 0 : i32
    return %c0_i32, %c0_i32_0 : i32, i32
  }
  func.func @transform_3(%arg0: i32) -> (i32, i32) {
    %c0_i32 = arith.constant 0 : i32
    %c0_i32_0 = arith.constant 0 : i32
    %c0_i32_1 = arith.constant 0 : i32
    return %c0_i32, %c0_i32_0 : i32, i32
  }
  func.func @transform_4(%arg0: i32) -> (i32, i32) {
    %c0_i32 = arith.constant 0 : i32
    %c0_i32_0 = arith.constant 0 : i32
    return %arg0, %c0_i32 : i32, i32
  }
  func.func @transform_5(%arg0: i32) -> (i32, i32, i32) {
    %c0_i32 = arith.constant 0 : i32
    %c0_i32_0 = arith.constant 0 : i32
    %c0_i32_1 = arith.constant 0 : i32
    return %arg0, %c0_i32, %c0_i32_0 : i32, i32, i32
  }
}

</mosaic_0001>

<bundles_post_ra>
// kernel: layer131_forward.3
= control target key start
LH: loop header
LB: loop body
LE: loop exit
PB: predicated region body
PF: predicated region fallthrough
CT: control target
= control target key end

     0   :  { %s797_s12 = smov 0   ;;  %s986_s0 = inlined_call_operand.vmem [shape: f32[512,4], index: 0, kind: input, shape index: {}]   ;;  %s987_s1 = inlined_call_operand.vmem [shape: bf16[4,128], index: 1, kind: input, shape index: {}]   ;;  %s988_s2 = inlined_call_operand.vmem [shape: f32[512,128], index: 2, kind: output, shape index: {0}]   ;;  %s989_s3 = inlined_call_operand.vmem [shape: f32[2,8,128], index: 3, kind: output, shape index: {1}]  }
   0x1 LB: > { %s803_s13 = sadd.s32 4294967295, %s775_s12   ;;  %p682_p0 = scmp.ge.s32.totalorder %s775_s12, 1  ;;  %s775_s12 = sphi %s797_s12, %s14_s12  }
   0x2   : > { %p141_p1 = scmp.lt.s32.totalorder %s775_s12, 3 }
   0x4   : > { %p142_p2 = pnand %p682_p0, %p141_p1 }
   0x5   : > { %s683_s16 = sshll.u32 (!%p142_p2), %s803_s13, 5  ;;  %p181_p4 = scmp.lt.s32.totalorder (!%p142_p2), %s803_s13, 1 }
   0x6   : > { %145 = sbr.rel (%p142_p2) target bundleno = 296 (0x128), region = 28  ;;  %p170_p3 = scmp.lt.s32.totalorder (!%p142_p2), %s683_s16, 63 }
   0xb   : > { %v234_v0 = vld [vmem:[%s987_s1] sm:$0x3]  ;;  %vm284_vm0 = vcmask 1041408   ;;  %s991_s16 = smov (!%p170_p3, %s683_s16), 63  ;;  %vm235_vm1 = vcmask 31744   ;;  %s993_s13 = smov (!%p181_p4, %s803_s13), 1 }
   0xc   : > { %759 = vmatprep.subr.msk.bf16.mxu0 %vm284_vm0, %v234_v0  ;;  %v286_v1 = vsel %vm284_vm0, %v234_v0, 0  ;;  %760 = vmatprep.subr.msk.bf16.mxu1 %vm284_vm0, %v234_v0  ;;  %s684_s17 = sshll.u32 %s991_s16, 3  ;;  %s687_s24 = sshll.u32 %s993_s13, 3  ;;  %vm587_vm2 = vcmask 1040384  }
   0xd   : > { %724 = vmatpush3.bf16.msra.mxu0 %v286_v1  ;;  %758 = vmatpush3.bf16.msra.mxu1 %v286_v1  ;;  %s822_s20 = scalar_lea.vmem %s986_s0, %s684_s17  ;;  %s877_s23 = scalar_lea.vmem %s988_s2, %s684_s17 }
   0xe   : > { %v186_v2 = vld [vmem:[%s822_s20] sm:$0xff]  ;;  %v187_v3 = vld [vmem:[%s822_s20 + $0x8] sm:$0xff]  ;;  %v188_v4 = vld [vmem:[%s822_s20 + $0x10] sm:$0xff]  ;;  %s184_s27 = scalar_lea.vmem %s989_s3, %s687_s24 }
   0xf   : > { %v218_v5 = vpack.c.bf16 %v187_v3, %v186_v2  ;;  %v189_v6 = vld [vmem:[%s822_s20 + $0x18] sm:$0xff]  ;;  %v190_v7 = vld [vmem:[%s822_s20 + $0x20] sm:$0xff]  ;;  %v191_v8 = vld [vmem:[%s822_s20 + $0x28] sm:$0xff] }
  0x10   : > { %v219_v9 = vpack.c.bf16 %v189_v6, %v188_v4  ;;  %v220_v10 = vpack.c.bf16 %v191_v8, %v190_v7  ;;  %v192_v11 = vld [vmem:[%s822_s20 + $0x30] sm:$0xff]  ;;  %v193_v12 = vld [vmem:[%s822_s20 + $0x38] sm:$0xff]  ;;  %v194_v13 = vld [vmem:[%s822_s20 + $0x40] sm:$0xff] }
  0x11   : > { %725 = vmatprep.mubr.msk.bf16.mxu0 %vm235_vm1, %v218_v5  ;;  %v195_v14 = vld [vmem:[%s822_s20 + $0x48] sm:$0xff]  ;;  %v202_v15 = vld [vmem:[%s822_s20 + $0x80] sm:$0xff]  ;;  %v204_v18 = vld [vmem:[%s822_s20 + $0x90] sm:$0xff]  ;;  %v221_v23 = vpack.c.bf16 %v193_v12, %v192_v11 }
  0x12   : > { %726 = vmatmul.mubr.msk.bf16.vlgmr.msra.gmra.mxu0 %vm235_vm1, %v219_v9  ;;  %v203_v16 = vld [vmem:[%s822_s20 + $0x88] sm:$0xff]  ;;  %v205_v19 = vld [vmem:[%s822_s20 + $0x98] sm:$0xff]  ;;  %v206_v20 = vld [vmem:[%s822_s20 + $0xa0] sm:$0xff]  ;;  %v222_v25 = vpack.c.bf16 %v195_v14, %v194_v13 }
  0x13   : > { %729 = vmatprep.mubr.msk.bf16.mxu0 %vm235_vm1, %v220_v10  ;;  %v226_v17 = vpack.c.bf16 %v203_v16, %v202_v15  ;;  %v227_v21 = vpack.c.bf16 %v205_v19, %v204_v18  ;;  %v207_v22 = vld [vmem:[%s822_s20 + $0xa8] sm:$0xff]  ;;  %v208_v26 = vld [vmem:[%s822_s20 + $0xb0] sm:$0xff]  ;;  %v209_v27 = vld [vmem:[%s822_s20 + $0xb8] sm:$0xff] }
  0x14   : > { %v228_v24 = vpack.c.bf16 %v207_v22, %v206_v20  ;;  %v210_v28 = vld [vmem:[%s822_s20 + $0xc0] sm:$0xff]  ;;  %v211_v29 = vld [vmem:[%s822_s20 + $0xc8] sm:$0xff]  ;;  %v196_v30 = vld [vmem:[%s822_s20 + $0x50] sm:$0xff]  ;;  %v229_v32 = vpack.c.bf16 %v209_v27, %v208_v26 }
  0x15   : > { %741 = vmatprep.mubr.msk.bf16.mxu1 %vm235_vm1, %v226_v17  ;;  %v197_v31 = vld [vmem:[%s822_s20 + $0x58] sm:$0xff]  ;;  %v198_v33 = vld [vmem:[%s822_s20 + $0x60] sm:$0xff]  ;;  %v199_v34 = vld [vmem:[%s822_s20 + $0x68] sm:$0xff]  ;;  %v230_v35 = vpack.c.bf16 %v211_v29, %v210_v28 }
  0x16   : > { %742 = vmatmul.mubr.msk.bf16.vlgmr.msra.gmra.mxu1 %vm235_vm1, %v227_v21  ;;  %v223_v36 = vpack.c.bf16 %v197_v31, %v196_v30  ;;  %v224_v37 = vpack.c.bf16 %v199_v34, %v198_v33  ;;  %v212_v38 = vld [vmem:[%s822_s20 + $0xd0] sm:$0xff]  ;;  %v213_v39 = vld [vmem:[%s822_s20 + $0xd8] sm:$0xff]  ;;  %v214_v40 = vld [vmem:[%s822_s20 + $0xe0] sm:$0xff] }
  0x17   : > { %745 = vmatprep.mubr.msk.bf16.mxu1 %vm235_vm1, %v228_v24  ;;  %v215_v41 = vld [vmem:[%s822_s20 + $0xe8] sm:$0xff]  ;;  %v200_v42 = vld [vmem:[%s822_s20 + $0x70] sm:$0xff]  ;;  %v201_v43 = vld [vmem:[%s822_s20 + $0x78] sm:$0xff]  ;;  %v231_v44 = vpack.c.bf16 %v213_v39, %v212_v38 }
  0x18   : > { %v232_v45 = vpack.c.bf16 %v215_v41, %v214_v40  ;;  %v225_v46 = vpack.c.bf16 %v201_v43, %v200_v42  ;;  %v216_v47 = vld [vmem:[%s822_s20 + $0xf0] sm:$0xff]  ;;  %v217_v48 = vld [vmem:[%s822_s20 + $0xf8] sm:$0xff] }
  0x19   : > { %v233_v49 = vpack.c.bf16 %v217_v48, %v216_v47 }
  0x1a   : > { %730 = vmatmul.mubr.msk.bf16.gmra.mxu0 %vm235_vm1, %v221_v23 }
  0x1b   : > { %733 = vmatprep.mubr.msk.bf16.mxu0 %vm235_vm1, %v222_v25 }
  0x1e   : > { %746 = vmatmul.mubr.msk.bf16.gmra.mxu1 %vm235_vm1, %v229_v32 }
  0x1f   : > { %749 = vmatprep.mubr.msk.bf16.mxu1 %vm235_vm1, %v230_v35 }
  0x22   : > { %734 = vmatmul.mubr.msk.bf16.gmra.mxu0 %vm235_vm1, %v223_v36 }
  0x23   : > { %737 = vmatprep.mubr.msk.bf16.mxu0 %vm235_vm1, %v224_v37 }
  0x26   : > { %750 = vmatmul.mubr.msk.bf16.gmra.mxu1 %vm235_vm1, %v231_v44 }
  0x27   : > { %753 = vmatprep.mubr.msk.bf16.mxu1 %vm235_vm1, %v232_v45 }
  0x2a   : > { %738 = vmatmul.mubr.msk.bf16.gmra.mxu0 %vm235_vm1, %v225_v46 }
  0x2e   : > { %754 = vmatmul.mubr.msk.bf16.gmra.mxu1 %vm235_vm1, %v233_v49 }
  0xd2   : > { %v727_v50 = vpop.f32.mrf.mxu0 }
  0xd3   : > { %451 = vst [vmem:[%s877_s23 + $0x10] sm:$0xff] %v727_v50  ;;  %v520_v60 = vmul.f32 %v727_v50, %v727_v50 }
  0xd4   : > { %v322_v51 = vpop.f32.mrf.mxu0 }
  0xd5   : > { %449 = vst [vmem:[%s877_s23] sm:$0xff] %v322_v51  ;;  %v518_v55 = vmul.f32 %v322_v51, %v322_v51 }
  0xd6   : > { %v728_v52 = vpop.f32.mrf.mxu0  ;;  %v882_v53 = vpop.f32.mrf.mxu1 }
  0xd7   : > { %452 = vst [vmem:[%s877_s23 + $0x18] sm:$0xff] %v728_v52  ;;  %467 = vst [vmem:[%s877_s23 + $0x90] sm:$0xff] %v882_v53  ;;  %v521_v1 = vmul.f32 %v728_v52, %v728_v52 }
  0xd8   : > { %v325_v54 = vpop.f32.mrf.mxu0  ;;  %v887_v58 = vpop.f32.mrf.mxu1 }
  0xd9   : > { %450 = vst [vmem:[%s877_s23 + $0x8] sm:$0xff] %v325_v54  ;;  %v481_v56 = vadd.f32 %v325_v54, %v322_v51  ;;  %v519_v57 = vmul.f32 %v325_v54, %v325_v54  ;;  %465 = vst [vmem:[%s877_s23 + $0x80] sm:$0xff] %v887_v58 }
  0xda   : > { %v731_v59 = vpop.f32.mrf.mxu0  ;;  %v892_v63 = vpop.f32.mrf.mxu1 }
  0xdb   : > { %v482_v61 = vadd.f32 %v727_v50, %v481_v56  ;;  %v550_v62 = vadd.f32 %v519_v57, %v518_v55  ;;  %455 = vst [vmem:[%s877_s23 + $0x30] sm:$0xff] %v731_v59  ;;  %468 = vst [vmem:[%s877_s23 + $0x98] sm:$0xff] %v892_v63  ;;  %v524_v16 = vmul.f32 %v731_v59, %v731_v59 }
  0xdc   : > { %v338_v0 = vpop.f32.mrf.mxu0  ;;  %v897_v4 = vpop.f32.mrf.mxu1 }
  0xdd   : > { %v551_v2 = vadd.f32 %v550_v62, %v520_v60  ;;  %453 = vst [vmem:[%s877_s23 + $0x20] sm:$0xff] %v338_v0  ;;  %v483_v3 = vadd.f32 %v728_v52, %v482_v61  ;;  %466 = vst [vmem:[%s877_s23 + $0x88] sm:$0xff] %v897_v4  ;;  %v522_v7 = vmul.f32 %v338_v0, %v338_v0 }
  0xde   : > { %v732_v5 = vpop.f32.mrf.mxu0  ;;  %v902_v9 = vpop.f32.mrf.mxu1 }
  0xdf   : > { %v484_v6 = vadd.f32 %v483_v3, %v338_v0  ;;  %v552_v8 = vadd.f32 %v551_v2, %v521_v1  ;;  %456 = vst [vmem:[%s877_s23 + $0x38] sm:$0xff] %v732_v5  ;;  %471 = vst [vmem:[%s877_s23 + $0xb0] sm:$0xff] %v902_v9  ;;  %v525_v21 = vmul.f32 %v732_v5, %v732_v5 }
  0xe0   : > { %v341_v10 = vpop.f32.mrf.mxu0  ;;  %v907_v14 = vpop.f32.mrf.mxu1  ;;  %v534_v2 = vmul.f32 %v887_v58, %v887_v58 }
  0xe1   : > { %v553_v11 = vadd.f32 %v552_v8, %v522_v7  ;;  %454 = vst [vmem:[%s877_s23 + $0x28] sm:$0xff] %v341_v10  ;;  %v485_v12 = vadd.f32 %v484_v6, %v341_v10  ;;  %v523_v13 = vmul.f32 %v341_v10, %v341_v10  ;;  %469 = vst [vmem:[%s877_s23 + $0xa0] sm:$0xff] %v907_v14 }
  0xe2   : > { %v735_v15 = vpop.f32.mrf.mxu0  ;;  %v912_v19 = vpop.f32.mrf.mxu1  ;;  %v535_v7 = vmul.f32 %v897_v4, %v897_v4  ;;  %v536_v10 = vmul.f32 %v882_v53, %v882_v53 }
  0xe3   : > { %v486_v17 = vadd.f32 %v731_v59, %v485_v12  ;;  %v554_v18 = vadd.f32 %v553_v11, %v523_v13  ;;  %459 = vst [vmem:[%s877_s23 + $0x50] sm:$0xff] %v735_v15  ;;  %472 = vst [vmem:[%s877_s23 + $0xb8] sm:$0xff] %v912_v19  ;;  %v528_v36 = vmul.f32 %v735_v15, %v735_v15 }
  0xe4   : > { %v354_v20 = vpop.f32.mrf.mxu0  ;;  %v917_v24 = vpop.f32.mrf.mxu1  ;;  %v537_v13 = vmul.f32 %v892_v63, %v892_v63 }
  0xe5   : > { %v555_v22 = vadd.f32 %v554_v18, %v524_v16  ;;  %457 = vst [vmem:[%s877_s23 + $0x40] sm:$0xff] %v354_v20  ;;  %v487_v23 = vadd.f32 %v732_v5, %v486_v17  ;;  %470 = vst [vmem:[%s877_s23 + $0xa8] sm:$0xff] %v917_v24  ;;  %v526_v27 = vmul.f32 %v354_v20, %v354_v20 }
  0xe6   : > { %v736_v25 = vpop.f32.mrf.mxu0  ;;  %v922_v29 = vpop.f32.mrf.mxu1  ;;  %v538_v17 = vmul.f32 %v907_v14, %v907_v14 }
  0xe7   : > { %v488_v26 = vadd.f32 %v487_v23, %v354_v20  ;;  %v556_v28 = vadd.f32 %v555_v22, %v525_v21  ;;  %460 = vst [vmem:[%s877_s23 + $0x58] sm:$0xff] %v736_v25  ;;  %475 = vst [vmem:[%s877_s23 + $0xd0] sm:$0xff] %v922_v29  ;;  %v529_v41 = vmul.f32 %v736_v25, %v736_v25 }
  0xe8   : > { %v357_v30 = vpop.f32.mrf.mxu0  ;;  %v927_v34 = vpop.f32.mrf.mxu1  ;;  %v539_v21 = vmul.f32 %v917_v24, %v917_v24 }
  0xe9   : > { %v557_v31 = vadd.f32 %v556_v28, %v526_v27  ;;  %458 = vst [vmem:[%s877_s23 + $0x48] sm:$0xff] %v357_v30  ;;  %v489_v32 = vadd.f32 %v488_v26, %v357_v30  ;;  %v527_v33 = vmul.f32 %v357_v30, %v357_v30  ;;  %473 = vst [vmem:[%s877_s23 + $0xc0] sm:$0xff] %v927_v34 }
  0xea   : > { %v739_v35 = vpop.f32.mrf.mxu0  ;;  %v932_v39 = vpop.f32.mrf.mxu1  ;;  %v542_v27 = vmul.f32 %v927_v34, %v927_v34 }
  0xeb   : > { %v490_v37 = vadd.f32 %v735_v15, %v489_v32  ;;  %v558_v38 = vadd.f32 %v557_v31, %v527_v33  ;;  %463 = vst [vmem:[%s877_s23 + $0x70] sm:$0xff] %v739_v35  ;;  %476 = vst [vmem:[%s877_s23 + $0xd8] sm:$0xff] %v932_v39  ;;  %v532_v56 = vmul.f32 %v739_v35, %v739_v35 }
  0xec   : > { %v370_v40 = vpop.f32.mrf.mxu0  ;;  %v421_v44 = vpop.f32.mrf.mxu1  ;;  %v544_v32 = vmul.f32 %v922_v29, %v922_v29 }
  0xed   : > { %v559_v42 = vadd.f32 %v558_v38, %v528_v36  ;;  %461 = vst [vmem:[%s877_s23 + $0x60] sm:$0xff] %v370_v40  ;;  %v491_v43 = vadd.f32 %v736_v25, %v490_v37  ;;  %474 = vst [vmem:[%s877_s23 + $0xc8] sm:$0xff] %v421_v44  ;;  %v530_v47 = vmul.f32 %v370_v40, %v370_v40 }
  0xee   : > { %v740_v45 = vpop.f32.mrf.mxu0  ;;  %v755_v49 = vpop.f32.mrf.mxu1  ;;  %v543_v31 = vmul.f32 %v421_v44, %v421_v44 }
  0xef   : > { %v492_v46 = vadd.f32 %v491_v43, %v370_v40  ;;  %v560_v48 = vadd.f32 %v559_v42, %v529_v41  ;;  %464 = vst [vmem:[%s877_s23 + $0x78] sm:$0xff] %v740_v45  ;;  %479 = vst [vmem:[%s877_s23 + $0xf0] sm:$0xff] %v755_v49  ;;  %v533_v61 = vmul.f32 %v740_v45, %v740_v45 }
  0xf0   : > { %v373_v50 = vpop.f32.mrf.mxu0  ;;  %v434_v55 = vpop.f32.mrf.mxu1  ;;  %v548_v43 = vmul.f32 %v755_v49, %v755_v49 }
  0xf1   : > { %v561_v51 = vadd.f32 %v560_v48, %v530_v47  ;;  %462 = vst [vmem:[%s877_s23 + $0x68] sm:$0xff] %v373_v50  ;;  %v493_v52 = vadd.f32 %v492_v46, %v373_v50  ;;  %v531_v54 = vmul.f32 %v373_v50, %v373_v50  ;;  %477 = vst [vmem:[%s877_s23 + $0xe0] sm:$0xff] %v434_v55 }
  0xf2   : > { %v756_v60 = vpop.f32.mrf.mxu1  ;;  %v546_v38 = vmul.f32 %v434_v55, %v434_v55 }
  0xf3   : > { %v494_v57 = vadd.f32 %v739_v35, %v493_v52  ;;  %v562_v59 = vadd.f32 %v561_v51, %v531_v54  ;;  %480 = vst [vmem:[%s877_s23 + $0xf8] sm:$0xff] %v756_v60  ;;  %v545_v35 = vmul.f32 %v932_v39, %v932_v39  ;;  %v549_v46 = vmul.f32 %v756_v60, %v756_v60 }
  0xf4   : > { %v437_v1 = vpop.f32.mrf.mxu1 }
  0xf5   : > { %v495_v62 = vadd.f32 %v740_v45, %v494_v57  ;;  %v563_v0 = vadd.f32 %v562_v59, %v532_v56  ;;  %478 = vst [vmem:[%s877_s23 + $0xe8] sm:$0xff] %v437_v1  ;;  %v547_v42 = vmul.f32 %v437_v1, %v437_v1 }
  0xf7   : > { %v564_v3 = vadd.f32 %v563_v0, %v533_v61  ;;  %v496_v5 = vadd.f32 %v495_v62, %v887_v58 }
  0xf9   : > { %v497_v6 = vadd.f32 %v496_v5, %v897_v4  ;;  %v565_v8 = vadd.f32 %v564_v3, %v534_v2 }
  0xfb   : > { %v498_v11 = vadd.f32 %v882_v53, %v497_v6  ;;  %v566_v12 = vadd.f32 %v565_v8, %v535_v7  ;;  %v540_v53 = vmul.f32 %v902_v9, %v902_v9 }
  0xfd   : > { %v567_v15 = vadd.f32 %v566_v12, %v536_v10  ;;  %v499_v16 = vadd.f32 %v892_v63, %v498_v11  ;;  %v541_v63 = vmul.f32 %v912_v19, %v912_v19 }
  0xff   : > { %v500_v58 = vadd.f32 %v499_v16, %v907_v14  ;;  %v568_v18 = vadd.f32 %v567_v15, %v537_v13 }
 0x101   : > { %v569_v4 = vadd.f32 %v568_v18, %v538_v17  ;;  %v501_v20 = vadd.f32 %v500_v58, %v917_v24 }
 0x103   : > { %v502_v22 = vadd.f32 %v902_v9, %v501_v20  ;;  %v570_v23 = vadd.f32 %v569_v4, %v539_v21 }
 0x105   : > { %v571_v25 = vadd.f32 %v570_v23, %v540_v53  ;;  %v503_v26 = vadd.f32 %v912_v19, %v502_v22 }
 0x107   : > { %v504_v14 = vadd.f32 %v503_v26, %v927_v34  ;;  %v572_v28 = vadd.f32 %v571_v25, %v541_v63 }
 0x109   : > { %v573_v30 = vadd.f32 %v572_v28, %v542_v27  ;;  %v505_v24 = vadd.f32 %v504_v14, %v421_v44 }
 0x10b   : > { %v506_v9 = vadd.f32 %v922_v29, %v505_v24  ;;  %v574_v33 = vadd.f32 %v573_v30, %v543_v31 }
 0x10d   : > { %v575_v36 = vadd.f32 %v574_v33, %v544_v32  ;;  %v507_v19 = vadd.f32 %v932_v39, %v506_v9 }
 0x10f   : > { %v508_v37 = vadd.f32 %v507_v19, %v434_v55  ;;  %v576_v34 = vadd.f32 %v575_v36, %v545_v35 }
 0x111   : > { %v577_v40 = vadd.f32 %v576_v34, %v546_v38  ;;  %v509_v41 = vadd.f32 %v508_v37, %v437_v1 }
 0x113   : > { %v510_v44 = vadd.f32 %v755_v49, %v509_v41  ;;  %v578_v45 = vadd.f32 %v577_v40, %v547_v42 }
 0x115   : > { %v511_v29 = vadd.f32 %v756_v60, %v510_v44  ;;  %v579_v47 = vadd.f32 %v578_v45, %v548_v43 }
 0x117   : > { %v512_v48 = vrot.slane %v511_v29, 4  ;;  %v580_v50 = vadd.f32 %v579_v47, %v549_v46 }
 0x119   : > { %v513_v51 = vadd.f32 %v512_v48, %v511_v29  ;;  %v581_v52 = vrot.slane %v580_v50, 4 }
 0x11b   : > { %v514_v54 = vrot.slane %v513_v51, 2  ;;  %v582_v39 = vadd.f32 %v581_v52, %v580_v50 }
 0x11d   : > { %v515_v55 = vadd.f32 %v514_v54, %v513_v51  ;;  %v583_v56 = vrot.slane %v582_v39, 2 }
 0x11f   : > { %v516_v57 = vrot.slane %v515_v55, 1  ;;  %v584_v59 = vadd.f32 %v583_v56, %v582_v39 }
 0x121   : > { %v585_v61 = vrot.slane %v584_v59, 1  ;;  %v517_v49 = vadd.f32 %v516_v57, %v515_v55 }
 0x123   : > { %v586_v62 = vadd.f32 %v585_v61, %v584_v59 }
 0x125   : > { %v588_v60 = vsel %vm587_vm2, %v517_v49, %v586_v62 }
 0x126   : > { %v589_v0 = vsel %vm284_vm0, %v588_v60, 0.0 }
 0x127   : > { %590 = vst [vmem:[%s184_s27] sm:$0xff] %v589_v0 }
 0x128 PF: > { %s14_s12 = sadd.s32 1, %s775_s12  }
 0x129   : > { %p11_p5 = scmp.ge.s32.totalorder %s14_s12, 4  }
 0x12b   :  { %13 = sbr.rel (!%p11_p5) target bundleno = 1 (0x1), region = 70 }

// kernel: layer131_forward.5
= control target key start
LH: loop header
LB: loop body
LE: loop exit
PB: predicated region body
PF: predicated region fallthrough
CT: control target
= control target key end

     0   :  { %s1017_s18 = smov 0   ;;  %s1320_s0 = inlined_call_operand.vmem [shape: f32[512,128], index: 0, kind: input, shape index: {}]   ;;  %s1321_s1 = inlined_call_operand.vmem [shape: f32[1,128], index: 1, kind: input, shape index: {}]   ;;  %s1322_s2 = inlined_call_operand.vmem [shape: f32[1,128], index: 2, kind: input, shape index: {}]   ;;  %s1323_s3 = inlined_call_operand.vmem [shape: bf16[128,128], index: 3, kind: input, shape index: {}]   ;;  %s1324_s4 = inlined_call_operand.vmem [shape: f32[512,128], index: 4, kind: output, shape index: {0}]   ;;  %s1325_s5 = inlined_call_operand.vmem [shape: f32[2,8,128], index: 5, kind: output, shape index: {1}]  }
   0x1 LB: > { %s1023_s19 = sadd.s32 4294967295, %s985_s18   ;;  %p857_p0 = scmp.ge.s32.totalorder %s985_s18, 1  ;;  %s985_s18 = sphi %s1017_s18, %s16_s18  }
   0x2   : > { %p191_p1 = scmp.lt.s32.totalorder %s985_s18, 3 }
   0x4   : > { %p192_p2 = pnand %p857_p0, %p191_p1 }
   0x5   : > { %s858_s22 = sshll.u32 (!%p192_p2), %s1023_s19, 5  ;;  %p235_p4 = scmp.lt.s32.totalorder (!%p192_p2), %s1023_s19, 1 }
   0x6   : > { %195 = sbr.rel (%p192_p2) target bundleno = 322 (0x142), region = 36  ;;  %p224_p3 = scmp.lt.s32.totalorder (!%p192_p2), %s858_s22, 63 }
   0xb   : > { %v971_v0 = vld [vmem:[%s1323_s3 + $0x38] sm:$0xff]   ;;  %v972_v1 = vld [vmem:[%s1323_s3 + $0x30] sm:$0xff]   ;;  %s1327_s22 = smov (!%p224_p3, %s858_s22), 63  ;;  %v973_v2 = vld [vmem:[%s1323_s3 + $0x28] sm:$0xff]   ;;  %s1329_s19 = smov (!%p235_p4, %s1023_s19), 1  ;;  %vm761_vm0 = vcmask 1040384  }
   0xc   : > { %899 = vmatprep.subr.bf16.mxu0 %v971_v0  ;;  %947 = vmatprep.subr.bf16.mxu1 %v971_v0  ;;  %s859_s27 = sshll.u32 %s1327_s22, 3  ;;  %v974_v3 = vld [vmem:[%s1323_s3 + $0x20] sm:$0xff]   ;;  %v975_v17 = vld [vmem:[%s1323_s3 + $0x18] sm:$0xff]   ;;  %v976_v26 = vld [vmem:[%s1323_s3 + $0x10] sm:$0xff]   ;;  %s862_s22 = sshll.u32 %s1329_s19, 3  ;;  %vm763_vm1 = vcmask 1041408  }
   0xd   : > { %900 = vmatpush3.bf16.msra.mxu0 %v971_v0  ;;  %955 = vmatpush3.bf16.msra.mxu1 %v971_v0  ;;  %s1045_s30 = scalar_lea.vmem %s1320_s0, %s859_s27  ;;  %v1055_v6 = vld [vmem:[%s1321_s1] ss:$0 sm:$0xff]  ;;  %v977_v35 = vld [vmem:[%s1323_s3 + $0x8] sm:$0xff]   ;;  %s1194_s25 = scalar_lea.vmem %s1324_s4, %s859_s27 }
   0xe   : > { %901 = vmatprep.subr.bf16.mxu0 %v972_v1  ;;  %948 = vmatprep.subr.bf16.mxu1 %v972_v1  ;;  %v240_v4 = vld [vmem:[%s1045_s30] sm:$0xff]  ;;  %v241_v5 = vld [vmem:[%s1045_s30 + $0x8] sm:$0xff]  ;;  %v242_v10 = vld [vmem:[%s1045_s30 + $0x10] sm:$0xff]  ;;  %s238_s28 = scalar_lea.vmem %s1325_s5, %s862_s22 }
   0xf   : > { %v279_v7 = vmul.f32 %v1055_v6, %v240_v4  ;;  %v280_v8 = vmul.f32 %v1055_v6, %v241_v5  ;;  %v1062_v9 = vld [vmem:[%s1322_s2] ss:$0 sm:$0xff]  ;;  %v243_v11 = vld [vmem:[%s1045_s30 + $0x18] sm:$0xff]  ;;  %v281_v12 = vmul.f32 %v1055_v6, %v242_v10  ;;  %v245_v20 = vld [vmem:[%s1045_s30 + $0x28] sm:$0xff] }
  0x10   : > { %v282_v15 = vmul.f32 %v1055_v6, %v243_v11  ;;  %v244_v16 = vld [vmem:[%s1045_s30 + $0x20] sm:$0xff]  ;;  %v246_v25 = vld [vmem:[%s1045_s30 + $0x30] sm:$0xff]  ;;  %v284_v27 = vmul.f32 %v1055_v6, %v245_v20  ;;  %v247_v28 = vld [vmem:[%s1045_s30 + $0x38] sm:$0xff] }
  0x11   : > { %902 = vmatpush3.bf16.msra.mxu0 %v972_v1  ;;  %956 = vmatpush3.bf16.msra.mxu1 %v972_v1  ;;  %v318_v13 = vadd.f32 %v1062_v9, %v279_v7  ;;  %v319_v14 = vadd.f32 %v1062_v9, %v280_v8  ;;  %v283_v21 = vmul.f32 %v1055_v6, %v244_v16  ;;  %v248_v30 = vld [vmem:[%s1045_s30 + $0x40] sm:$0xff]  ;;  %v249_v37 = vld [vmem:[%s1045_s30 + $0x48] sm:$0xff]  ;;  %v258_v41 = vld [vmem:[%s1045_s30 + $0x90] sm:$0xff] }
  0x12   : > { %903 = vmatprep.subr.bf16.mxu0 %v973_v2  ;;  %949 = vmatprep.subr.bf16.mxu1 %v973_v2  ;;  %v320_v23 = vadd.f32 %v1062_v9, %v281_v12  ;;  %v321_v24 = vadd.f32 %v1062_v9, %v282_v15  ;;  %v285_v29 = vmul.f32 %v1055_v6, %v246_v25  ;;  %v256_v34 = vld [vmem:[%s1045_s30 + $0x80] sm:$0xff]  ;;  %v257_v38 = vld [vmem:[%s1045_s30 + $0x88] sm:$0xff]  ;;  %v259_v42 = vld [vmem:[%s1045_s30 + $0x98] sm:$0xff] }
  0x13   : > { %v350_v18 = vmax.f32 %v318_v13, 0.0  ;;  %v351_v19 = vmax.f32 %v319_v14, 0.0  ;;  %v1087_v33 = vadd.f32 %v1062_v9, %v283_v21  ;;  %v1094_v36 = vadd.f32 %v1062_v9, %v284_v27  ;;  %v260_v45 = vld [vmem:[%s1045_s30 + $0xa0] sm:$0xff]  ;;  %v261_v50 = vld [vmem:[%s1045_s30 + $0xa8] sm:$0xff]  ;;  %v262_v56 = vld [vmem:[%s1045_s30 + $0xb0] sm:$0xff] }
  0x14   : > { %v352_v31 = vmax.f32 %v320_v23, 0.0  ;;  %v353_v32 = vmax.f32 %v321_v24, 0.0  ;;  %v286_v39 = vmul.f32 %v1055_v6, %v247_v28  ;;  %v287_v40 = vmul.f32 %v1055_v6, %v248_v30  ;;  %v978_v51 = vld [vmem:[%s1323_s3] sm:$0xff]   ;;  %v263_v61 = vld [vmem:[%s1045_s30 + $0xb8] sm:$0xff]  ;;  %v265_v8 = vld [vmem:[%s1045_s30 + $0xc8] sm:$0xff] }
  0x15   : > { %904 = vmatpush3.bf16.msra.mxu0 %v973_v2  ;;  %957 = vmatpush3.bf16.msra.mxu1 %v973_v2  ;;  %v382_v22 = vpack.c.bf16 %v351_v19, %v350_v18  ;;  %v1103_v43 = vadd.f32 %v1062_v9, %v285_v29  ;;  %v295_v44 = vmul.f32 %v1055_v6, %v256_v34  ;;  %v354_v47 = vmax.f32 %v1087_v33, 0.0  ;;  %v264_v2 = vld [vmem:[%s1045_s30 + $0xc0] sm:$0xff]  ;;  %v250_v10 = vld [vmem:[%s1045_s30 + $0x50] sm:$0xff]  ;;  %v251_v15 = vld [vmem:[%s1045_s30 + $0x58] sm:$0xff] }
  0x16   : > { %905 = vmatprep.subr.bf16.mxu0 %v974_v3  ;;  %950 = vmatprep.subr.bf16.mxu1 %v974_v3  ;;  %v1107_v46 = vpack.c.bf16 %v353_v32, %v352_v31  ;;  %v288_v48 = vmul.f32 %v1055_v6, %v249_v37  ;;  %v296_v49 = vmul.f32 %v1055_v6, %v257_v38  ;;  %v355_v52 = vmax.f32 %v1094_v36, 0.0  ;;  %v252_v20 = vld [vmem:[%s1045_s30 + $0x60] sm:$0xff]  ;;  %v253_v21 = vld [vmem:[%s1045_s30 + $0x68] sm:$0xff]  ;;  %v266_v30 = vld [vmem:[%s1045_s30 + $0xd0] sm:$0xff] }
  0x17   : > { %915 = vmatprep.mubr.bf16.mxu0 %v382_v22  ;;  %v334_v53 = vadd.f32 %v1062_v9, %v295_v44  ;;  %v297_v54 = vmul.f32 %v1055_v6, %v258_v41  ;;  %v298_v55 = vmul.f32 %v1055_v6, %v259_v42  ;;  %v1122_v57 = vadd.f32 %v1062_v9, %v286_v39  ;;  %v267_v31 = vld [vmem:[%s1045_s30 + $0xd8] sm:$0xff]  ;;  %v268_v36 = vld [vmem:[%s1045_s30 + $0xe0] sm:$0xff]  ;;  %v269_v37 = vld [vmem:[%s1045_s30 + $0xe8] sm:$0xff] }
  0x18   : > { %v1125_v58 = vadd.f32 %v1062_v9, %v287_v40  ;;  %v335_v59 = vadd.f32 %v1062_v9, %v296_v49  ;;  %v299_v60 = vmul.f32 %v1055_v6, %v260_v45  ;;  %v300_v1 = vmul.f32 %v1055_v6, %v261_v50 }
  0x19   : > { %906 = vmatpush3.bf16.msra.mxu0 %v974_v3  ;;  %958 = vmatpush3.bf16.msra.mxu1 %v974_v3  ;;  %v366_v62 = vmax.f32 %v334_v53, 0.0  ;;  %v336_v63 = vadd.f32 %v1062_v9, %v297_v54  ;;  %v337_v0 = vadd.f32 %v1062_v9, %v298_v55  ;;  %v1135_v3 = vadd.f32 %v1062_v9, %v288_v48  ;;  %v254_v55 = vld [vmem:[%s1045_s30 + $0x70] sm:$0xff] }
  0x1a   : > { %907 = vmatprep.subr.bf16.mxu0 %v975_v17  ;;  %951 = vmatprep.subr.bf16.mxu1 %v975_v17  ;;  %v367_v4 = vmax.f32 %v335_v59, 0.0  ;;  %v338_v5 = vadd.f32 %v1062_v9, %v299_v60  ;;  %v301_v7 = vmul.f32 %v1055_v6, %v262_v56  ;;  %v339_v13 = vadd.f32 %v1062_v9, %v300_v1  ;;  %v255_v56 = vld [vmem:[%s1045_s30 + $0x78] sm:$0xff] }
  0x1b   : > { %v368_v11 = vmax.f32 %v336_v63, 0.0  ;;  %v369_v12 = vmax.f32 %v337_v0, 0.0  ;;  %v302_v14 = vmul.f32 %v1055_v6, %v263_v61  ;;  %v303_v19 = vmul.f32 %v1055_v6, %v264_v2  ;;  %v270_v0 = vld [vmem:[%s1045_s30 + $0xf0] sm:$0xff]  ;;  %v271_v1 = vld [vmem:[%s1045_s30 + $0xf8] sm:$0xff] }
  0x1c   : > { %v390_v16 = vpack.c.bf16 %v367_v4, %v366_v62  ;;  %v340_v18 = vadd.f32 %v1062_v9, %v301_v7  ;;  %v371_v23 = vmax.f32 %v339_v13, 0.0  ;;  %v304_v25 = vmul.f32 %v1055_v6, %v265_v8 }
  0x1d   : > { %908 = vmatpush3.bf16.msra.mxu0 %v975_v17  ;;  %959 = vmatpush3.bf16.msra.mxu1 %v975_v17  ;;  %v370_v17 = vmax.f32 %v338_v5, 0.0  ;;  %v391_v22 = vpack.c.bf16 %v369_v12, %v368_v11  ;;  %v341_v24 = vadd.f32 %v1062_v9, %v302_v14  ;;  %v356_v27 = vmax.f32 %v1103_v43, 0.0 }
  0x1e   : > { %909 = vmatprep.subr.bf16.mxu0 %v976_v26  ;;  %952 = vmatprep.subr.bf16.mxu1 %v976_v26  ;;  %v289_v28 = vmul.f32 %v1055_v6, %v250_v10  ;;  %v342_v29 = vadd.f32 %v1062_v9, %v303_v19  ;;  %v357_v32 = vmax.f32 %v1122_v57, 0.0  ;;  %v290_v33 = vmul.f32 %v1055_v6, %v251_v15 }
  0x1f   : > { %931 = vmatprep.mubr.bf16.mxu1 %v390_v16  ;;  %v392_v34 = vpack.c.bf16 %v371_v23, %v370_v17  ;;  %v358_v38 = vmax.f32 %v1125_v58, 0.0  ;;  %v359_v39 = vmax.f32 %v1135_v3, 0.0  ;;  %v291_v40 = vmul.f32 %v1055_v6, %v252_v20 }
  0x20   : > { %v292_v41 = vmul.f32 %v1055_v6, %v253_v21  ;;  %v372_v42 = vmax.f32 %v340_v18, 0.0  ;;  %v373_v43 = vmax.f32 %v341_v24, 0.0  ;;  %v305_v44 = vmul.f32 %v1055_v6, %v266_v30 }
  0x21   : > { %910 = vmatpush3.bf16.msra.mxu0 %v976_v26  ;;  %960 = vmatpush3.bf16.msra.mxu1 %v976_v26  ;;  %v384_v26 = vpack.c.bf16 %v355_v52, %v354_v47  ;;  %v306_v45 = vmul.f32 %v1055_v6, %v267_v31  ;;  %v374_v47 = vmax.f32 %v342_v29, 0.0  ;;  %v307_v49 = vmul.f32 %v1055_v6, %v268_v36 }
  0x22   : > { %911 = vmatprep.subr.bf16.mxu0 %v977_v35  ;;  %953 = vmatprep.subr.bf16.mxu1 %v977_v35  ;;  %v308_v50 = vmul.f32 %v1055_v6, %v269_v37  ;;  %v329_v52 = vadd.f32 %v1062_v9, %v290_v33  ;;  %v330_v53 = vadd.f32 %v1062_v9, %v291_v40 }
  0x23   : > { %v331_v54 = vadd.f32 %v1062_v9, %v292_v41  ;;  %v393_v57 = vpack.c.bf16 %v373_v43, %v372_v42  ;;  %v344_v58 = vadd.f32 %v1062_v9, %v305_v44  ;;  %v345_v59 = vadd.f32 %v1062_v9, %v306_v45 }
  0x24   : > { %v386_v60 = vpack.c.bf16 %v359_v39, %v358_v38  ;;  %v346_v62 = vadd.f32 %v1062_v9, %v307_v49  ;;  %v347_v63 = vadd.f32 %v1062_v9, %v308_v50  ;;  %v361_v3 = vmax.f32 %v329_v52, 0.0 }
  0x25   : > { %912 = vmatpush3.bf16.msra.mxu0 %v977_v35  ;;  %961 = vmatpush3.bf16.msra.mxu1 %v977_v35  ;;  %v343_v35 = vadd.f32 %v1062_v9, %v304_v25  ;;  %v293_v4 = vmul.f32 %v1055_v6, %v254_v55  ;;  %v294_v5 = vmul.f32 %v1055_v6, %v255_v56  ;;  %v376_v7 = vmax.f32 %v344_v58, 0.0 }
  0x26   : > { %913 = vmatprep.subr.bf16.mxu0 %v978_v51  ;;  %954 = vmatprep.subr.bf16.mxu1 %v978_v51  ;;  %v377_v8 = vmax.f32 %v345_v59, 0.0  ;;  %v309_v10 = vmul.f32 %v1055_v6, %v270_v0  ;;  %v310_v11 = vmul.f32 %v1055_v6, %v271_v1  ;;  %v362_v12 = vmax.f32 %v330_v53, 0.0 }
  0x27   : > { %v375_v48 = vmax.f32 %v343_v35, 0.0  ;;  %v363_v13 = vmax.f32 %v331_v54, 0.0  ;;  %v378_v14 = vmax.f32 %v346_v62, 0.0  ;;  %v379_v15 = vmax.f32 %v347_v63, 0.0 }
  0x28   : > { %v332_v17 = vadd.f32 %v1062_v9, %v293_v4  ;;  %v333_v18 = vadd.f32 %v1062_v9, %v294_v5  ;;  %v395_v19 = vpack.c.bf16 %v377_v8, %v376_v7  ;;  %v348_v20 = vadd.f32 %v1062_v9, %v309_v10 }
  0x29   : > { %914 = vmatpush3.bf16.msra.mxu0 %v978_v51  ;;  %962 = vmatpush3.bf16.msra.mxu1 %v978_v51  ;;  %v328_v51 = vadd.f32 %v1062_v9, %v289_v28  ;;  %v394_v61 = vpack.c.bf16 %v375_v48, %v374_v47  ;;  %v349_v21 = vadd.f32 %v1062_v9, %v310_v11 }
  0x2a   : > { %v396_v23 = vpack.c.bf16 %v379_v15, %v378_v14  ;;  %v364_v6 = vmax.f32 %v332_v17, 0.0  ;;  %v365_v24 = vmax.f32 %v333_v18, 0.0  ;;  %v380_v25 = vmax.f32 %v348_v20, 0.0 }
  0x2b   : > { %v360_v2 = vmax.f32 %v328_v51, 0.0 }
  0x2c   : > { %916 = vmatmul.mubr.bf16.vlgmr.msra.gmra.mxu0 %v1107_v46  ;;  %932 = vmatmul.mubr.bf16.vlgmr.msra.gmra.mxu1 %v391_v22  ;;  %v385_v46 = vpack.c.bf16 %v357_v32, %v356_v27  ;;  %v388_v22 = vpack.c.bf16 %v363_v13, %v362_v12  ;;  %v389_v27 = vpack.c.bf16 %v365_v24, %v364_v6 }
  0x2d   : > { %919 = vmatprep.mubr.bf16.mxu0 %v384_v26  ;;  %935 = vmatprep.mubr.bf16.mxu1 %v392_v34  ;;  %v387_v16 = vpack.c.bf16 %v361_v3, %v360_v2  ;;  %v381_v26 = vmax.f32 %v349_v21, 0.0 }
  0x2f   : > { %v397_v28 = vpack.c.bf16 %v381_v26, %v380_v25 }
  0x34   : > { %920 = vmatmul.mubr.bf16.gmra.mxu0 %v385_v46  ;;  %936 = vmatmul.mubr.bf16.gmra.mxu1 %v393_v57 }
  0x35   : > { %923 = vmatprep.mubr.bf16.mxu0 %v386_v60  ;;  %939 = vmatprep.mubr.bf16.mxu1 %v394_v61 }
  0x3c   : > { %924 = vmatmul.mubr.bf16.gmra.mxu0 %v387_v16  ;;  %940 = vmatmul.mubr.bf16.gmra.mxu1 %v395_v19 }
  0x3d   : > { %927 = vmatprep.mubr.bf16.mxu0 %v388_v22  ;;  %943 = vmatprep.mubr.bf16.mxu1 %v396_v23 }
  0x44   : > { %928 = vmatmul.mubr.bf16.gmra.mxu0 %v389_v27  ;;  %944 = vmatmul.mubr.bf16.gmra.mxu1 %v397_v28 }
  0xec   : > { %v917_v9 = vpop.f32.mrf.mxu0  ;;  %v1196_v29 = vpop.f32.mrf.mxu1 }
  0xed   : > { %625 = vst [vmem:[%s1194_s25 + $0x10] sm:$0xff] %v917_v9  ;;  %641 = vst [vmem:[%s1194_s25 + $0x90] sm:$0xff] %v1196_v29  ;;  %v694_v41 = vmul.f32 %v917_v9, %v917_v9 }
  0xee   : > { %v496_v30 = vpop.f32.mrf.mxu0  ;;  %v1201_v31 = vpop.f32.mrf.mxu1 }
  0xef   : > { %623 = vst [vmem:[%s1194_s25] sm:$0xff] %v496_v30  ;;  %639 = vst [vmem:[%s1194_s25 + $0x80] sm:$0xff] %v1201_v31  ;;  %v692_v36 = vmul.f32 %v496_v30, %v496_v30 }
  0xf0   : > { %v918_v32 = vpop.f32.mrf.mxu0  ;;  %v1206_v33 = vpop.f32.mrf.mxu1 }
  0xf1   : > { %626 = vst [vmem:[%s1194_s25 + $0x18] sm:$0xff] %v918_v32  ;;  %642 = vst [vmem:[%s1194_s25 + $0x98] sm:$0xff] %v1206_v33  ;;  %v695_v47 = vmul.f32 %v918_v32, %v918_v32 }
  0xf2   : > { %v499_v34 = vpop.f32.mrf.mxu0  ;;  %v1211_v35 = vpop.f32.mrf.mxu1 }
  0xf3   : > { %624 = vst [vmem:[%s1194_s25 + $0x8] sm:$0xff] %v499_v34  ;;  %v655_v37 = vadd.f32 %v499_v34, %v496_v30  ;;  %v693_v38 = vmul.f32 %v499_v34, %v499_v34  ;;  %640 = vst [vmem:[%s1194_s25 + $0x88] sm:$0xff] %v1211_v35 }
  0xf4   : > { %v921_v39 = vpop.f32.mrf.mxu0  ;;  %v1216_v40 = vpop.f32.mrf.mxu1 }
  0xf5   : > { %v656_v42 = vadd.f32 %v917_v9, %v655_v37  ;;  %v724_v43 = vadd.f32 %v693_v38, %v692_v36  ;;  %629 = vst [vmem:[%s1194_s25 + $0x30] sm:$0xff] %v921_v39  ;;  %645 = vst [vmem:[%s1194_s25 + $0xb0] sm:$0xff] %v1216_v40  ;;  %v698_v61 = vmul.f32 %v921_v39, %v921_v39 }
  0xf6   : > { %v512_v44 = vpop.f32.mrf.mxu0  ;;  %v1221_v45 = vpop.f32.mrf.mxu1 }
  0xf7   : > { %v725_v48 = vadd.f32 %v724_v43, %v694_v41  ;;  %627 = vst [vmem:[%s1194_s25 + $0x20] sm:$0xff] %v512_v44  ;;  %v657_v49 = vadd.f32 %v918_v32, %v656_v42  ;;  %643 = vst [vmem:[%s1194_s25 + $0xa0] sm:$0xff] %v1221_v45  ;;  %v696_v52 = vmul.f32 %v512_v44, %v512_v44 }
  0xf8   : > { %v922_v50 = vpop.f32.mrf.mxu0  ;;  %v1226_v46 = vpop.f32.mrf.mxu1 }
  0xf9   : > { %v658_v51 = vadd.f32 %v657_v49, %v512_v44  ;;  %v726_v53 = vadd.f32 %v725_v48, %v695_v47  ;;  %630 = vst [vmem:[%s1194_s25 + $0x38] sm:$0xff] %v922_v50  ;;  %646 = vst [vmem:[%s1194_s25 + $0xb8] sm:$0xff] %v1226_v46  ;;  %v699_v2 = vmul.f32 %v922_v50, %v922_v50 }
  0xfa   : > { %v515_v54 = vpop.f32.mrf.mxu0  ;;  %v1231_v55 = vpop.f32.mrf.mxu1  ;;  %v708_v48 = vmul.f32 %v1201_v31, %v1201_v31 }
  0xfb   : > { %v727_v56 = vadd.f32 %v726_v53, %v696_v52  ;;  %628 = vst [vmem:[%s1194_s25 + $0x28] sm:$0xff] %v515_v54  ;;  %v659_v57 = vadd.f32 %v658_v51, %v515_v54  ;;  %v697_v58 = vmul.f32 %v515_v54, %v515_v54  ;;  %644 = vst [vmem:[%s1194_s25 + $0xa8] sm:$0xff] %v1231_v55 }
  0xfc   : > { %v925_v59 = vpop.f32.mrf.mxu0  ;;  %v1236_v60 = vpop.f32.mrf.mxu1  ;;  %v709_v52 = vmul.f32 %v1211_v35, %v1211_v35  ;;  %v710_v54 = vmul.f32 %v1196_v29, %v1196_v29 }
  0xfd   : > { %v660_v62 = vadd.f32 %v921_v39, %v659_v57  ;;  %v728_v63 = vadd.f32 %v727_v56, %v697_v58  ;;  %633 = vst [vmem:[%s1194_s25 + $0x50] sm:$0xff] %v925_v59  ;;  %649 = vst [vmem:[%s1194_s25 + $0xd0] sm:$0xff] %v1236_v60  ;;  %v702_v19 = vmul.f32 %v925_v59, %v925_v59 }
  0xfe   : > { %v528_v0 = vpop.f32.mrf.mxu0  ;;  %v1241_v1 = vpop.f32.mrf.mxu1  ;;  %v711_v58 = vmul.f32 %v1206_v33, %v1206_v33 }
  0xff   : > { %v729_v3 = vadd.f32 %v728_v63, %v698_v61  ;;  %631 = vst [vmem:[%s1194_s25 + $0x40] sm:$0xff] %v528_v0  ;;  %v661_v4 = vadd.f32 %v922_v50, %v660_v62  ;;  %647 = vst [vmem:[%s1194_s25 + $0xc0] sm:$0xff] %v1241_v1  ;;  %v700_v10 = vmul.f32 %v528_v0, %v528_v0 }
 0x100   : > { %v926_v5 = vpop.f32.mrf.mxu0  ;;  %v1246_v7 = vpop.f32.mrf.mxu1  ;;  %v712_v62 = vmul.f32 %v1221_v45, %v1221_v45 }
 0x101   : > { %v662_v8 = vadd.f32 %v661_v4, %v528_v0  ;;  %v730_v11 = vadd.f32 %v729_v3, %v699_v2  ;;  %634 = vst [vmem:[%s1194_s25 + $0x58] sm:$0xff] %v926_v5  ;;  %650 = vst [vmem:[%s1194_s25 + $0xd8] sm:$0xff] %v1246_v7  ;;  %v703_v6 = vmul.f32 %v926_v5, %v926_v5 }
 0x102   : > { %v531_v12 = vpop.f32.mrf.mxu0  ;;  %v1251_v13 = vpop.f32.mrf.mxu1  ;;  %v713_v2 = vmul.f32 %v1231_v55, %v1231_v55 }
 0x103   : > { %v731_v14 = vadd.f32 %v730_v11, %v700_v10  ;;  %632 = vst [vmem:[%s1194_s25 + $0x48] sm:$0xff] %v531_v12  ;;  %v663_v15 = vadd.f32 %v662_v8, %v531_v12  ;;  %v701_v16 = vmul.f32 %v531_v12, %v531_v12  ;;  %648 = vst [vmem:[%s1194_s25 + $0xc8] sm:$0xff] %v1251_v13 }
 0x104   : > { %v929_v17 = vpop.f32.mrf.mxu0  ;;  %v1256_v18 = vpop.f32.mrf.mxu1  ;;  %v716_v10 = vmul.f32 %v1241_v1, %v1241_v1 }
 0x105   : > { %v664_v20 = vadd.f32 %v925_v59, %v663_v15  ;;  %v732_v21 = vadd.f32 %v731_v14, %v701_v16  ;;  %637 = vst [vmem:[%s1194_s25 + $0x70] sm:$0xff] %v929_v17  ;;  %653 = vst [vmem:[%s1194_s25 + $0xf0] sm:$0xff] %v1256_v18  ;;  %v706_v39 = vmul.f32 %v929_v17, %v929_v17 }
 0x106   : > { %v544_v22 = vpop.f32.mrf.mxu0  ;;  %v608_v23 = vpop.f32.mrf.mxu1  ;;  %v717_v14 = vmul.f32 %v1251_v13, %v1251_v13 }
 0x107   : > { %v733_v24 = vadd.f32 %v732_v21, %v702_v19  ;;  %635 = vst [vmem:[%s1194_s25 + $0x60] sm:$0xff] %v544_v22  ;;  %v665_v25 = vadd.f32 %v926_v5, %v664_v20  ;;  %651 = vst [vmem:[%s1194_s25 + $0xe0] sm:$0xff] %v608_v23  ;;  %v704_v9 = vmul.f32 %v544_v22, %v544_v22 }
 0x108   : > { %v930_v26 = vpop.f32.mrf.mxu0  ;;  %v1263_v27 = vpop.f32.mrf.mxu1  ;;  %v720_v20 = vmul.f32 %v608_v23, %v608_v23 }
 0x109   : > { %v666_v28 = vadd.f32 %v665_v25, %v544_v22  ;;  %v734_v30 = vadd.f32 %v733_v24, %v703_v6  ;;  %638 = vst [vmem:[%s1194_s25 + $0x78] sm:$0xff] %v930_v26  ;;  %654 = vst [vmem:[%s1194_s25 + $0xf8] sm:$0xff] %v1263_v27  ;;  %v707_v43 = vmul.f32 %v930_v26, %v930_v26 }
 0x10a   : > { %v547_v32 = vpop.f32.mrf.mxu0  ;;  %v611_v34 = vpop.f32.mrf.mxu1  ;;  %v722_v24 = vmul.f32 %v1256_v18, %v1256_v18 }
 0x10b   : > { %v735_v36 = vadd.f32 %v734_v30, %v704_v9  ;;  %636 = vst [vmem:[%s1194_s25 + $0x68] sm:$0xff] %v547_v32  ;;  %v667_v37 = vadd.f32 %v666_v28, %v547_v32  ;;  %v705_v38 = vmul.f32 %v547_v32, %v547_v32  ;;  %652 = vst [vmem:[%s1194_s25 + $0xe8] sm:$0xff] %v611_v34 }
 0x10d   : > { %v668_v41 = vadd.f32 %v929_v17, %v667_v37  ;;  %v736_v42 = vadd.f32 %v735_v36, %v705_v38 }
 0x10f   : > { %v669_v44 = vadd.f32 %v930_v26, %v668_v41  ;;  %v737_v47 = vadd.f32 %v736_v42, %v706_v39  ;;  %v723_v26 = vmul.f32 %v1263_v27, %v1263_v27 }
 0x111   : > { %v738_v49 = vadd.f32 %v737_v47, %v707_v43  ;;  %v670_v50 = vadd.f32 %v669_v44, %v1201_v31 }
 0x113   : > { %v671_v51 = vadd.f32 %v670_v50, %v1211_v35  ;;  %v739_v53 = vadd.f32 %v738_v49, %v708_v48 }
 0x115   : > { %v672_v56 = vadd.f32 %v1196_v29, %v671_v51  ;;  %v740_v57 = vadd.f32 %v739_v53, %v709_v52  ;;  %v714_v29 = vmul.f32 %v1216_v40, %v1216_v40 }
 0x117   : > { %v741_v59 = vadd.f32 %v740_v57, %v710_v54  ;;  %v673_v61 = vadd.f32 %v1206_v33, %v672_v56  ;;  %v715_v33 = vmul.f32 %v1226_v46, %v1226_v46 }
 0x119   : > { %v674_v31 = vadd.f32 %v673_v61, %v1221_v45  ;;  %v742_v63 = vadd.f32 %v741_v59, %v711_v58 }
 0x11b   : > { %v743_v35 = vadd.f32 %v742_v63, %v712_v62  ;;  %v675_v0 = vadd.f32 %v674_v31, %v1231_v55 }
 0x11d   : > { %v676_v3 = vadd.f32 %v1216_v40, %v675_v0  ;;  %v744_v4 = vadd.f32 %v743_v35, %v713_v2  ;;  %v718_v40 = vmul.f32 %v1236_v60, %v1236_v60 }
 0x11f   : > { %v745_v5 = vadd.f32 %v744_v4, %v714_v29  ;;  %v677_v8 = vadd.f32 %v1226_v46, %v676_v3  ;;  %v719_v46 = vmul.f32 %v1246_v7, %v1246_v7 }
 0x121   : > { %v678_v45 = vadd.f32 %v677_v8, %v1241_v1  ;;  %v746_v11 = vadd.f32 %v745_v5, %v715_v33 }
 0x123   : > { %v747_v12 = vadd.f32 %v746_v11, %v716_v10  ;;  %v679_v55 = vadd.f32 %v678_v45, %v1251_v13  ;;  %v721_v13 = vmul.f32 %v611_v34, %v611_v34 }
 0x125   : > { %v680_v15 = vadd.f32 %v1236_v60, %v679_v55  ;;  %v748_v16 = vadd.f32 %v747_v12, %v717_v14 }
 0x127   : > { %v749_v17 = vadd.f32 %v748_v16, %v718_v40  ;;  %v681_v1 = vadd.f32 %v1246_v7, %v680_v15 }
 0x129   : > { %v682_v19 = vadd.f32 %v681_v1, %v608_v23  ;;  %v750_v21 = vadd.f32 %v749_v17, %v719_v46 }
 0x12b   : > { %v751_v22 = vadd.f32 %v750_v21, %v720_v20  ;;  %v683_v6 = vadd.f32 %v682_v19, %v611_v34 }
 0x12d   : > { %v684_v60 = vadd.f32 %v1256_v18, %v683_v6  ;;  %v752_v25 = vadd.f32 %v751_v22, %v721_v13 }
 0x12f   : > { %v685_v28 = vadd.f32 %v1263_v27, %v684_v60  ;;  %v753_v9 = vadd.f32 %v752_v25, %v722_v24 }
 0x131   : > { %v686_v7 = vrot.slane %v685_v28, 4  ;;  %v754_v30 = vadd.f32 %v753_v9, %v723_v26 }
 0x133   : > { %v687_v23 = vadd.f32 %v686_v7, %v685_v28  ;;  %v755_v32 = vrot.slane %v754_v30, 4 }
 0x135   : > { %v688_v36 = vrot.slane %v687_v23, 2  ;;  %v756_v37 = vadd.f32 %v755_v32, %v754_v30 }
 0x137   : > { %v689_v34 = vadd.f32 %v688_v36, %v687_v23  ;;  %v757_v38 = vrot.slane %v756_v37, 2 }
 0x139   : > { %v690_v39 = vrot.slane %v689_v34, 1  ;;  %v758_v41 = vadd.f32 %v757_v38, %v756_v37 }
 0x13b   : > { %v759_v18 = vrot.slane %v758_v41, 1  ;;  %v691_v42 = vadd.f32 %v690_v39, %v689_v34 }
 0x13d   : > { %v760_v43 = vadd.f32 %v759_v18, %v758_v41 }
 0x13f   : > { %v762_v27 = vsel %vm761_vm0, %v691_v42, %v760_v43 }
 0x140   : > { %v764_v44 = vsel %vm763_vm1, %v762_v27, 0.0 }
 0x141   : > { %765 = vst [vmem:[%s238_s28] sm:$0xff] %v764_v44 }
 0x142 PF: > { %s16_s18 = sadd.s32 1, %s985_s18  }
 0x143   : > { %p13_p5 = scmp.ge.s32.totalorder %s16_s18, 4  }
 0x145   :  { %15 = sbr.rel (!%p13_p5) target bundleno = 1 (0x1), region = 78 }

// kernel: layer131_forward.4
= control target key start
LH: loop header
LB: loop body
LE: loop exit
PB: predicated region body
PF: predicated region fallthrough
CT: control target
= control target key end

     0   :  { %s2480_s18 = smov 0   ;;  %s3936_s0 = inlined_call_operand.vmem [shape: f32[2,16,16,128], index: 0, kind: input, shape index: {}]   ;;  %s3937_s1 = inlined_call_operand.vmem [shape: f32[1,128], index: 1, kind: input, shape index: {}]   ;;  %s3938_s2 = inlined_call_operand.vmem [shape: f32[1,128], index: 2, kind: input, shape index: {}]   ;;  %s3939_s3 = inlined_call_operand.vmem [shape: f32[9,128], index: 3, kind: input, shape index: {}]   ;;  %s3940_s4 = inlined_call_operand.vmem [shape: f32[2,16,16,128], index: 4, kind: output, shape index: {0}]   ;;  %s3941_s5 = inlined_call_operand.vmem [shape: f32[2,8,128], index: 5, kind: output, shape index: {1}]  }
   0x1 LB: > { %s2411_s19 = sadd.s32 4294967295, %s2448_s18   ;;  %p2415_p0 = scmp.ge.s32.totalorder %s2448_s18, 1  ;;  %s2448_s18 = sphi %s2480_s18, %s16_s18  }
   0x2   : > { %p190_p1 = scmp.lt.s32.totalorder %s2448_s18, 3 }
   0x4   : > { %p191_p2 = pnand %p2415_p0, %p190_p1 }
   0x5   : > { %p222_p3 = scmp.lt.s32.totalorder (!%p191_p2), %s2411_s19, 1 }
   0x6   : > { %194 = sbr.rel (%p191_p2) target bundleno = 392 (0x188), region = 36 }
   0xb   : > { %v605_v0 = vlaneseq  ;;  %s3943_s19 = smov (!%p222_p3, %s2411_s19), 1  ;;  %v2493_v2 = vld [vmem:[%s3937_s1] ss:$0 sm:$0xff]  ;;  %vm442_vm0 = vcmask 1040384   ;;  %vm733_vm1 = vcmask 1046528   ;;  %vm963_vm2 = vcmask 1045504  }
   0xc   : > { %v603_v3 = vld [vmem:[%s3939_s3] sm:$0xff]  ;;  %s2426_s24 = sshll.u32 %s3943_s19, 8  ;;  %vm2322_vm3 = vcmask 1041408  }
   0xd   : > { %v606_v1 = vshrl.u32 %v605_v0, 7  ;;  %s2504_s27 = scalar_lea.vmem %s3936_s0, %s2426_s24  ;;  %v2509_v8 = vld [vmem:[%s3938_s2] ss:$0 sm:$0xff]  ;;  %s2675_s9 = scalar_lea.vmem %s3940_s4, %s2426_s24 }
   0xe   : > { %v236_v13 = vld [vmem:[%s2504_s27] sm:$0xff]  ;;  %v237_v14 = vld [vmem:[%s2504_s27 + $0x8] sm:$0xff]  ;;  %v238_v15 = vld [vmem:[%s2504_s27 + $0x10] sm:$0xff]  ;;  %s2420_s24 = sshll.u32 %s3943_s19, 3 }
   0xf   : > { %v607_v4 = vsub.s32 0, %v606_v1  ;;  %v641_v5 = vsub.s32 1, %v606_v1  ;;  %v871_v6 = vsub.s32 2, %v606_v1  ;;  %v1101_v7 = vsub.s32 3, %v606_v1  ;;  %v239_v20 = vld [vmem:[%s2504_s27 + $0x18] sm:$0xff]  ;;  %v240_v25 = vld [vmem:[%s2504_s27 + $0x20] sm:$0xff] }
  0x10   : > { %v1169_v9 = vsub.s32 4, %v606_v1  ;;  %v1413_v10 = vsub.s32 5, %v606_v1  ;;  %v1657_v11 = vsub.s32 6, %v606_v1  ;;  %v1723_v12 = vsub.s32 7, %v606_v1  ;;  %v241_v26 = vld [vmem:[%s2504_s27 + $0x28] sm:$0xff]  ;;  %v242_v31 = vld [vmem:[%s2504_s27 + $0x30] sm:$0xff] }
  0x11   : > { %v2514_v16 = vrot.slane %v603_v3, %v607_v4  ;;  %v2516_v17 = vrot.slane %v603_v3, %v641_v5  ;;  %v2518_v18 = vrot.slane %v603_v3, %v871_v6  ;;  %v2520_v19 = vrot.slane %v603_v3, %v1101_v7  ;;  %v243_v32 = vld [vmem:[%s2504_s27 + $0x38] sm:$0xff] }
  0x12   : > { %v276_v21 = vmul.f32 %v2493_v2, %v236_v13  ;;  %v277_v22 = vmul.f32 %v2493_v2, %v237_v14  ;;  %v278_v23 = vmul.f32 %v2493_v2, %v238_v15  ;;  %v2526_v24 = vrot.slane %v603_v3, %v1169_v9 }
  0x13   : > { %v279_v27 = vmul.f32 %v2493_v2, %v239_v20  ;;  %v2531_v28 = vrot.slane %v603_v3, %v1413_v10  ;;  %v2533_v29 = vrot.slane %v603_v3, %v1657_v11  ;;  %v2535_v30 = vrot.slane %v603_v3, %v1723_v12  ;;  %v2594_v11 = vld [vmem:[%s3939_s3 + $0x8] ss:$0 sm:$0xff] }
  0x14   : > { %v314_v33 = vadd.f32 %v2509_v8, %v276_v21  ;;  %v315_v34 = vadd.f32 %v2509_v8, %v277_v22  ;;  %v316_v35 = vadd.f32 %v2509_v8, %v278_v23  ;;  %v280_v36 = vmul.f32 %v2493_v2, %v240_v25 }
  0x15   : > { %v317_v37 = vadd.f32 %v2509_v8, %v279_v27  ;;  %v281_v38 = vmul.f32 %v2493_v2, %v241_v26  ;;  %v282_v39 = vmul.f32 %v2493_v2, %v242_v31  ;;  %v283_v40 = vmul.f32 %v2493_v2, %v243_v32 }
  0x16   : > { %v346_v41 = vmax.f32 %v314_v33, 0.0  ;;  %v347_v42 = vmax.f32 %v315_v34, 0.0  ;;  %v348_v43 = vmax.f32 %v316_v35, 0.0  ;;  %v2548_v44 = vadd.f32 %v2509_v8, %v280_v36 }
  0x17   : > { %v349_v45 = vmax.f32 %v317_v37, 0.0  ;;  %v2551_v46 = vadd.f32 %v2509_v8, %v281_v38  ;;  %v2554_v47 = vadd.f32 %v2509_v8, %v282_v39  ;;  %v2557_v48 = vadd.f32 %v2509_v8, %v283_v40 }
  0x18   : > { %v394_v49 = vrot.slane %v346_v41, 1  ;;  %v395_v50 = vrot.slane %v348_v43, 1  ;;  %v443_v51 = vrot.slane %v346_v41, 7  ;;  %v444_v52 = vrot.slane %v347_v42, 7 }
  0x19   : > { %v446_v53 = vrot.slane %v348_v43, 7  ;;  %v447_v54 = vrot.slane %v349_v45, 7  ;;  %v539_v55 = vrot.slane %v347_v42, 5  ;;  %v540_v56 = vrot.slane %v349_v45, 5 }
  0x1a   : > { %v2560_v57 = vsel %vm442_vm0, %v443_v51, %v444_v52  ;;  %v2563_v58 = vsel %vm442_vm0, %v394_v49, %v443_v51  ;;  %v350_v59 = vmax.f32 %v2548_v44, 0.0  ;;  %v351_v60 = vmax.f32 %v2551_v46, 0.0 }
  0x1b   : > { %v2568_v61 = vsel %vm442_vm0, %v446_v53, %v447_v54  ;;  %v2571_v62 = vsel %vm442_vm0, %v395_v50, %v446_v53  ;;  %v1103_v63 = vmul.f32 %v2520_v19, %v2563_v58  ;;  %v1171_v0 = vmul.f32 %v2526_v24, %v2563_v58 }
  0x1c   : > { %v609_v1 = vmul.f32 %v2514_v16, %v2571_v62  ;;  %v643_v3 = vmul.f32 %v2516_v17, %v2571_v62  ;;  %v644_v4 = vmul.f32 %v2516_v17, %v2568_v61  ;;  %v873_v5 = vmul.f32 %v2518_v18, %v2571_v62 }
  0x1d   : > { %v874_v6 = vmul.f32 %v2518_v18, %v2568_v61  ;;  %v1172_v7 = vmul.f32 %v2526_v24, %v2560_v57  ;;  %v1267_v9 = vrot.slane %v1171_v0, 1  ;;  %v1415_v10 = vmul.f32 %v2531_v28, %v2563_v58 }
  0x1e   : > { %v734_v12 = vrot.slane %v643_v3, 1  ;;  %v735_v13 = vrot.slane %v644_v4, 1  ;;  %v964_v14 = vrot.slane %v873_v5, 2  ;;  %v1416_v15 = vmul.f32 %v2531_v28, %v2560_v57 }
  0x1f   : > { %v965_v20 = vrot.slane %v874_v6, 2  ;;  %v1268_v21 = vrot.slane %v1172_v7, 1  ;;  %v1511_v22 = vrot.slane %v1415_v10, 2  ;;  %v1659_v23 = vmul.f32 %v2533_v29, %v2571_v62 }
  0x20   : > { %v736_v25 = vsel %vm733_vm1, %v734_v12, %v735_v13  ;;  %v1512_v26 = vrot.slane %v1416_v15, 2  ;;  %v1725_v27 = vmul.f32 %v2535_v30, %v2571_v62  ;;  %v1726_v31 = vmul.f32 %v2535_v30, %v2568_v61 }
  0x21   : > { %v839_v32 = vadd.f32 %v736_v25, %v609_v1  ;;  %v966_v33 = vsel %vm963_vm2, %v964_v14, %v965_v20  ;;  %v1269_v34 = vsel %vm733_vm1, %v1267_v9, %v1268_v21  ;;  %v1956_v35 = vmul.f32 %v2594_v11, %v2571_v62 }
  0x22   : > { %v1513_v36 = vsel %vm963_vm2, %v1511_v22, %v1512_v26  ;;  %v1815_v37 = vrot.slane %v1725_v27, 1  ;;  %v1816_v38 = vrot.slane %v1726_v31, 1  ;;  %v1957_v39 = vmul.f32 %v2594_v11, %v2568_v61 }
  0x23   : > { %v2612_v40 = vadd.f32 %v966_v33, %v839_v32  ;;  %v2046_v41 = vrot.slane %v1956_v35, 2  ;;  %v2615_v42 = vsel %vm442_vm0, %v444_v52, %v539_v55  ;;  %v2618_v43 = vsel %vm442_vm0, %v447_v54, %v540_v56 }
  0x24   : > { %v1817_v45 = vsel %vm733_vm1, %v1815_v37, %v1816_v38  ;;  %v2047_v49 = vrot.slane %v1957_v39, 2  ;;  %v610_v50 = vmul.f32 %v2514_v16, %v2568_v61  ;;  %v645_v51 = vmul.f32 %v2516_v17, %v2618_v43 }
  0x25   : > { %v1135_v53 = vadd.f32 %v1103_v63, %v2612_v40  ;;  %v875_v0 = vmul.f32 %v2518_v18, %v2618_v43  ;;  %v1104_v52 = vmul.f32 %v2520_v19, %v2560_v57  ;;  %v1173_v54 = vmul.f32 %v2526_v24, %v2615_v42 }
  0x26   : > { %v2048_v55 = vsel %vm963_vm2, %v2046_v41, %v2047_v49  ;;  %v737_v56 = vrot.slane %v645_v51, 1  ;;  %v1417_v1 = vmul.f32 %v2531_v28, %v2615_v42  ;;  %v1660_v3 = vmul.f32 %v2533_v29, %v2568_v61 }
  0x27   : > { %v1379_v4 = vadd.f32 %v1269_v34, %v1135_v53  ;;  %v967_v63 = vrot.slane %v875_v0, 2  ;;  %v1270_v5 = vrot.slane %v1173_v54, 1  ;;  %v1727_v6 = vmul.f32 %v2535_v30, %v2618_v43 }
  0x28   : > { %v738_v7 = vsel %vm733_vm1, %v735_v13, %v737_v56  ;;  %v1514_v9 = vrot.slane %v1417_v1, 2  ;;  %v1958_v10 = vmul.f32 %v2594_v11, %v2618_v43  ;;  %v396_v12 = vrot.slane %v350_v59, 1 }
  0x29   : > { %v1623_v14 = vadd.f32 %v1513_v36, %v1379_v4  ;;  %v840_v15 = vadd.f32 %v738_v7, %v610_v50  ;;  %v968_v22 = vsel %vm963_vm2, %v965_v20, %v967_v63  ;;  %v1271_v25 = vsel %vm733_vm1, %v1268_v21, %v1270_v5 }
  0x2a   : > { %v1515_v27 = vsel %vm963_vm2, %v1512_v26, %v1514_v9  ;;  %v1818_v31 = vrot.slane %v1727_v6, 1  ;;  %v2049_v32 = vrot.slane %v1958_v10, 2  ;;  %v449_v13 = vrot.slane %v350_v59, 7 }
  0x2b   : > { %v1689_v33 = vadd.f32 %v1659_v23, %v1623_v14  ;;  %v2649_v34 = vadd.f32 %v968_v22, %v840_v15  ;;  %v450_v35 = vrot.slane %v351_v60, 7  ;;  %v611_v36 = vmul.f32 %v2514_v16, %v2563_v58 }
  0x2c   : > { %v1819_v20 = vsel %vm733_vm1, %v1816_v38, %v1818_v31  ;;  %v2050_v21 = vsel %vm963_vm2, %v2047_v49, %v2049_v32  ;;  %v2658_v26 = vsel %vm442_vm0, %v396_v12, %v449_v13  ;;  %v646_v44 = vmul.f32 %v2516_v17, %v2563_v58 }
  0x2d   : > { %v1920_v59 = vadd.f32 %v1817_v45, %v1689_v33  ;;  %v1136_v23 = vadd.f32 %v1104_v52, %v2649_v34  ;;  %v2664_v37 = vsel %vm442_vm0, %v449_v13, %v450_v35  ;;  %v2668_v39 = vmul.f32 %v2516_v17, %v2560_v57 }
  0x2e   : > { %v739_v38 = vrot.slane %v646_v44, 1  ;;  %v876_v41 = vmul.f32 %v2518_v18, %v2563_v58  ;;  %v2681_v45 = vmul.f32 %v2518_v18, %v2560_v57  ;;  %v1105_v49 = vmul.f32 %v2520_v19, %v2571_v62 }
  0x2f   : > { %v2151_v50 = vadd.f32 %v2048_v55, %v1920_v59  ;;  %v1380_v51 = vadd.f32 %v1271_v25, %v1136_v23  ;;  %v740_v53 = vrot.slane %v2668_v39, 1  ;;  %v1174_v0 = vmul.f32 %v2526_v24, %v2571_v62 }
  0x30   : > { %v969_v52 = vrot.slane %v876_v41, 2  ;;  %v970_v54 = vrot.slane %v2681_v45, 2  ;;  %v1175_v58 = vmul.f32 %v2526_v24, %v2568_v61  ;;  %v1418_v56 = vmul.f32 %v2531_v28, %v2571_v62 }
  0x31   : > { %2183 = vst [vmem:[%s2675_s9] sm:$0xff] %v2151_v50  ;;  %v2252_v1 = vmul.f32 %v2151_v50, %v2151_v50  ;;  %v1624_v4 = vadd.f32 %v1515_v27, %v1380_v51  ;;  %v741_v55 = vsel %vm733_vm1, %v739_v38, %v740_v53  ;;  %v1272_v63 = vrot.slane %v1174_v0, 1 }
  0x32   : > { %v841_v5 = vadd.f32 %v741_v55, %v611_v36  ;;  %v971_v6 = vsel %vm963_vm2, %v969_v52, %v970_v54  ;;  %v1273_v7 = vrot.slane %v1175_v58, 1  ;;  %v1419_v9 = vmul.f32 %v2531_v28, %v2568_v61 }
  0x33   : > { %v1690_v10 = vadd.f32 %v1660_v3, %v1624_v4  ;;  %v1516_v12 = vrot.slane %v1418_v56, 2  ;;  %v1661_v14 = vmul.f32 %v2533_v29, %v2658_v26  ;;  %v1728_v62 = vmul.f32 %v2535_v30, %v2658_v26 }
  0x34   : > { %v1071_v15 = vadd.f32 %v971_v6, %v841_v5  ;;  %v1274_v22 = vsel %vm733_vm1, %v1272_v63, %v1273_v7  ;;  %v1517_v25 = vrot.slane %v1419_v9, 2  ;;  %v1729_v27 = vmul.f32 %v2535_v30, %v2664_v37 }
  0x35   : > { %v1921_v31 = vadd.f32 %v1819_v20, %v1690_v10  ;;  %v1820_v32 = vrot.slane %v1728_v62, 1  ;;  %v1959_v3 = vmul.f32 %v2594_v11, %v2658_v26  ;;  %v1960_v13 = vmul.f32 %v2594_v11, %v2664_v37 }
  0x36   : > { %v1137_v33 = vadd.f32 %v1105_v49, %v1071_v15  ;;  %v1518_v36 = vsel %vm963_vm2, %v1516_v12, %v1517_v25  ;;  %v1821_v44 = vrot.slane %v1729_v27, 1  ;;  %v541_v59 = vrot.slane %v351_v60, 5 }
  0x37   : > { %v2152_v23 = vadd.f32 %v2050_v21, %v1921_v31  ;;  %v2051_v39 = vrot.slane %v1959_v3, 2  ;;  %v2052_v38 = vrot.slane %v1960_v13, 2  ;;  %v612_v20 = vmul.f32 %v2514_v16, %v2560_v57 }
  0x38   : > { %v1381_v41 = vadd.f32 %v1274_v22, %v1137_v33  ;;  %v1822_v45 = vsel %vm733_vm1, %v1820_v32, %v1821_v44  ;;  %v2716_v51 = vsel %vm442_vm0, %v450_v35, %v541_v59  ;;  %v648_v49 = vmul.f32 %v2516_v17, %v2615_v42 }
  0x39   : > { %2184 = vst [vmem:[%s2675_s9 + $0x8] sm:$0xff] %v2152_v23  ;;  %v2215_v0 = vadd.f32 %v2152_v23, %v2151_v50  ;;  %v2253_v52 = vmul.f32 %v2152_v23, %v2152_v23  ;;  %v2053_v46 = vsel %vm963_vm2, %v2051_v39, %v2052_v38  ;;  %v878_v60 = vmul.f32 %v2518_v18, %v2615_v42 }
  0x3a   : > { %v1625_v21 = vadd.f32 %v1518_v36, %v1381_v41  ;;  %v742_v58 = vrot.slane %v648_v49, 1  ;;  %v1106_v57 = vmul.f32 %v2520_v19, %v2568_v61  ;;  %v1176_v35 = vmul.f32 %v2526_v24, %v2618_v43 }
  0x3b   : > { %v2284_v56 = vadd.f32 %v2253_v52, %v2252_v1  ;;  %v972_v4 = vrot.slane %v878_v60, 2  ;;  %v1420_v55 = vmul.f32 %v2531_v28, %v2618_v43  ;;  %v1662_v50 = vmul.f32 %v2533_v29, %v2664_v37 }
  0x3c   : > { %v1691_v63 = vadd.f32 %v1661_v14, %v1625_v21  ;;  %v743_v5 = vsel %vm733_vm1, %v740_v53, %v742_v58  ;;  %v1275_v42 = vrot.slane %v1176_v35, 1  ;;  %v1730_v6 = vmul.f32 %v2535_v30, %v2716_v51 }
  0x3d   : > { %v842_v9 = vadd.f32 %v743_v5, %v612_v20  ;;  %v973_v61 = vsel %vm963_vm2, %v970_v54, %v972_v4  ;;  %v1519_v10 = vrot.slane %v1420_v55, 2  ;;  %v1961_v1 = vmul.f32 %v2594_v11, %v2716_v51 }
  0x3e   : > { %v1922_v12 = vadd.f32 %v1822_v45, %v1691_v63  ;;  %v1276_v43 = vsel %vm733_vm1, %v1273_v7, %v1275_v42  ;;  %v1823_v62 = vrot.slane %v1730_v6, 1  ;;  %v352_v14 = vmax.f32 %v2554_v47, 0.0 }
  0x3f   : > { %v1072_v15 = vadd.f32 %v973_v61, %v842_v9  ;;  %v1520_v53 = vsel %vm963_vm2, %v1517_v25, %v1519_v10  ;;  %v2054_v22 = vrot.slane %v1961_v1, 2  ;;  %v353_v27 = vmax.f32 %v2557_v48, 0.0 }
  0x40   : > { %v2153_v31 = vadd.f32 %v2053_v46, %v1922_v12  ;;  %v1824_v54 = vsel %vm733_vm1, %v1821_v44, %v1823_v62  ;;  %v397_v32 = vrot.slane %v352_v14, 1  ;;  %v452_v3 = vrot.slane %v352_v14, 7 }
  0x41   : > { %v1138_v13 = vadd.f32 %v1106_v57, %v1072_v15  ;;  %v2055_v33 = vsel %vm963_vm2, %v2052_v38, %v2054_v22  ;;  %v453_v36 = vrot.slane %v353_v27, 7  ;;  %v1107_v7 = vmul.f32 %v2520_v19, %v2658_v26 }
  0x42   : > { %2185 = vst [vmem:[%s2675_s9 + $0x10] sm:$0xff] %v2153_v31  ;;  %v2216_v47 = vadd.f32 %v2215_v0, %v2153_v31  ;;  %v2254_v59 = vmul.f32 %v2153_v31, %v2153_v31  ;;  %v2748_v25 = vsel %vm442_vm0, %v397_v32, %v452_v3  ;;  %v1177_v48 = vmul.f32 %v2526_v24, %v2658_v26 }
  0x43   : > { %v1382_v23 = vadd.f32 %v1276_v43, %v1138_v13  ;;  %v2753_v44 = vsel %vm442_vm0, %v452_v3, %v453_v36  ;;  %v1139_v39 = vadd.f32 %v1107_v7, %v2612_v40  ;;  %v1178_v38 = vmul.f32 %v2526_v24, %v2664_v37 }
  0x44   : > { %v2285_v20 = vadd.f32 %v2284_v56, %v2254_v59  ;;  %v1277_v41 = vrot.slane %v1177_v48, 1  ;;  %v1421_v45 = vmul.f32 %v2531_v28, %v2658_v26  ;;  %v1422_v49 = vmul.f32 %v2531_v28, %v2664_v37 }
  0x45   : > { %v1626_v0 = vadd.f32 %v1520_v53, %v1382_v23  ;;  %v1278_v52 = vrot.slane %v1178_v38, 1  ;;  %v1663_v46 = vmul.f32 %v2533_v29, %v2748_v25  ;;  %v1731_v60 = vmul.f32 %v2535_v30, %v2748_v25 }
  0x46   : > { %v1521_v40 = vrot.slane %v1421_v45, 2  ;;  %v1522_v21 = vrot.slane %v1422_v49, 2  ;;  %v1732_v58 = vmul.f32 %v2535_v30, %v2753_v44  ;;  %v1962_v57 = vmul.f32 %v2594_v11, %v2748_v25 }
  0x47   : > { %v1692_v35 = vadd.f32 %v1662_v50, %v1626_v0  ;;  %v1279_v56 = vsel %vm733_vm1, %v1277_v41, %v1278_v52  ;;  %v1825_v4 = vrot.slane %v1731_v60, 1  ;;  %v1963_v55 = vmul.f32 %v2594_v11, %v2753_v44 }
  0x48   : > { %v1383_v63 = vadd.f32 %v1279_v56, %v1139_v39  ;;  %v1523_v5 = vsel %vm963_vm2, %v1521_v40, %v1522_v21  ;;  %v1826_v42 = vrot.slane %v1732_v58, 1  ;;  %v2056_v6 = vrot.slane %v1962_v57, 2 }
  0x49   : > { %v1923_v9 = vadd.f32 %v1824_v54, %v1692_v35  ;;  %v2057_v61 = vrot.slane %v1963_v55, 2  ;;  %v542_v10 = vrot.slane %v353_v27, 5  ;;  %v1108_v1 = vmul.f32 %v2520_v19, %v2664_v37  ;;  %v244_v27 = vld [vmem:[%s2504_s27 + $0x40] sm:$0xff] }
  0x4a   : > { %v1627_v50 = vadd.f32 %v1523_v5, %v1383_v63  ;;  %v1827_v12 = vsel %vm733_vm1, %v1825_v4, %v1826_v42  ;;  %v1179_v43 = vmul.f32 %v2526_v24, %v2716_v51  ;;  %v1423_v62 = vmul.f32 %v2531_v28, %v2716_v51 }
  0x4b   : > { %v2154_v14 = vadd.f32 %v2055_v33, %v1923_v9  ;;  %v2058_v15 = vsel %vm963_vm2, %v2056_v6, %v2057_v61  ;;  %v2783_v53 = vsel %vm442_vm0, %v453_v36, %v542_v10  ;;  %v1140_v22 = vadd.f32 %v1108_v1, %v2649_v34  ;;  %v245_v36 = vld [vmem:[%s2504_s27 + $0x48] sm:$0xff] }
  0x4c   : > { %v1693_v31 = vadd.f32 %v1663_v46, %v1627_v50  ;;  %v1280_v54 = vrot.slane %v1179_v43, 1  ;;  %v1524_v32 = vrot.slane %v1423_v62, 2  ;;  %v1664_v3 = vmul.f32 %v2533_v29, %v2753_v44 }
  0x4d   : > { %2186 = vst [vmem:[%s2675_s9 + $0x18] sm:$0xff] %v2154_v14  ;;  %v2217_v13 = vadd.f32 %v2216_v47, %v2154_v14  ;;  %v2255_v7 = vmul.f32 %v2154_v14, %v2154_v14  ;;  %v1733_v33 = vmul.f32 %v2535_v30, %v2783_v53  ;;  %v1964_v59 = vmul.f32 %v2594_v11, %v2783_v53 }
  0x4e   : > { %v1924_v48 = vadd.f32 %v1827_v12, %v1693_v31  ;;  %v1281_v34 = vsel %vm733_vm1, %v1278_v52, %v1280_v54  ;;  %v1525_v23 = vsel %vm963_vm2, %v1522_v21, %v1524_v32  ;;  %v284_v39 = vmul.f32 %v2493_v2, %v244_v27 }
  0x4f   : > { %v2286_v38 = vadd.f32 %v2285_v20, %v2255_v7  ;;  %v1384_v41 = vadd.f32 %v1281_v34, %v1140_v22  ;;  %v1828_v45 = vrot.slane %v1733_v33, 1  ;;  %v2059_v47 = vrot.slane %v1964_v59, 2 }
  0x50   : > { %v2155_v49 = vadd.f32 %v2058_v15, %v1924_v48  ;;  %v285_v0 = vmul.f32 %v2493_v2, %v245_v36  ;;  %v322_v46 = vadd.f32 %v2509_v8, %v284_v39  ;;  %v613_v60 = vmul.f32 %v2514_v16, %v2658_v26 }
  0x51   : > { %v1628_v40 = vadd.f32 %v1525_v23, %v1384_v41  ;;  %v1829_v58 = vsel %vm733_vm1, %v1826_v42, %v1828_v45  ;;  %v2060_v52 = vsel %vm963_vm2, %v2057_v61, %v2059_v47  ;;  %v649_v21 = vmul.f32 %v2516_v17, %v2658_v26 }
  0x52   : > { %2187 = vst [vmem:[%s2675_s9 + $0x20] sm:$0xff] %v2155_v49  ;;  %v2218_v20 = vadd.f32 %v2217_v13, %v2155_v49  ;;  %v2256_v57 = vmul.f32 %v2155_v49, %v2155_v49  ;;  %v323_v35 = vadd.f32 %v2509_v8, %v285_v0  ;;  %v354_v56 = vmax.f32 %v322_v46, 0.0 }
  0x53   : > { %v1694_v4 = vadd.f32 %v1664_v3, %v1628_v40  ;;  %v2810_v55 = vmul.f32 %v2516_v17, %v2664_v37  ;;  %v744_v63 = vrot.slane %v649_v21, 1  ;;  %v879_v5 = vmul.f32 %v2518_v18, %v2658_v26 }
  0x54   : > { %v2287_v42 = vadd.f32 %v2286_v38, %v2256_v57  ;;  %v355_v6 = vmax.f32 %v323_v35, 0.0  ;;  %v398_v9 = vrot.slane %v354_v56, 1  ;;  %v455_v61 = vrot.slane %v354_v56, 7 }
  0x55   : > { %v1925_v10 = vadd.f32 %v1829_v58, %v1694_v4  ;;  %v745_v1 = vrot.slane %v2810_v55, 1  ;;  %v880_v50 = vmul.f32 %v2518_v18, %v2664_v37  ;;  %v974_v12 = vrot.slane %v879_v5, 2 }
  0x56   : > { %v456_v43 = vrot.slane %v355_v6, 7  ;;  %v2818_v62 = vsel %vm442_vm0, %v398_v9, %v455_v61  ;;  %v1109_v14 = vmul.f32 %v2520_v19, %v2748_v25  ;;  %v1180_v26 = vmul.f32 %v2526_v24, %v2748_v25 }
  0x57   : > { %v2156_v15 = vadd.f32 %v2060_v52, %v1925_v10  ;;  %v746_v22 = vsel %vm733_vm1, %v744_v63, %v745_v1  ;;  %v975_v27 = vrot.slane %v880_v50, 2  ;;  %v1181_v31 = vmul.f32 %v2526_v24, %v2753_v44 }
  0x58   : > { %v2828_v54 = vsel %vm442_vm0, %v455_v61, %v456_v43  ;;  %v843_v32 = vadd.f32 %v746_v22, %v613_v60  ;;  %v1282_v3 = vrot.slane %v1180_v26, 1  ;;  %v1424_v13 = vmul.f32 %v2531_v28, %v2748_v25  ;;  %v246_v61 = vld [vmem:[%s2504_s27 + $0x50] sm:$0xff]  ;;  %v247_v22 = vld [vmem:[%s2504_s27 + $0x58] sm:$0xff] }
  0x59   : > { %2188 = vst [vmem:[%s2675_s9 + $0x28] sm:$0xff] %v2156_v15  ;;  %v2833_v7 = vadd.f32 %v2218_v20, %v2156_v15  ;;  %v2257_v33 = vmul.f32 %v2156_v15, %v2156_v15  ;;  %v976_v59 = vsel %vm963_vm2, %v974_v12, %v975_v27  ;;  %v1283_v36 = vrot.slane %v1181_v31, 1 }
  0x5a   : > { %v1073_v48 = vadd.f32 %v976_v59, %v843_v32  ;;  %v1425_v34 = vmul.f32 %v2531_v28, %v2753_v44  ;;  %v1526_v23 = vrot.slane %v1424_v13, 2  ;;  %v1665_v39 = vmul.f32 %v2533_v29, %v2818_v62 }
  0x5b   : > { %v2840_v38 = vadd.f32 %v2287_v42, %v2257_v33  ;;  %v1284_v41 = vsel %vm733_vm1, %v1282_v3, %v1283_v36  ;;  %v1734_v45 = vmul.f32 %v2535_v30, %v2818_v62  ;;  %v1735_v47 = vmul.f32 %v2535_v30, %v2828_v54 }
  0x5c   : > { %v1141_v49 = vadd.f32 %v1109_v14, %v1073_v48  ;;  %v1527_v0 = vrot.slane %v1425_v34, 2  ;;  %v1965_v46 = vmul.f32 %v2594_v11, %v2818_v62  ;;  %v1966_v60 = vmul.f32 %v2594_v11, %v2828_v54 }
  0x5d   : > { %v1830_v40 = vrot.slane %v1734_v45, 1  ;;  %v1831_v58 = vrot.slane %v1735_v47, 1  ;;  %v543_v52 = vrot.slane %v355_v6, 5  ;;  %v614_v21 = vmul.f32 %v2514_v16, %v2664_v37 }
  0x5e   : > { %v1385_v20 = vadd.f32 %v1284_v41, %v1141_v49  ;;  %v1528_v57 = vsel %vm963_vm2, %v1526_v23, %v1527_v0  ;;  %v2061_v35 = vrot.slane %v1965_v46, 2  ;;  %v2062_v56 = vrot.slane %v1966_v60, 2 }
  0x5f   : > { %v1832_v4 = vsel %vm733_vm1, %v1830_v40, %v1831_v58  ;;  %v2856_v55 = vsel %vm442_vm0, %v456_v43, %v543_v52  ;;  %v651_v63 = vmul.f32 %v2516_v17, %v2716_v51  ;;  %v881_v5 = vmul.f32 %v2518_v18, %v2716_v51 }
  0x60   : > { %v1629_v42 = vadd.f32 %v1528_v57, %v1385_v20  ;;  %v2063_v37 = vsel %vm963_vm2, %v2061_v35, %v2062_v56  ;;  %v1110_v6 = vmul.f32 %v2520_v19, %v2753_v44  ;;  %v1182_v9 = vmul.f32 %v2526_v24, %v2783_v53 }
  0x61   : > { %v747_v10 = vrot.slane %v651_v63, 1  ;;  %v977_v50 = vrot.slane %v881_v5, 2  ;;  %v1426_v12 = vmul.f32 %v2531_v28, %v2783_v53  ;;  %v1666_v43 = vmul.f32 %v2533_v29, %v2828_v54 }
  0x62   : > { %v1695_v14 = vadd.f32 %v1665_v39, %v1629_v42  ;;  %v1285_v51 = vrot.slane %v1182_v9, 1  ;;  %v1736_v26 = vmul.f32 %v2535_v30, %v2856_v55  ;;  %v1967_v15 = vmul.f32 %v2594_v11, %v2856_v55 }
  0x63   : > { %v748_v31 = vsel %vm733_vm1, %v745_v1, %v747_v10  ;;  %v978_v32 = vsel %vm963_vm2, %v975_v27, %v977_v50  ;;  %v1529_v3 = vrot.slane %v1426_v12, 2  ;;  %v286_v13 = vmul.f32 %v2493_v2, %v246_v61 }
  0x64   : > { %v1926_v33 = vadd.f32 %v1832_v4, %v1695_v14  ;;  %v844_v59 = vadd.f32 %v748_v31, %v614_v21  ;;  %v1286_v48 = vsel %vm733_vm1, %v1283_v36, %v1285_v51  ;;  %v1833_v34 = vrot.slane %v1736_v26, 1 }
  0x65   : > { %v1530_v23 = vsel %vm963_vm2, %v1527_v0, %v1529_v3  ;;  %v2064_v39 = vrot.slane %v1967_v15, 2  ;;  %v287_v41 = vmul.f32 %v2493_v2, %v247_v22  ;;  %v324_v45 = vadd.f32 %v2509_v8, %v286_v13 }
  0x66   : > { %v2157_v47 = vadd.f32 %v2063_v37, %v1926_v33  ;;  %v1074_v1 = vadd.f32 %v978_v32, %v844_v59  ;;  %v1834_v27 = vsel %vm733_vm1, %v1831_v58, %v1833_v34  ;;  %v615_v49 = vmul.f32 %v2514_v16, %v2748_v25 }
  0x67   : > { %v2065_v46 = vsel %vm963_vm2, %v2062_v56, %v2064_v39  ;;  %v325_v60 = vadd.f32 %v2509_v8, %v287_v41  ;;  %v356_v36 = vmax.f32 %v324_v45, 0.0  ;;  %v652_v0 = vmul.f32 %v2516_v17, %v2748_v25 }
  0x68   : > { %2189 = vst [vmem:[%s2675_s9 + $0x30] sm:$0xff] %v2157_v47  ;;  %v2220_v40 = vadd.f32 %v2833_v7, %v2157_v47  ;;  %v2258_v52 = vmul.f32 %v2157_v47, %v2157_v47  ;;  %v1142_v21 = vadd.f32 %v1110_v6, %v1074_v1  ;;  %v2895_v20 = vmul.f32 %v2516_v17, %v2753_v44 }
  0x69   : > { %v357_v58 = vmax.f32 %v325_v60, 0.0  ;;  %v399_v57 = vrot.slane %v356_v36, 1  ;;  %v458_v35 = vrot.slane %v356_v36, 7  ;;  %v749_v4 = vrot.slane %v652_v0, 1 }
  0x6a   : > { %v2289_v56 = vadd.f32 %v2840_v38, %v2258_v52  ;;  %v1386_v63 = vadd.f32 %v1286_v48, %v1142_v21  ;;  %v750_v5 = vrot.slane %v2895_v20, 1  ;;  %v882_v42 = vmul.f32 %v2518_v18, %v2748_v25 }
  0x6b   : > { %v459_v37 = vrot.slane %v357_v58, 7  ;;  %v2902_v7 = vsel %vm442_vm0, %v399_v57, %v458_v35  ;;  %v883_v6 = vmul.f32 %v2518_v18, %v2753_v44  ;;  %v1111_v9 = vmul.f32 %v2520_v19, %v2818_v62 }
  0x6c   : > { %v1630_v61 = vadd.f32 %v1530_v23, %v1386_v63  ;;  %v751_v10 = vsel %vm733_vm1, %v749_v4, %v750_v5  ;;  %v979_v38 = vrot.slane %v882_v42, 2  ;;  %v1183_v50 = vmul.f32 %v2526_v24, %v2818_v62 }
  0x6d   : > { %v2912_v12 = vsel %vm442_vm0, %v458_v35, %v459_v37  ;;  %v845_v25 = vadd.f32 %v751_v10, %v615_v49  ;;  %v980_v14 = vrot.slane %v883_v6, 2  ;;  %v1184_v51 = vmul.f32 %v2526_v24, %v2828_v54 }
  0x6e   : > { %v1696_v26 = vadd.f32 %v1666_v43, %v1630_v61  ;;  %v1287_v15 = vrot.slane %v1183_v50, 1  ;;  %v1427_v22 = vmul.f32 %v2531_v28, %v2818_v62  ;;  %v1428_v31 = vmul.f32 %v2531_v28, %v2828_v54 }
  0x6f   : > { %v981_v32 = vsel %vm963_vm2, %v979_v38, %v980_v14  ;;  %v1288_v3 = vrot.slane %v1184_v51, 1  ;;  %v1667_v13 = vmul.f32 %v2533_v29, %v2902_v7  ;;  %v1737_v33 = vmul.f32 %v2535_v30, %v2902_v7  ;;  %v249_v51 = vld [vmem:[%s2504_s27 + $0x68] sm:$0xff] }
  0x70   : > { %v1927_v59 = vadd.f32 %v1834_v27, %v1696_v26  ;;  %v1075_v48 = vadd.f32 %v981_v32, %v845_v25  ;;  %v1531_v43 = vrot.slane %v1427_v22, 2  ;;  %v1532_v34 = vrot.slane %v1428_v31, 2  ;;  %v248_v25 = vld [vmem:[%s2504_s27 + $0x60] sm:$0xff] }
  0x71   : > { %v1289_v23 = vsel %vm733_vm1, %v1287_v15, %v1288_v3  ;;  %v1738_v39 = vmul.f32 %v2535_v30, %v2912_v12  ;;  %v1835_v41 = vrot.slane %v1737_v33, 1  ;;  %v1968_v45 = vmul.f32 %v2594_v11, %v2902_v7 }
  0x72   : > { %v2158_v47 = vadd.f32 %v2065_v46, %v1927_v59  ;;  %v1143_v1 = vadd.f32 %v1111_v9, %v1075_v48  ;;  %v1533_v49 = vsel %vm963_vm2, %v1531_v43, %v1532_v34  ;;  %v1969_v27 = vmul.f32 %v2594_v11, %v2912_v12 }
  0x73   : > { %v1836_v60 = vrot.slane %v1738_v39, 1  ;;  %v2066_v36 = vrot.slane %v1968_v45, 2  ;;  %v544_v0 = vrot.slane %v357_v58, 5  ;;  %v616_v52 = vmul.f32 %v2514_v16, %v2753_v44 }
  0x74   : > { %2190 = vst [vmem:[%s2675_s9 + $0x38] sm:$0xff] %v2158_v47  ;;  %v2221_v21 = vadd.f32 %v2220_v40, %v2158_v47  ;;  %v2259_v20 = vmul.f32 %v2158_v47, %v2158_v47  ;;  %v1387_v57 = vadd.f32 %v1289_v23, %v1143_v1  ;;  %v2067_v35 = vrot.slane %v1969_v27, 2 }
  0x75   : > { %v1837_v4 = vsel %vm733_vm1, %v1835_v41, %v1836_v60  ;;  %v2938_v46 = vsel %vm442_vm0, %v459_v37, %v544_v0  ;;  %v654_v63 = vmul.f32 %v2516_v17, %v2783_v53  ;;  %v884_v58 = vmul.f32 %v2518_v18, %v2783_v53 }
  0x76   : > { %v2290_v42 = vadd.f32 %v2289_v56, %v2259_v20  ;;  %v1631_v44 = vadd.f32 %v1533_v49, %v1387_v57  ;;  %v2068_v40 = vsel %vm963_vm2, %v2066_v36, %v2067_v35  ;;  %v1112_v6 = vmul.f32 %v2520_v19, %v2828_v54 }
  0x77   : > { %v752_v9 = vrot.slane %v654_v63, 1  ;;  %v982_v61 = vrot.slane %v884_v58, 2  ;;  %v1185_v37 = vmul.f32 %v2526_v24, %v2856_v55  ;;  %v1429_v10 = vmul.f32 %v2531_v28, %v2856_v55 }
  0x78   : > { %v1697_v38 = vadd.f32 %v1667_v13, %v1631_v44  ;;  %v1668_v50 = vmul.f32 %v2533_v29, %v2912_v12  ;;  %v1739_v53 = vmul.f32 %v2535_v30, %v2938_v46  ;;  %v1970_v56 = vmul.f32 %v2594_v11, %v2938_v46 }
  0x79   : > { %v753_v26 = vsel %vm733_vm1, %v750_v5, %v752_v9  ;;  %v983_v15 = vsel %vm963_vm2, %v980_v14, %v982_v61  ;;  %v1290_v22 = vrot.slane %v1185_v37, 1  ;;  %v1534_v31 = vrot.slane %v1429_v10, 2 }
  0x7a   : > { %v1928_v32 = vadd.f32 %v1837_v4, %v1697_v38  ;;  %v846_v13 = vadd.f32 %v753_v26, %v616_v52  ;;  %v1838_v33 = vrot.slane %v1739_v53, 1  ;;  %v2069_v59 = vrot.slane %v1970_v56, 2 }
  0x7b   : > { %v1291_v48 = vsel %vm733_vm1, %v1288_v3, %v1290_v22  ;;  %v1535_v43 = vsel %vm963_vm2, %v1532_v34, %v1534_v31  ;;  %v288_v23 = vmul.f32 %v2493_v2, %v248_v25  ;;  %v289_v39 = vmul.f32 %v2493_v2, %v249_v51 }
  0x7c   : > { %v2159_v41 = vadd.f32 %v2068_v40, %v1928_v32  ;;  %v1076_v45 = vadd.f32 %v983_v15, %v846_v13  ;;  %v1839_v5 = vsel %vm733_vm1, %v1836_v60, %v1838_v33  ;;  %v2070_v14 = vsel %vm963_vm2, %v2067_v35, %v2069_v59 }
  0x7d   : > { %v326_v47 = vadd.f32 %v2509_v8, %v288_v23  ;;  %v327_v1 = vadd.f32 %v2509_v8, %v289_v39  ;;  %v617_v49 = vmul.f32 %v2514_v16, %v2818_v62  ;;  %v655_v3 = vmul.f32 %v2516_v17, %v2818_v62 }
  0x7e   : > { %2191 = vst [vmem:[%s2675_s9 + $0x40] sm:$0xff] %v2159_v41  ;;  %v2222_v34 = vadd.f32 %v2221_v21, %v2159_v41  ;;  %v2260_v27 = vmul.f32 %v2159_v41, %v2159_v41  ;;  %v1144_v2 = vadd.f32 %v1112_v6, %v1076_v45  ;;  %v2976_v36 = vmul.f32 %v2516_v17, %v2828_v54 }
  0x7f   : > { %v358_v60 = vmax.f32 %v326_v47, 0.0  ;;  %v359_v0 = vmax.f32 %v327_v1, 0.0  ;;  %v754_v52 = vrot.slane %v655_v3, 1  ;;  %v885_v8 = vmul.f32 %v2518_v18, %v2818_v62 }
  0x80   : > { %v2291_v20 = vadd.f32 %v2290_v42, %v2260_v27  ;;  %v1388_v57 = vadd.f32 %v1291_v48, %v1144_v2  ;;  %v755_v35 = vrot.slane %v2976_v36, 1  ;;  %v2983_v4 = vmul.f32 %v2518_v18, %v2828_v54 }
  0x81   : > { %v400_v21 = vrot.slane %v358_v60, 1  ;;  %v461_v63 = vrot.slane %v358_v60, 7  ;;  %v462_v58 = vrot.slane %v359_v0, 7  ;;  %v984_v44 = vrot.slane %v885_v8, 2 }
  0x82   : > { %v1632_v40 = vadd.f32 %v1535_v43, %v1388_v57  ;;  %v756_v6 = vsel %vm733_vm1, %v754_v52, %v755_v35  ;;  %v985_v9 = vrot.slane %v2983_v4, 2  ;;  %v1113_v62 = vmul.f32 %v2520_v19, %v2902_v7 }
  0x83   : > { %v2990_v42 = vsel %vm442_vm0, %v461_v63, %v462_v58  ;;  %v2993_v61 = vsel %vm442_vm0, %v400_v21, %v461_v63  ;;  %v847_v37 = vadd.f32 %v756_v6, %v617_v49  ;;  %v1186_v10 = vmul.f32 %v2526_v24, %v2902_v7 }
  0x84   : > { %v1698_v38 = vadd.f32 %v1668_v50, %v1632_v40  ;;  %v986_v53 = vsel %vm963_vm2, %v984_v44, %v985_v9  ;;  %v1187_v56 = vmul.f32 %v2526_v24, %v2912_v12  ;;  %v1430_v25 = vmul.f32 %v2531_v28, %v2902_v7 }
  0x85   : > { %v1077_v51 = vadd.f32 %v986_v53, %v847_v37  ;;  %v1292_v26 = vrot.slane %v1186_v10, 1  ;;  %v1431_v15 = vmul.f32 %v2531_v28, %v2912_v12  ;;  %v1669_v22 = vmul.f32 %v2533_v29, %v2993_v61  ;;  %v251_v53 = vld [vmem:[%s2504_s27 + $0x78] sm:$0xff] }
  0x86   : > { %v1929_v31 = vadd.f32 %v1839_v5, %v1698_v38  ;;  %v1293_v32 = vrot.slane %v1187_v56, 1  ;;  %v1536_v50 = vrot.slane %v1430_v25, 2  ;;  %v1740_v13 = vmul.f32 %v2535_v30, %v2993_v61 }
  0x87   : > { %v1145_v33 = vadd.f32 %v1113_v62, %v1077_v51  ;;  %v1537_v59 = vrot.slane %v1431_v15, 2  ;;  %v1741_v48 = vmul.f32 %v2535_v30, %v2990_v42  ;;  %v1971_v43 = vmul.f32 %v2594_v11, %v2993_v61  ;;  %v250_v62 = vld [vmem:[%s2504_s27 + $0x70] sm:$0xff] }
  0x88   : > { %v2160_v23 = vadd.f32 %v2070_v14, %v1929_v31  ;;  %v1294_v39 = vsel %vm733_vm1, %v1292_v26, %v1293_v32  ;;  %v1840_v41 = vrot.slane %v1740_v13, 1  ;;  %v1972_v45 = vmul.f32 %v2594_v11, %v2990_v42 }
  0x89   : > { %v1389_v5 = vadd.f32 %v1294_v39, %v1145_v33  ;;  %v1538_v47 = vsel %vm963_vm2, %v1536_v50, %v1537_v59  ;;  %v1841_v1 = vrot.slane %v1741_v48, 1  ;;  %v2071_v49 = vrot.slane %v1971_v43, 2  ;;  %v3048_v50 = vld [vmem:[%s3937_s1] ss:$0 sm:$0xff] }
  0x8a   : > { %2192 = vst [vmem:[%s2675_s9 + $0x48] sm:$0xff] %v2160_v23  ;;  %v2223_v3 = vadd.f32 %v2222_v34, %v2160_v23  ;;  %v2261_v27 = vmul.f32 %v2160_v23, %v2160_v23  ;;  %v2072_v2 = vrot.slane %v1972_v45, 2  ;;  %v545_v36 = vrot.slane %v359_v0, 5  ;;  %v3059_v23 = vld [vmem:[%s3938_s2] ss:$0 sm:$0xff] }
  0x8b   : > { %v1633_v60 = vadd.f32 %v1538_v47, %v1389_v5  ;;  %v1842_v14 = vsel %vm733_vm1, %v1840_v41, %v1841_v1  ;;  %v618_v52 = vmul.f32 %v2514_v16, %v2828_v54  ;;  %v657_v8 = vmul.f32 %v2516_v17, %v2856_v55 }
  0x8c   : > { %v2292_v57 = vadd.f32 %v2291_v20, %v2261_v27  ;;  %v2073_v4 = vsel %vm963_vm2, %v2071_v49, %v2072_v2  ;;  %v3024_v21 = vsel %vm442_vm0, %v462_v58, %v545_v36  ;;  %v887_v34 = vmul.f32 %v2518_v18, %v2856_v55 }
  0x8d   : > { %v1699_v0 = vadd.f32 %v1669_v22, %v1633_v60  ;;  %v757_v63 = vrot.slane %v657_v8, 1  ;;  %v1114_v44 = vmul.f32 %v2520_v19, %v2912_v12  ;;  %v1188_v54 = vmul.f32 %v2526_v24, %v2938_v46 }
  0x8e   : > { %v987_v40 = vrot.slane %v887_v34, 2  ;;  %v1432_v20 = vmul.f32 %v2531_v28, %v2938_v46  ;;  %v1670_v6 = vmul.f32 %v2533_v29, %v2990_v42  ;;  %v1742_v58 = vmul.f32 %v2535_v30, %v3024_v21 }
  0x8f   : > { %v1930_v55 = vadd.f32 %v1842_v14, %v1699_v0  ;;  %v758_v37 = vsel %vm733_vm1, %v755_v35, %v757_v63  ;;  %v1295_v10 = vrot.slane %v1188_v54, 1  ;;  %v1973_v38 = vmul.f32 %v2594_v11, %v3024_v21 }
  0x90   : > { %v848_v56 = vadd.f32 %v758_v37, %v618_v52  ;;  %v988_v25 = vsel %vm963_vm2, %v985_v9, %v987_v40  ;;  %v1539_v51 = vrot.slane %v1432_v20, 2  ;;  %v1843_v26 = vrot.slane %v1742_v58, 1 }
  0x91   : > { %v2161_v15 = vadd.f32 %v2073_v4, %v1930_v55  ;;  %v1296_v22 = vsel %vm733_vm1, %v1293_v32, %v1295_v10  ;;  %v2074_v31 = vrot.slane %v1973_v38, 2  ;;  %v290_v35 = vmul.f32 %v3048_v50, %v250_v62 }
  0x92   : > { %v1078_v13 = vadd.f32 %v988_v25, %v848_v56  ;;  %v1540_v11 = vsel %vm963_vm2, %v1537_v59, %v1539_v51  ;;  %v1844_v33 = vsel %vm733_vm1, %v1841_v1, %v1843_v26  ;;  %v291_v9 = vmul.f32 %v3048_v50, %v251_v53 }
  0x93   : > { %2193 = vst [vmem:[%s2675_s9 + $0x50] sm:$0xff] %v2161_v15  ;;  %v2224_v48 = vadd.f32 %v2223_v3, %v2161_v15  ;;  %v2262_v43 = vmul.f32 %v2161_v15, %v2161_v15  ;;  %v2075_v32 = vsel %vm963_vm2, %v2072_v2, %v2074_v31  ;;  %v328_v39 = vadd.f32 %v3059_v23, %v290_v35 }
  0x94   : > { %v1146_v41 = vadd.f32 %v1114_v44, %v1078_v13  ;;  %v329_v45 = vadd.f32 %v3059_v23, %v291_v9  ;;  %v619_v59 = vmul.f32 %v2514_v16, %v2902_v7  ;;  %v658_v5 = vmul.f32 %v2516_v17, %v2902_v7 }
  0x95   : > { %v2293_v47 = vadd.f32 %v2292_v57, %v2262_v43  ;;  %v360_v1 = vmax.f32 %v328_v39, 0.0  ;;  %v3069_v49 = vmul.f32 %v2516_v17, %v2912_v12  ;;  %v888_v3 = vmul.f32 %v2518_v18, %v2902_v7 }
  0x96   : > { %v1390_v27 = vadd.f32 %v1296_v22, %v1146_v41  ;;  %v361_v2 = vmax.f32 %v329_v45, 0.0  ;;  %v759_v36 = vrot.slane %v658_v5, 1  ;;  %v3075_v60 = vmul.f32 %v2518_v18, %v2912_v12 }
  0x97   : > { %v401_v14 = vrot.slane %v360_v1, 1  ;;  %v464_v52 = vrot.slane %v360_v1, 7  ;;  %v760_v8 = vrot.slane %v3069_v49, 1  ;;  %v989_v57 = vrot.slane %v888_v3, 2 }
  0x98   : > { %v1634_v4 = vadd.f32 %v1540_v11, %v1390_v27  ;;  %v465_v34 = vrot.slane %v361_v2, 7  ;;  %v990_v0 = vrot.slane %v3075_v60, 2  ;;  %v1115_v63 = vmul.f32 %v2520_v19, %v2993_v61 }
  0x99   : > { %v3082_v7 = vsel %vm442_vm0, %v401_v14, %v464_v52  ;;  %v761_v44 = vsel %vm733_vm1, %v759_v36, %v760_v8  ;;  %v1189_v54 = vmul.f32 %v2526_v24, %v2993_v61  ;;  %v1190_v40 = vmul.f32 %v2526_v24, %v2990_v42 }
  0x9a   : > { %v1700_v20 = vadd.f32 %v1670_v6, %v1634_v4  ;;  %v3092_v58 = vsel %vm442_vm0, %v464_v52, %v465_v34  ;;  %v849_v62 = vadd.f32 %v761_v44, %v619_v59  ;;  %v991_v55 = vsel %vm963_vm2, %v989_v57, %v990_v0 }
  0x9b   : > { %v1297_v37 = vrot.slane %v1189_v54, 1  ;;  %v1298_v10 = vrot.slane %v1190_v40, 1  ;;  %v1433_v38 = vmul.f32 %v2531_v28, %v2993_v61  ;;  %v1434_v53 = vmul.f32 %v2531_v28, %v2990_v42 }
  0x9c   : > { %v1931_v56 = vadd.f32 %v1844_v33, %v1700_v20  ;;  %v1079_v25 = vadd.f32 %v991_v55, %v849_v62  ;;  %v1671_v6 = vmul.f32 %v2533_v29, %v3082_v7  ;;  %v1743_v51 = vmul.f32 %v2535_v30, %v3082_v7  ;;  %v3109_v33 = vld [vmem:[%s3939_s3 + $0x8] ss:$0 sm:$0xff] }
  0x9d   : > { %v1299_v26 = vsel %vm733_vm1, %v1297_v37, %v1298_v10  ;;  %v1541_v15 = vrot.slane %v1433_v38, 2  ;;  %v1542_v22 = vrot.slane %v1434_v53, 2  ;;  %v1744_v31 = vmul.f32 %v2535_v30, %v3092_v58  ;;  %v253_v37 = vld [vmem:[%s2504_s27 + $0x88] sm:$0xff] }
  0x9e   : > { %v2162_v35 = vadd.f32 %v2075_v32, %v1931_v56  ;;  %v1147_v13 = vadd.f32 %v1115_v63, %v1079_v25  ;;  %v1845_v11 = vrot.slane %v1743_v51, 1  ;;  %v1974_v9 = vmul.f32 %v3109_v33, %v3082_v7 }
  0x9f   : > { %v1543_v43 = vsel %vm963_vm2, %v1541_v15, %v1542_v22  ;;  %v1846_v39 = vrot.slane %v1744_v31, 1  ;;  %v1975_v41 = vmul.f32 %v3109_v33, %v3092_v58  ;;  %v546_v45 = vrot.slane %v361_v2, 5 }
  0xa0   : > { %2194 = vst [vmem:[%s2675_s9 + $0x58] sm:$0xff] %v2162_v35  ;;  %v2225_v59 = vadd.f32 %v2224_v48, %v2162_v35  ;;  %v2263_v32 = vmul.f32 %v2162_v35, %v2162_v35  ;;  %v1391_v5 = vadd.f32 %v1299_v26, %v1147_v13  ;;  %v2076_v1 = vrot.slane %v1974_v9, 2 }
  0xa1   : > { %v1847_v3 = vsel %vm733_vm1, %v1845_v11, %v1846_v39  ;;  %v2077_v27 = vrot.slane %v1975_v41, 2  ;;  %v3119_v36 = vsel %vm442_vm0, %v465_v34, %v546_v45  ;;  %v620_v60 = vmul.f32 %v2514_v16, %v2912_v12 }
  0xa2   : > { %v2294_v14 = vadd.f32 %v2293_v47, %v2263_v32  ;;  %v1635_v52 = vadd.f32 %v1543_v43, %v1391_v5  ;;  %v660_v2 = vmul.f32 %v2516_v17, %v2938_v46  ;;  %v890_v48 = vmul.f32 %v2518_v18, %v2938_v46  ;;  %v252_v47 = vld [vmem:[%s2504_s27 + $0x80] sm:$0xff] }
  0xa3   : > { %v2078_v57 = vsel %vm963_vm2, %v2076_v1, %v2077_v27  ;;  %v1116_v4 = vmul.f32 %v2520_v19, %v2990_v42  ;;  %v1191_v34 = vmul.f32 %v2526_v24, %v3024_v21  ;;  %v1435_v12 = vmul.f32 %v2531_v28, %v3024_v21 }
  0xa4   : > { %v1701_v63 = vadd.f32 %v1671_v6, %v1635_v52  ;;  %v762_v44 = vrot.slane %v660_v2, 1  ;;  %v992_v54 = vrot.slane %v890_v48, 2  ;;  %v1672_v40 = vmul.f32 %v2533_v29, %v3092_v58 }
  0xa5   : > { %v1300_v20 = vrot.slane %v1191_v34, 1  ;;  %v1544_v46 = vrot.slane %v1435_v12, 2  ;;  %v1745_v62 = vmul.f32 %v2535_v30, %v3119_v36  ;;  %v1976_v55 = vmul.f32 %v3109_v33, %v3119_v36 }
  0xa6   : > { %v1932_v38 = vadd.f32 %v1847_v3, %v1701_v63  ;;  %v763_v53 = vsel %vm733_vm1, %v760_v8, %v762_v44  ;;  %v993_v56 = vsel %vm963_vm2, %v990_v0, %v992_v54  ;;  %v292_v25 = vmul.f32 %v3048_v50, %v252_v47 }
  0xa7   : > { %v850_v6 = vadd.f32 %v763_v53, %v620_v60  ;;  %v1301_v51 = vsel %vm733_vm1, %v1298_v10, %v1300_v20  ;;  %v1545_v26 = vsel %vm963_vm2, %v1542_v22, %v1544_v46  ;;  %v1848_v15 = vrot.slane %v1745_v62, 1 }
  0xa8   : > { %v2163_v31 = vadd.f32 %v2078_v57, %v1932_v38  ;;  %v2079_v35 = vrot.slane %v1976_v55, 2  ;;  %v293_v13 = vmul.f32 %v3048_v50, %v253_v37  ;;  %v330_v11 = vadd.f32 %v3059_v23, %v292_v25 }
  0xa9   : > { %v1080_v49 = vadd.f32 %v993_v56, %v850_v6  ;;  %v1849_v9 = vsel %vm733_vm1, %v1846_v39, %v1848_v15  ;;  %v621_v8 = vmul.f32 %v2514_v16, %v2993_v61  ;;  %v661_v0 = vmul.f32 %v2516_v17, %v2993_v61 }
  0xaa   : > { %2195 = vst [vmem:[%s2675_s9 + $0x60] sm:$0xff] %v2163_v31  ;;  %v2226_v10 = vadd.f32 %v2225_v59, %v2163_v31  ;;  %v2264_v43 = vmul.f32 %v2163_v31, %v2163_v31  ;;  %v2080_v22 = vsel %vm963_vm2, %v2077_v27, %v2079_v35  ;;  %v331_v41 = vadd.f32 %v3059_v23, %v293_v13 }
  0xab   : > { %v1148_v45 = vadd.f32 %v1116_v4, %v1080_v49  ;;  %v362_v32 = vmax.f32 %v330_v11, 0.0  ;;  %v3161_v5 = vmul.f32 %v2516_v17, %v2990_v42  ;;  %v764_v39 = vrot.slane %v661_v0, 1 }
  0xac   : > { %v2295_v1 = vadd.f32 %v2294_v14, %v2264_v43  ;;  %v363_v3 = vmax.f32 %v331_v41, 0.0  ;;  %v891_v60 = vmul.f32 %v2518_v18, %v2993_v61  ;;  %v3167_v59 = vmul.f32 %v2518_v18, %v2990_v42 }
  0xad   : > { %v1392_v52 = vadd.f32 %v1301_v51, %v1148_v45  ;;  %v402_v27 = vrot.slane %v362_v32, 1  ;;  %v467_v2 = vrot.slane %v362_v32, 7  ;;  %v765_v48 = vrot.slane %v3161_v5, 1 }
  0xae   : > { %v468_v57 = vrot.slane %v363_v3, 7  ;;  %v994_v4 = vrot.slane %v891_v60, 2  ;;  %v995_v34 = vrot.slane %v3167_v59, 2  ;;  %v1117_v14 = vmul.f32 %v2520_v19, %v3082_v7 }
  0xaf   : > { %v1636_v12 = vadd.f32 %v1545_v26, %v1392_v52  ;;  %v3174_v47 = vsel %vm442_vm0, %v402_v27, %v467_v2  ;;  %v766_v61 = vsel %vm733_vm1, %v764_v39, %v765_v48  ;;  %v1192_v63 = vmul.f32 %v2526_v24, %v3082_v7 }
  0xb0   : > { %v3180_v44 = vsel %vm442_vm0, %v467_v2, %v468_v57  ;;  %v851_v54 = vadd.f32 %v766_v61, %v621_v8  ;;  %v996_v20 = vsel %vm963_vm2, %v994_v4, %v995_v34  ;;  %v1193_v46 = vmul.f32 %v2526_v24, %v3092_v58 }
  0xb1   : > { %v1702_v62 = vadd.f32 %v1672_v40, %v1636_v12  ;;  %v1302_v55 = vrot.slane %v1192_v63, 1  ;;  %v1436_v37 = vmul.f32 %v2531_v28, %v3082_v7  ;;  %v1437_v38 = vmul.f32 %v2531_v28, %v3092_v58 }
  0xb2   : > { %v1081_v53 = vadd.f32 %v996_v20, %v851_v54  ;;  %v1303_v56 = vrot.slane %v1193_v46, 1  ;;  %v1673_v25 = vmul.f32 %v2533_v29, %v3174_v47  ;;  %v1746_v6 = vmul.f32 %v2535_v30, %v3174_v47  ;;  %v254_v20 = vld [vmem:[%s2504_s27 + $0x90] sm:$0xff]  ;;  %v255_v46 = vld [vmem:[%s2504_s27 + $0x98] sm:$0xff] }
  0xb3   : > { %v1933_v51 = vadd.f32 %v1849_v9, %v1702_v62  ;;  %v1546_v26 = vrot.slane %v1436_v37, 2  ;;  %v1547_v15 = vrot.slane %v1437_v38, 2  ;;  %v1747_v40 = vmul.f32 %v2535_v30, %v3180_v44 }
  0xb4   : > { %v1149_v31 = vadd.f32 %v1117_v14, %v1081_v53  ;;  %v1304_v35 = vsel %vm733_vm1, %v1302_v55, %v1303_v56  ;;  %v1850_v13 = vrot.slane %v1746_v6, 1  ;;  %v1977_v11 = vmul.f32 %v3109_v33, %v3174_v47 }
  0xb5   : > { %v2164_v49 = vadd.f32 %v2080_v22, %v1933_v51  ;;  %v1548_v8 = vsel %vm963_vm2, %v1546_v26, %v1547_v15  ;;  %v1851_v0 = vrot.slane %v1747_v40, 1  ;;  %v1978_v9 = vmul.f32 %v3109_v33, %v3180_v44 }
  0xb6   : > { %v1393_v43 = vadd.f32 %v1304_v35, %v1149_v31  ;;  %v2081_v41 = vrot.slane %v1977_v11, 2  ;;  %v547_v45 = vrot.slane %v363_v3, 5  ;;  %v622_v32 = vmul.f32 %v2514_v16, %v2990_v42 }
  0xb7   : > { %2196 = vst [vmem:[%s2675_s9 + $0x68] sm:$0xff] %v2164_v49  ;;  %v2227_v5 = vadd.f32 %v2226_v10, %v2164_v49  ;;  %v2265_v39 = vmul.f32 %v2164_v49, %v2164_v49  ;;  %v1852_v60 = vsel %vm733_vm1, %v1850_v13, %v1851_v0  ;;  %v2082_v59 = vrot.slane %v1978_v9, 2 }
  0xb8   : > { %v1637_v52 = vadd.f32 %v1548_v8, %v1393_v43  ;;  %v3206_v22 = vsel %vm442_vm0, %v468_v57, %v547_v45  ;;  %v663_v27 = vmul.f32 %v2516_v17, %v3024_v21  ;;  %v893_v3 = vmul.f32 %v2518_v18, %v3024_v21 }
  0xb9   : > { %v2296_v2 = vadd.f32 %v2295_v1, %v2265_v39  ;;  %v2083_v42 = vsel %vm963_vm2, %v2081_v41, %v2082_v59  ;;  %v1118_v10 = vmul.f32 %v2520_v19, %v3092_v58  ;;  %v1194_v4 = vmul.f32 %v2526_v24, %v3119_v36 }
  0xba   : > { %v1703_v14 = vadd.f32 %v1673_v25, %v1637_v52  ;;  %v767_v12 = vrot.slane %v663_v27, 1  ;;  %v997_v57 = vrot.slane %v893_v3, 2  ;;  %v1438_v61 = vmul.f32 %v2531_v28, %v3119_v36 }
  0xbb   : > { %v1305_v63 = vrot.slane %v1194_v4, 1  ;;  %v1674_v54 = vmul.f32 %v2533_v29, %v3180_v44  ;;  %v1748_v21 = vmul.f32 %v2535_v30, %v3206_v22  ;;  %v1979_v1 = vmul.f32 %v3109_v33, %v3206_v22 }
  0xbc   : > { %v1934_v62 = vadd.f32 %v1852_v60, %v1703_v14  ;;  %v768_v55 = vsel %vm733_vm1, %v765_v48, %v767_v12  ;;  %v998_v37 = vsel %vm963_vm2, %v995_v34, %v997_v57  ;;  %v1549_v38 = vrot.slane %v1438_v61, 2 }
  0xbd   : > { %v852_v53 = vadd.f32 %v768_v55, %v622_v32  ;;  %v1306_v25 = vsel %vm733_vm1, %v1303_v56, %v1305_v63  ;;  %v1853_v6 = vrot.slane %v1748_v21, 1  ;;  %v2084_v51 = vrot.slane %v1979_v1, 2 }
  0xbe   : > { %v2165_v26 = vadd.f32 %v2083_v42, %v1934_v62  ;;  %v1550_v40 = vsel %vm963_vm2, %v1547_v15, %v1549_v38  ;;  %v294_v31 = vmul.f32 %v3048_v50, %v254_v20  ;;  %v295_v35 = vmul.f32 %v3048_v50, %v255_v46 }
  0xbf   : > { %v1082_v13 = vadd.f32 %v998_v37, %v852_v53  ;;  %v1854_v11 = vsel %vm733_vm1, %v1851_v0, %v1853_v6  ;;  %v2085_v48 = vsel %vm963_vm2, %v2082_v59, %v2084_v51  ;;  %v623_v34 = vmul.f32 %v2514_v16, %v3082_v7 }
  0xc0   : > { %2197 = vst [vmem:[%s2675_s9 + $0x70] sm:$0xff] %v2165_v26  ;;  %v2228_v49 = vadd.f32 %v2227_v5, %v2165_v26  ;;  %v2266_v56 = vmul.f32 %v2165_v26, %v2165_v26  ;;  %v332_v8 = vadd.f32 %v3059_v23, %v294_v31  ;;  %v333_v9 = vadd.f32 %v3059_v23, %v295_v35 }
  0xc1   : > { %v1150_v15 = vadd.f32 %v1118_v10, %v1082_v13  ;;  %v664_v43 = vmul.f32 %v2516_v17, %v3082_v7  ;;  %v3244_v41 = vmul.f32 %v2516_v17, %v3092_v58  ;;  %v894_v0 = vmul.f32 %v2518_v18, %v3082_v7 }
  0xc2   : > { %v2297_v45 = vadd.f32 %v2296_v2, %v2266_v56  ;;  %v364_v32 = vmax.f32 %v332_v8, 0.0  ;;  %v365_v39 = vmax.f32 %v333_v9, 0.0  ;;  %v3250_v5 = vmul.f32 %v2518_v18, %v3092_v58 }
  0xc3   : > { %v1394_v60 = vadd.f32 %v1306_v25, %v1150_v15  ;;  %v769_v59 = vrot.slane %v664_v43, 1  ;;  %v770_v52 = vrot.slane %v3244_v41, 1  ;;  %v999_v27 = vrot.slane %v894_v0, 2 }
  0xc4   : > { %v403_v3 = vrot.slane %v364_v32, 1  ;;  %v470_v42 = vrot.slane %v364_v32, 7  ;;  %v471_v10 = vrot.slane %v365_v39, 7  ;;  %v1000_v4 = vrot.slane %v3250_v5, 2 }
  0xc5   : > { %v1638_v14 = vadd.f32 %v1550_v40, %v1394_v60  ;;  %v771_v7 = vsel %vm733_vm1, %v769_v59, %v770_v52  ;;  %v1119_v2 = vmul.f32 %v2520_v19, %v3174_v47  ;;  %v1195_v12 = vmul.f32 %v2526_v24, %v3174_v47 }
  0xc6   : > { %v3260_v57 = vsel %vm442_vm0, %v470_v42, %v471_v10  ;;  %v3263_v61 = vsel %vm442_vm0, %v403_v3, %v470_v42  ;;  %v853_v63 = vadd.f32 %v771_v7, %v623_v34  ;;  %v1001_v21 = vsel %vm963_vm2, %v999_v27, %v1000_v4 }
  0xc7   : > { %v1704_v1 = vadd.f32 %v1674_v54, %v1638_v14  ;;  %v1196_v20 = vmul.f32 %v2526_v24, %v3180_v44  ;;  %v1307_v46 = vrot.slane %v1195_v12, 1  ;;  %v1439_v62 = vmul.f32 %v2531_v28, %v3174_v47 }
  0xc8   : > { %v1083_v55 = vadd.f32 %v1001_v21, %v853_v63  ;;  %v1440_v37 = vmul.f32 %v2531_v28, %v3180_v44  ;;  %v1675_v38 = vmul.f32 %v2533_v29, %v3263_v61  ;;  %v1749_v53 = vmul.f32 %v2535_v30, %v3263_v61  ;;  %v256_v63 = vld [vmem:[%s2504_s27 + $0xa0] sm:$0xff] }
  0xc9   : > { %v1935_v25 = vadd.f32 %v1854_v11, %v1704_v1  ;;  %v1308_v54 = vrot.slane %v1196_v20, 1  ;;  %v1551_v6 = vrot.slane %v1439_v62, 2  ;;  %v1750_v51 = vmul.f32 %v2535_v30, %v3260_v57  ;;  %v257_v62 = vld [vmem:[%s2504_s27 + $0xa8] sm:$0xff] }
  0xca   : > { %v1151_v26 = vadd.f32 %v1119_v2, %v1083_v55  ;;  %v1552_v40 = vrot.slane %v1440_v37, 2  ;;  %v1855_v31 = vrot.slane %v1749_v53, 1  ;;  %v1980_v35 = vmul.f32 %v3109_v33, %v3263_v61 }
  0xcb   : > { %v2166_v13 = vadd.f32 %v2085_v48, %v1935_v25  ;;  %v1309_v34 = vsel %vm733_vm1, %v1307_v46, %v1308_v54  ;;  %v1856_v56 = vrot.slane %v1750_v51, 1  ;;  %v1981_v8 = vmul.f32 %v3109_v33, %v3260_v57 }
  0xcc   : > { %v1395_v11 = vadd.f32 %v1309_v34, %v1151_v26  ;;  %v1553_v9 = vsel %vm963_vm2, %v1551_v6, %v1552_v40  ;;  %v2086_v15 = vrot.slane %v1980_v35, 2  ;;  %v548_v43 = vrot.slane %v365_v39, 5 }
  0xcd   : > { %2198 = vst [vmem:[%s2675_s9 + $0x78] sm:$0xff] %v2166_v13  ;;  %v2229_v41 = vadd.f32 %v2228_v49, %v2166_v13  ;;  %v2267_v0 = vmul.f32 %v2166_v13, %v2166_v13  ;;  %v1857_v32 = vsel %vm733_vm1, %v1855_v31, %v1856_v56  ;;  %v2087_v5 = vrot.slane %v1981_v8, 2 }
  0xce   : > { %v1639_v60 = vadd.f32 %v1553_v9, %v1395_v11  ;;  %v3287_v48 = vsel %vm442_vm0, %v471_v10, %v548_v43  ;;  %v624_v59 = vmul.f32 %v2514_v16, %v3092_v58  ;;  %v666_v27 = vmul.f32 %v2516_v17, %v3119_v36 }
  0xcf   : > { %v2298_v3 = vadd.f32 %v2297_v45, %v2267_v0  ;;  %v2088_v39 = vsel %vm963_vm2, %v2086_v15, %v2087_v5  ;;  %v896_v49 = vmul.f32 %v2518_v18, %v3119_v36  ;;  %v1120_v42 = vmul.f32 %v2520_v19, %v3180_v44 }
  0xd0   : > { %v1705_v14 = vadd.f32 %v1675_v38, %v1639_v60  ;;  %v772_v7 = vrot.slane %v666_v27, 1  ;;  %v1197_v10 = vmul.f32 %v2526_v24, %v3206_v22  ;;  %v1441_v58 = vmul.f32 %v2531_v28, %v3206_v22 }
  0xd1   : > { %v1002_v2 = vrot.slane %v896_v49, 2  ;;  %v1676_v45 = vmul.f32 %v2533_v29, %v3260_v57  ;;  %v1751_v12 = vmul.f32 %v2535_v30, %v3287_v48  ;;  %v1982_v36 = vmul.f32 %v3109_v33, %v3287_v48 }
  0xd2   : > { %v1936_v21 = vadd.f32 %v1857_v32, %v1705_v14  ;;  %v773_v1 = vsel %vm733_vm1, %v770_v52, %v772_v7  ;;  %v1310_v20 = vrot.slane %v1197_v10, 1  ;;  %v1554_v46 = vrot.slane %v1441_v58, 2 }
  0xd3   : > { %v854_v55 = vadd.f32 %v773_v1, %v624_v59  ;;  %v1003_v37 = vsel %vm963_vm2, %v1000_v4, %v1002_v2  ;;  %v1858_v38 = vrot.slane %v1751_v12, 1  ;;  %v2089_v53 = vrot.slane %v1982_v36, 2 }
  0xd4   : > { %v2167_v25 = vadd.f32 %v2088_v39, %v1936_v21  ;;  %v1311_v6 = vsel %vm733_vm1, %v1308_v54, %v1310_v20  ;;  %v1555_v51 = vsel %vm963_vm2, %v1552_v40, %v1554_v46  ;;  %v296_v26 = vmul.f32 %v3048_v50, %v256_v63 }
  0xd5   : > { %v1084_v31 = vadd.f32 %v1003_v37, %v854_v55  ;;  %v1859_v35 = vsel %vm733_vm1, %v1856_v56, %v1858_v38  ;;  %v2090_v52 = vsel %vm963_vm2, %v2087_v5, %v2089_v53  ;;  %v297_v13 = vmul.f32 %v3048_v50, %v257_v62 }
  0xd6   : > { %2199 = vst [vmem:[%s2675_s9 + $0x80] sm:$0xff] %v2167_v25  ;;  %v2230_v34 = vadd.f32 %v2229_v41, %v2167_v25  ;;  %v2268_v8 = vmul.f32 %v2167_v25, %v2167_v25  ;;  %v334_v4 = vadd.f32 %v3059_v23, %v296_v26  ;;  %v625_v11 = vmul.f32 %v2514_v16, %v3174_v47 }
  0xd7   : > { %v1152_v54 = vadd.f32 %v1120_v42, %v1084_v31  ;;  %v335_v40 = vadd.f32 %v3059_v23, %v297_v13  ;;  %v667_v9 = vmul.f32 %v2516_v17, %v3174_v47  ;;  %v3327_v56 = vmul.f32 %v2516_v17, %v3180_v44 }
  0xd8   : > { %v2299_v15 = vadd.f32 %v2298_v3, %v2268_v8  ;;  %v366_v43 = vmax.f32 %v334_v4, 0.0  ;;  %v897_v41 = vmul.f32 %v2518_v18, %v3174_v47  ;;  %v3333_v0 = vmul.f32 %v2518_v18, %v3180_v44 }
  0xd9   : > { %v1396_v32 = vadd.f32 %v1311_v6, %v1152_v54  ;;  %v367_v5 = vmax.f32 %v335_v40, 0.0  ;;  %v774_v60 = vrot.slane %v667_v9, 1  ;;  %v775_v59 = vrot.slane %v3327_v56, 1 }
  0xda   : > { %v404_v27 = vrot.slane %v366_v43, 1  ;;  %v473_v39 = vrot.slane %v366_v43, 7  ;;  %v1004_v49 = vrot.slane %v897_v41, 2  ;;  %v1005_v42 = vrot.slane %v3333_v0, 2 }
  0xdb   : > { %v1640_v14 = vadd.f32 %v1555_v51, %v1396_v32  ;;  %v474_v3 = vrot.slane %v367_v5, 7  ;;  %v776_v7 = vsel %vm733_vm1, %v774_v60, %v775_v59  ;;  %v1121_v47 = vmul.f32 %v2520_v19, %v3263_v61 }
  0xdc   : > { %v3341_v10 = vsel %vm442_vm0, %v404_v27, %v473_v39  ;;  %v855_v58 = vadd.f32 %v776_v7, %v625_v11  ;;  %v1006_v2 = vsel %vm963_vm2, %v1004_v49, %v1005_v42  ;;  %v1198_v12 = vmul.f32 %v2526_v24, %v3263_v61 }
  0xdd   : > { %v1706_v36 = vadd.f32 %v1676_v45, %v1640_v14  ;;  %v3347_v63 = vsel %vm442_vm0, %v473_v39, %v474_v3  ;;  %v1199_v21 = vmul.f32 %v2526_v24, %v3260_v57  ;;  %v1442_v1 = vmul.f32 %v2531_v28, %v3263_v61 }
  0xde   : > { %v1085_v20 = vadd.f32 %v1006_v2, %v855_v58  ;;  %v1312_v46 = vrot.slane %v1198_v12, 1  ;;  %v1443_v62 = vmul.f32 %v2531_v28, %v3260_v57  ;;  %v1677_v55 = vmul.f32 %v2533_v29, %v3341_v10  ;;  %v258_v2 = vld [vmem:[%s2504_s27 + $0xb0] sm:$0xff] }
  0xdf   : > { %v1937_v37 = vadd.f32 %v1859_v35, %v1706_v36  ;;  %v1313_v45 = vrot.slane %v1199_v21, 1  ;;  %v1556_v38 = vrot.slane %v1442_v1, 2  ;;  %v1752_v53 = vmul.f32 %v2535_v30, %v3341_v10  ;;  %v259_v1 = vld [vmem:[%s2504_s27 + $0xb8] sm:$0xff] }
  0xe0   : > { %v1153_v25 = vadd.f32 %v1121_v47, %v1085_v20  ;;  %v1557_v6 = vrot.slane %v1443_v62, 2  ;;  %v1753_v51 = vmul.f32 %v2535_v30, %v3347_v63  ;;  %v1983_v26 = vmul.f32 %v3109_v33, %v3341_v10 }
  0xe1   : > { %v2168_v31 = vadd.f32 %v2090_v52, %v1937_v37  ;;  %v1314_v13 = vsel %vm733_vm1, %v1312_v46, %v1313_v45  ;;  %v1860_v8 = vrot.slane %v1752_v53, 1  ;;  %v1984_v35 = vmul.f32 %v3109_v33, %v3347_v63 }
  0xe2   : > { %v1397_v4 = vadd.f32 %v1314_v13, %v1153_v25  ;;  %v1558_v11 = vsel %vm963_vm2, %v1556_v38, %v1557_v6  ;;  %v1861_v54 = vrot.slane %v1753_v51, 1  ;;  %v2091_v40 = vrot.slane %v1983_v26, 2 }
  0xe3   : > { %2200 = vst [vmem:[%s2675_s9 + $0x88] sm:$0xff] %v2168_v31  ;;  %v2231_v9 = vadd.f32 %v2230_v34, %v2168_v31  ;;  %v2269_v56 = vmul.f32 %v2168_v31, %v2168_v31  ;;  %v2092_v43 = vrot.slane %v1984_v35, 2  ;;  %v549_v41 = vrot.slane %v367_v5, 5 }
  0xe4   : > { %v1641_v0 = vadd.f32 %v1558_v11, %v1397_v4  ;;  %v1862_v52 = vsel %vm733_vm1, %v1860_v8, %v1861_v54  ;;  %v626_v32 = vmul.f32 %v2514_v16, %v3180_v44  ;;  %v669_v60 = vmul.f32 %v2516_v17, %v3206_v22 }
  0xe5   : > { %v2300_v27 = vadd.f32 %v2299_v15, %v2269_v56  ;;  %v2093_v39 = vsel %vm963_vm2, %v2091_v40, %v2092_v43  ;;  %v3375_v49 = vsel %vm442_vm0, %v474_v3, %v549_v41  ;;  %v899_v34 = vmul.f32 %v2518_v18, %v3206_v22 }
  0xe6   : > { %v1707_v5 = vadd.f32 %v1677_v55, %v1641_v0  ;;  %v777_v14 = vrot.slane %v669_v60, 1  ;;  %v1122_v7 = vmul.f32 %v2520_v19, %v3260_v57  ;;  %v1200_v44 = vmul.f32 %v2526_v24, %v3287_v48 }
  0xe7   : > { %v1007_v47 = vrot.slane %v899_v34, 2  ;;  %v1444_v15 = vmul.f32 %v2531_v28, %v3287_v48  ;;  %v1678_v58 = vmul.f32 %v2533_v29, %v3347_v63  ;;  %v1754_v3 = vmul.f32 %v2535_v30, %v3375_v49 }
  0xe8   : > { %v1938_v22 = vadd.f32 %v1862_v52, %v1707_v5  ;;  %v778_v12 = vsel %vm733_vm1, %v775_v59, %v777_v14  ;;  %v1315_v36 = vrot.slane %v1200_v44, 1  ;;  %v1985_v21 = vmul.f32 %v3109_v33, %v3375_v49 }
  0xe9   : > { %v856_v20 = vadd.f32 %v778_v12, %v626_v32  ;;  %v1008_v46 = vsel %vm963_vm2, %v1005_v42, %v1007_v47  ;;  %v1559_v62 = vrot.slane %v1444_v15, 2  ;;  %v1863_v55 = vrot.slane %v1754_v3, 1 }
  0xea   : > { %v2169_v37 = vadd.f32 %v2093_v39, %v1938_v22  ;;  %v1316_v38 = vsel %vm733_vm1, %v1313_v45, %v1315_v36  ;;  %v2094_v53 = vrot.slane %v1985_v21, 2  ;;  %v298_v25 = vmul.f32 %v3048_v50, %v258_v2 }
  0xeb   : > { %v1086_v51 = vadd.f32 %v1008_v46, %v856_v20  ;;  %v1560_v59 = vsel %vm963_vm2, %v1557_v6, %v1559_v62  ;;  %v1864_v26 = vsel %vm733_vm1, %v1861_v54, %v1863_v55  ;;  %v299_v31 = vmul.f32 %v3048_v50, %v259_v1 }
  0xec   : > { %2201 = vst [vmem:[%s2675_s9 + $0x90] sm:$0xff] %v2169_v37  ;;  %v2232_v13 = vadd.f32 %v2231_v9, %v2169_v37  ;;  %v2270_v8 = vmul.f32 %v2169_v37, %v2169_v37  ;;  %v2095_v42 = vsel %vm963_vm2, %v2092_v43, %v2094_v53  ;;  %v336_v35 = vadd.f32 %v3059_v23, %v298_v25 }
  0xed   : > { %v1154_v4 = vadd.f32 %v1122_v7, %v1086_v51  ;;  %v337_v45 = vadd.f32 %v3059_v23, %v299_v31  ;;  %v627_v11 = vmul.f32 %v2514_v16, %v3263_v61  ;;  %v670_v6 = vmul.f32 %v2516_v17, %v3263_v61 }
  0xee   : > { %v2301_v40 = vadd.f32 %v2300_v27, %v2270_v8  ;;  %v368_v54 = vmax.f32 %v336_v35, 0.0  ;;  %v3410_v56 = vmul.f32 %v2516_v17, %v3260_v57  ;;  %v900_v9 = vmul.f32 %v2518_v18, %v3263_v61 }
  0xef   : > { %v1398_v43 = vadd.f32 %v1316_v38, %v1154_v4  ;;  %v369_v41 = vmax.f32 %v337_v45, 0.0  ;;  %v779_v0 = vrot.slane %v670_v6, 1  ;;  %v3416_v52 = vmul.f32 %v2518_v18, %v3260_v57 }
  0xf0   : > { %v405_v32 = vrot.slane %v368_v54, 1  ;;  %v476_v60 = vrot.slane %v368_v54, 7  ;;  %v780_v39 = vrot.slane %v3410_v56, 1  ;;  %v1009_v27 = vrot.slane %v900_v9, 2 }
  0xf1   : > { %v1642_v34 = vadd.f32 %v1560_v59, %v1398_v43  ;;  %v477_v5 = vrot.slane %v369_v41, 7  ;;  %v1010_v14 = vrot.slane %v3416_v52, 2  ;;  %v1123_v7 = vmul.f32 %v2520_v19, %v3341_v10 }
  0xf2   : > { %v3423_v61 = vsel %vm442_vm0, %v405_v32, %v476_v60  ;;  %v781_v44 = vsel %vm733_vm1, %v779_v0, %v780_v39  ;;  %v1201_v47 = vmul.f32 %v2526_v24, %v3341_v10  ;;  %v1202_v15 = vmul.f32 %v2526_v24, %v3347_v63 }
  0xf3   : > { %v1708_v3 = vadd.f32 %v1678_v58, %v1642_v34  ;;  %v3433_v2 = vsel %vm442_vm0, %v476_v60, %v477_v5  ;;  %v857_v22 = vadd.f32 %v781_v44, %v627_v11  ;;  %v1011_v12 = vsel %vm963_vm2, %v1009_v27, %v1010_v14 }
  0xf4   : > { %v1317_v36 = vrot.slane %v1201_v47, 1  ;;  %v1318_v21 = vrot.slane %v1202_v15, 1  ;;  %v1445_v1 = vmul.f32 %v2531_v28, %v3341_v10  ;;  %v1446_v20 = vmul.f32 %v2531_v28, %v3347_v63 }
  0xf5   : > { %v1939_v46 = vadd.f32 %v1864_v26, %v1708_v3  ;;  %v1087_v62 = vadd.f32 %v1011_v12, %v857_v22  ;;  %v1679_v58 = vmul.f32 %v2533_v29, %v3423_v61  ;;  %v1755_v55 = vmul.f32 %v2535_v30, %v3423_v61 }
  0xf6   : > { %v1319_v37 = vsel %vm733_vm1, %v1317_v36, %v1318_v21  ;;  %v1561_v38 = vrot.slane %v1445_v1, 2  ;;  %v1562_v53 = vrot.slane %v1446_v20, 2  ;;  %v1756_v25 = vmul.f32 %v2535_v30, %v3433_v2  ;;  %v261_v36 = vld [vmem:[%s2504_s27 + $0xc8] sm:$0xff] }
  0xf7   : > { %v2170_v51 = vadd.f32 %v2095_v42, %v1939_v46  ;;  %v1155_v59 = vadd.f32 %v1123_v7, %v1087_v62  ;;  %v1865_v31 = vrot.slane %v1755_v55, 1  ;;  %v1986_v26 = vmul.f32 %v3109_v33, %v3423_v61 }
  0xf8   : > { %v1563_v8 = vsel %vm963_vm2, %v1561_v38, %v1562_v53  ;;  %v1866_v35 = vrot.slane %v1756_v25, 1  ;;  %v1987_v4 = vmul.f32 %v3109_v33, %v3433_v2  ;;  %v550_v45 = vrot.slane %v369_v41, 5 }
  0xf9   : > { %2202 = vst [vmem:[%s2675_s9 + $0x98] sm:$0xff] %v2170_v51  ;;  %v2233_v11 = vadd.f32 %v2232_v13, %v2170_v51  ;;  %v2271_v6 = vmul.f32 %v2170_v51, %v2170_v51  ;;  %v1399_v54 = vadd.f32 %v1319_v37, %v1155_v59  ;;  %v2096_v9 = vrot.slane %v1986_v26, 2 }
  0xfa   : > { %v1867_v42 = vsel %vm733_vm1, %v1865_v31, %v1866_v35  ;;  %v2097_v43 = vrot.slane %v1987_v4, 2  ;;  %v3455_v0 = vsel %vm442_vm0, %v477_v5, %v550_v45  ;;  %v628_v52 = vmul.f32 %v2514_v16, %v3260_v57 }
  0xfb   : > { %v2302_v32 = vadd.f32 %v2301_v40, %v2271_v6  ;;  %v1643_v60 = vadd.f32 %v1563_v8, %v1399_v54  ;;  %v672_v41 = vmul.f32 %v2516_v17, %v3287_v48  ;;  %v902_v13 = vmul.f32 %v2518_v18, %v3287_v48  ;;  %v260_v40 = vld [vmem:[%s2504_s27 + $0xc0] sm:$0xff] }
  0xfc   : > { %v2098_v27 = vsel %vm963_vm2, %v2096_v9, %v2097_v43  ;;  %v1124_v34 = vmul.f32 %v2520_v19, %v3347_v63  ;;  %v1203_v5 = vmul.f32 %v2526_v24, %v3375_v49  ;;  %v1447_v57 = vmul.f32 %v2531_v28, %v3375_v49 }
  0xfd   : > { %v1709_v7 = vadd.f32 %v1679_v58, %v1643_v60  ;;  %v782_v44 = vrot.slane %v672_v41, 1  ;;  %v1012_v47 = vrot.slane %v902_v13, 2  ;;  %v1680_v15 = vmul.f32 %v2533_v29, %v3433_v2 }
  0xfe   : > { %v1320_v3 = vrot.slane %v1203_v5, 1  ;;  %v1564_v48 = vrot.slane %v1447_v57, 2  ;;  %v1757_v22 = vmul.f32 %v2535_v30, %v3455_v0  ;;  %v1988_v12 = vmul.f32 %v3109_v33, %v3455_v0 }
  0xff   : > { %v1940_v1 = vadd.f32 %v1867_v42, %v1709_v7  ;;  %v783_v20 = vsel %vm733_vm1, %v780_v39, %v782_v44  ;;  %v1013_v46 = vsel %vm963_vm2, %v1010_v14, %v1012_v47  ;;  %v300_v62 = vmul.f32 %v3048_v50, %v260_v40 }
 0x100   : > { %v858_v58 = vadd.f32 %v783_v20, %v628_v52  ;;  %v1321_v55 = vsel %vm733_vm1, %v1318_v21, %v1320_v3  ;;  %v1565_v37 = vsel %vm963_vm2, %v1562_v53, %v1564_v48  ;;  %v1868_v38 = vrot.slane %v1757_v22, 1 }
 0x101   : > { %v2171_v25 = vadd.f32 %v2098_v27, %v1940_v1  ;;  %v2099_v51 = vrot.slane %v1988_v12, 2  ;;  %v301_v59 = vmul.f32 %v3048_v50, %v261_v36  ;;  %v338_v31 = vadd.f32 %v3059_v23, %v300_v62 }
 0x102   : > { %v1088_v56 = vadd.f32 %v1013_v46, %v858_v58  ;;  %v1869_v26 = vsel %vm733_vm1, %v1866_v35, %v1868_v38  ;;  %v629_v39 = vmul.f32 %v2514_v16, %v3341_v10  ;;  %v673_v14 = vmul.f32 %v2516_v17, %v3341_v10 }
 0x103   : > { %2203 = vst [vmem:[%s2675_s9 + $0xa0] sm:$0xff] %v2171_v25  ;;  %v2234_v21 = vadd.f32 %v2233_v11, %v2171_v25  ;;  %v2272_v8 = vmul.f32 %v2171_v25, %v2171_v25  ;;  %v2100_v53 = vsel %vm963_vm2, %v2097_v43, %v2099_v51  ;;  %v339_v4 = vadd.f32 %v3059_v23, %v301_v59 }
 0x104   : > { %v1156_v45 = vadd.f32 %v1124_v34, %v1088_v56  ;;  %v370_v50 = vmax.f32 %v338_v31, 0.0  ;;  %v3497_v6 = vmul.f32 %v2516_v17, %v3347_v63  ;;  %v784_v35 = vrot.slane %v673_v14, 1 }
 0x105   : > { %v2303_v54 = vadd.f32 %v2302_v32, %v2272_v8  ;;  %v371_v9 = vmax.f32 %v339_v4, 0.0  ;;  %v903_v42 = vmul.f32 %v2518_v18, %v3341_v10  ;;  %v3503_v11 = vmul.f32 %v2518_v18, %v3347_v63 }
 0x106   : > { %v1400_v52 = vadd.f32 %v1321_v55, %v1156_v45  ;;  %v406_v43 = vrot.slane %v370_v50, 1  ;;  %v479_v60 = vrot.slane %v370_v50, 7  ;;  %v785_v23 = vrot.slane %v3497_v6, 1 }
 0x107   : > { %v480_v41 = vrot.slane %v371_v9, 7  ;;  %v1014_v13 = vrot.slane %v903_v42, 2  ;;  %v1015_v27 = vrot.slane %v3503_v11, 2  ;;  %v1125_v32 = vmul.f32 %v2520_v19, %v3423_v61 }
 0x108   : > { %v1644_v34 = vadd.f32 %v1565_v37, %v1400_v52  ;;  %v3510_v5 = vsel %vm442_vm0, %v406_v43, %v479_v60  ;;  %v786_v10 = vsel %vm733_vm1, %v784_v35, %v785_v23  ;;  %v1204_v57 = vmul.f32 %v2526_v24, %v3423_v61 }
 0x109   : > { %v3516_v40 = vsel %vm442_vm0, %v479_v60, %v480_v41  ;;  %v859_v7 = vadd.f32 %v786_v10, %v629_v39  ;;  %v1016_v44 = vsel %vm963_vm2, %v1014_v13, %v1015_v27  ;;  %v1205_v47 = vmul.f32 %v2526_v24, %v3433_v2 }
 0x10a   : > { %v1710_v3 = vadd.f32 %v1680_v15, %v1644_v34  ;;  %v1322_v48 = vrot.slane %v1204_v57, 1  ;;  %v1448_v22 = vmul.f32 %v2531_v28, %v3423_v61  ;;  %v1449_v12 = vmul.f32 %v2531_v28, %v3433_v2  ;;  %v262_v57 = vld [vmem:[%s2504_s27 + $0xd0] sm:$0xff] }
 0x10b   : > { %v1089_v36 = vadd.f32 %v1016_v44, %v859_v7  ;;  %v1323_v1 = vrot.slane %v1205_v47, 1  ;;  %v1681_v20 = vmul.f32 %v2533_v29, %v3510_v5  ;;  %v1758_v46 = vmul.f32 %v2535_v30, %v3510_v5  ;;  %v263_v7 = vld [vmem:[%s2504_s27 + $0xd8] sm:$0xff] }
 0x10c   : > { %v1941_v62 = vadd.f32 %v1869_v26, %v1710_v3  ;;  %v1566_v58 = vrot.slane %v1448_v22, 2  ;;  %v1567_v55 = vrot.slane %v1449_v12, 2  ;;  %v1759_v15 = vmul.f32 %v2535_v30, %v3516_v40 }
 0x10d   : > { %v1157_v37 = vadd.f32 %v1125_v32, %v1089_v36  ;;  %v1324_v38 = vsel %vm733_vm1, %v1322_v48, %v1323_v1  ;;  %v1870_v25 = vrot.slane %v1758_v46, 1  ;;  %v1989_v51 = vmul.f32 %v3109_v33, %v3510_v5 }
 0x10e   : > { %v2172_v59 = vadd.f32 %v2100_v53, %v1941_v62  ;;  %v1568_v31 = vsel %vm963_vm2, %v1566_v58, %v1567_v55  ;;  %v1871_v56 = vrot.slane %v1759_v15, 1  ;;  %v1990_v26 = vmul.f32 %v3109_v33, %v3516_v40 }
 0x10f   : > { %v1401_v39 = vadd.f32 %v1324_v38, %v1157_v37  ;;  %v2101_v14 = vrot.slane %v1989_v51, 2  ;;  %v551_v8 = vrot.slane %v371_v9, 5  ;;  %v630_v4 = vmul.f32 %v2514_v16, %v3347_v63 }
 0x110   : > { %2204 = vst [vmem:[%s2675_s9 + $0xa8] sm:$0xff] %v2172_v59  ;;  %v2235_v45 = vadd.f32 %v2234_v21, %v2172_v59  ;;  %v2273_v50 = vmul.f32 %v2172_v59, %v2172_v59  ;;  %v1872_v6 = vsel %vm733_vm1, %v1870_v25, %v1871_v56  ;;  %v2102_v35 = vrot.slane %v1990_v26, 2  ;;  %v3582_v25 = vld [vmem:[%s3938_s2] ss:$0 sm:$0xff] }
 0x111   : > { %v1645_v42 = vadd.f32 %v1568_v31, %v1401_v39  ;;  %v3542_v53 = vsel %vm442_vm0, %v480_v41, %v551_v8  ;;  %v675_v11 = vmul.f32 %v2516_v17, %v3375_v49  ;;  %v905_v9 = vmul.f32 %v2518_v18, %v3375_v49 }
 0x112   : > { %v2304_v52 = vadd.f32 %v2303_v54, %v2273_v50  ;;  %v2103_v63 = vsel %vm963_vm2, %v2101_v14, %v2102_v35  ;;  %v1126_v21 = vmul.f32 %v2520_v19, %v3433_v2  ;;  %v1206_v43 = vmul.f32 %v2526_v24, %v3455_v0 }
 0x113   : > { %v1711_v60 = vadd.f32 %v1681_v20, %v1645_v42  ;;  %v787_v13 = vrot.slane %v675_v11, 1  ;;  %v1017_v41 = vrot.slane %v905_v9, 2  ;;  %v1450_v32 = vmul.f32 %v2531_v28, %v3455_v0 }
 0x114   : > { %v1325_v34 = vrot.slane %v1206_v43, 1  ;;  %v1682_v10 = vmul.f32 %v2533_v29, %v3516_v40  ;;  %v1760_v49 = vmul.f32 %v2535_v30, %v3542_v53  ;;  %v1991_v54 = vmul.f32 %v3109_v33, %v3542_v53  ;;  %v3570_v33 = vld [vmem:[%s3937_s1] ss:$0 sm:$0xff] }
 0x115   : > { %v1942_v44 = vadd.f32 %v1872_v6, %v1711_v60  ;;  %v788_v47 = vsel %vm733_vm1, %v785_v23, %v787_v13  ;;  %v1018_v3 = vsel %vm963_vm2, %v1015_v27, %v1017_v41  ;;  %v1569_v48 = vrot.slane %v1450_v32, 2 }
 0x116   : > { %v860_v22 = vadd.f32 %v788_v47, %v630_v4  ;;  %v1326_v12 = vsel %vm733_vm1, %v1323_v1, %v1325_v34  ;;  %v1873_v36 = vrot.slane %v1760_v49, 1  ;;  %v2104_v20 = vrot.slane %v1991_v54, 2 }
 0x117   : > { %v2173_v46 = vadd.f32 %v2103_v63, %v1942_v44  ;;  %v1570_v62 = vsel %vm963_vm2, %v1567_v55, %v1569_v48  ;;  %v302_v58 = vmul.f32 %v3570_v33, %v262_v57  ;;  %v303_v23 = vmul.f32 %v3570_v33, %v263_v7 }
 0x118   : > { %v1090_v15 = vadd.f32 %v1018_v3, %v860_v22  ;;  %v1874_v27 = vsel %vm733_vm1, %v1871_v56, %v1873_v36  ;;  %v2105_v37 = vsel %vm963_vm2, %v2102_v35, %v2104_v20  ;;  %v631_v1 = vmul.f32 %v2514_v16, %v3423_v61 }
 0x119   : > { %2205 = vst [vmem:[%s2675_s9 + $0xb0] sm:$0xff] %v2173_v46  ;;  %v2236_v38 = vadd.f32 %v2235_v45, %v2173_v46  ;;  %v2274_v55 = vmul.f32 %v2173_v46, %v2173_v46  ;;  %v340_v51 = vadd.f32 %v3582_v25, %v302_v58  ;;  %v341_v59 = vadd.f32 %v3582_v25, %v303_v23  ;;  %v3627_v58 = vld [vmem:[%s3939_s3 + $0x8] ss:$0 sm:$0xff] }
 0x11a   : > { %v1158_v31 = vadd.f32 %v1126_v21, %v1090_v15  ;;  %v676_v56 = vmul.f32 %v2516_v17, %v3423_v61  ;;  %v3590_v26 = vmul.f32 %v2516_v17, %v3433_v2  ;;  %v906_v39 = vmul.f32 %v2518_v18, %v3423_v61 }
 0x11b   : > { %v2305_v14 = vadd.f32 %v2304_v52, %v2274_v55  ;;  %v372_v8 = vmax.f32 %v340_v51, 0.0  ;;  %v373_v4 = vmax.f32 %v341_v59, 0.0  ;;  %v3596_v45 = vmul.f32 %v2518_v18, %v3433_v2 }
 0x11c   : > { %v1402_v50 = vadd.f32 %v1326_v12, %v1158_v31  ;;  %v789_v6 = vrot.slane %v676_v56, 1  ;;  %v790_v35 = vrot.slane %v3590_v26, 1  ;;  %v1019_v42 = vrot.slane %v906_v39, 2 }
 0x11d   : > { %v407_v11 = vrot.slane %v372_v8, 1  ;;  %v482_v9 = vrot.slane %v372_v8, 7  ;;  %v483_v63 = vrot.slane %v373_v4, 7  ;;  %v1020_v21 = vrot.slane %v3596_v45, 2 }
 0x11e   : > { %v1646_v43 = vadd.f32 %v1570_v62, %v1402_v50  ;;  %v791_v61 = vsel %vm733_vm1, %v789_v6, %v790_v35  ;;  %v1127_v52 = vmul.f32 %v2520_v19, %v3510_v5  ;;  %v1207_v60 = vmul.f32 %v2526_v24, %v3510_v5 }
 0x11f   : > { %v3606_v13 = vsel %vm442_vm0, %v482_v9, %v483_v63  ;;  %v3609_v41 = vsel %vm442_vm0, %v407_v11, %v482_v9  ;;  %v861_v32 = vadd.f32 %v791_v61, %v631_v1  ;;  %v1021_v34 = vsel %vm963_vm2, %v1019_v42, %v1020_v21 }
 0x120   : > { %v1712_v49 = vadd.f32 %v1682_v10, %v1646_v43  ;;  %v1208_v54 = vmul.f32 %v2526_v24, %v3516_v40  ;;  %v1327_v57 = vrot.slane %v1207_v60, 1  ;;  %v1451_v7 = vmul.f32 %v2531_v28, %v3510_v5 }
 0x121   : > { %v1091_v44 = vadd.f32 %v1021_v34, %v861_v32  ;;  %v1452_v47 = vmul.f32 %v2531_v28, %v3516_v40  ;;  %v1683_v3 = vmul.f32 %v2533_v29, %v3609_v41  ;;  %v1761_v48 = vmul.f32 %v2535_v30, %v3609_v41  ;;  %v264_v32 = vld [vmem:[%s2504_s27 + $0xe0] sm:$0xff] }
 0x122   : > { %v1943_v22 = vadd.f32 %v1874_v27, %v1712_v49  ;;  %v1328_v12 = vrot.slane %v1208_v54, 1  ;;  %v1571_v10 = vrot.slane %v1451_v7, 2  ;;  %v1762_v36 = vmul.f32 %v2535_v30, %v3606_v13 }
 0x123   : > { %v1159_v20 = vadd.f32 %v1127_v52, %v1091_v44  ;;  %v1572_v46 = vrot.slane %v1452_v47, 2  ;;  %v1875_v62 = vrot.slane %v1761_v48, 1  ;;  %v1992_v23 = vmul.f32 %v3627_v58, %v3609_v41 }
 0x124   : > { %v2174_v15 = vadd.f32 %v2105_v37, %v1943_v22  ;;  %v1329_v27 = vsel %vm733_vm1, %v1327_v57, %v1328_v12  ;;  %v1876_v1 = vrot.slane %v1762_v36, 1  ;;  %v1993_v55 = vmul.f32 %v3627_v58, %v3606_v13  ;;  %v265_v57 = vld [vmem:[%s2504_s27 + $0xe8] sm:$0xff] }
 0x125   : > { %v1403_v51 = vadd.f32 %v1329_v27, %v1159_v20  ;;  %v1573_v59 = vsel %vm963_vm2, %v1571_v10, %v1572_v46  ;;  %v2106_v31 = vrot.slane %v1992_v23, 2  ;;  %v552_v56 = vrot.slane %v373_v4, 5 }
 0x126   : > { %2206 = vst [vmem:[%s2675_s9 + $0xb8] sm:$0xff] %v2174_v15  ;;  %v3636_v26 = vadd.f32 %v2236_v38, %v2174_v15  ;;  %v2275_v39 = vmul.f32 %v2174_v15, %v2174_v15  ;;  %v2107_v8 = vrot.slane %v1993_v55, 2  ;;  %v1877_v37 = vsel %vm733_vm1, %v1875_v62, %v1876_v1 }
 0x127   : > { %v1647_v45 = vadd.f32 %v1573_v59, %v1403_v51  ;;  %v3640_v50 = vsel %vm442_vm0, %v483_v63, %v552_v56  ;;  %v678_v6 = vmul.f32 %v2516_v17, %v3455_v0  ;;  %v632_v38 = vmul.f32 %v2514_v16, %v3433_v2 }
 0x128   : > { %v3644_v42 = vadd.f32 %v2305_v14, %v2275_v39  ;;  %v2108_v11 = vsel %vm963_vm2, %v2106_v31, %v2107_v8  ;;  %v908_v4 = vmul.f32 %v2518_v18, %v3455_v0  ;;  %v1209_v63 = vmul.f32 %v2526_v24, %v3542_v53 }
 0x129   : > { %v1713_v9 = vadd.f32 %v1683_v3, %v1647_v45  ;;  %v792_v43 = vrot.slane %v678_v6, 1  ;;  %v1453_v61 = vmul.f32 %v2531_v28, %v3542_v53  ;;  %v1128_v14 = vmul.f32 %v2520_v19, %v3516_v40 }
 0x12a   : > { %v1022_v52 = vrot.slane %v908_v4, 2  ;;  %v1763_v60 = vmul.f32 %v2535_v30, %v3640_v50  ;;  %v1994_v2 = vmul.f32 %v3627_v58, %v3640_v50  ;;  %v1330_v49 = vrot.slane %v1209_v63, 1 }
 0x12b   : > { %v1944_v0 = vadd.f32 %v1877_v37, %v1713_v9  ;;  %v793_v34 = vsel %vm733_vm1, %v790_v35, %v792_v43  ;;  %v1574_v54 = vrot.slane %v1453_v61, 2  ;;  %v1684_v22 = vmul.f32 %v2533_v29, %v3606_v13 }
 0x12c   : > { %v862_v7 = vadd.f32 %v793_v34, %v632_v38  ;;  %v1023_v44 = vsel %vm963_vm2, %v1020_v21, %v1022_v52  ;;  %v1878_v47 = vrot.slane %v1763_v60, 1  ;;  %v2109_v3 = vrot.slane %v1994_v2, 2 }
 0x12d   : > { %v2175_v48 = vadd.f32 %v2108_v11, %v1944_v0  ;;  %v304_v10 = vmul.f32 %v3570_v33, %v264_v32  ;;  %v1331_v20 = vsel %vm733_vm1, %v1328_v12, %v1330_v49  ;;  %v1575_v62 = vsel %vm963_vm2, %v1572_v46, %v1574_v54 }
 0x12e   : > { %v1092_v36 = vadd.f32 %v1023_v44, %v862_v7  ;;  %v305_v35 = vmul.f32 %v3570_v33, %v265_v57  ;;  %v1879_v15 = vsel %vm733_vm1, %v1876_v1, %v1878_v47  ;;  %v2110_v21 = vsel %vm963_vm2, %v2107_v8, %v2109_v3 }
 0x12f   : > { %2207 = vst [vmem:[%s2675_s9 + $0xc0] sm:$0xff] %v2175_v48  ;;  %v2276_v23 = vmul.f32 %v2175_v48, %v2175_v48  ;;  %v342_v27 = vadd.f32 %v3582_v25, %v304_v10  ;;  %v679_v59 = vmul.f32 %v2516_v17, %v3510_v5  ;;  %v3680_v12 = vmul.f32 %v2516_v17, %v3516_v40 }
 0x130   : > { %v1160_v55 = vadd.f32 %v1128_v14, %v1092_v36  ;;  %v343_v51 = vadd.f32 %v3582_v25, %v305_v35  ;;  %v633_v31 = vmul.f32 %v2514_v16, %v3510_v5  ;;  %v909_v1 = vmul.f32 %v2518_v18, %v3510_v5 }
 0x131   : > { %v374_v46 = vmax.f32 %v342_v27, 0.0  ;;  %v3688_v56 = vmul.f32 %v2518_v18, %v3516_v40  ;;  %v794_v45 = vrot.slane %v679_v59, 1  ;;  %v795_v37 = vrot.slane %v3680_v12, 1 }
 0x132   : > { %v1404_v39 = vadd.f32 %v1331_v20, %v1160_v55  ;;  %v375_v8 = vmax.f32 %v343_v51, 0.0  ;;  %v1024_v38 = vrot.slane %v909_v1, 2  ;;  %v1129_v5 = vmul.f32 %v2520_v19, %v3609_v41 }
 0x133   : > { %v408_v6 = vrot.slane %v374_v46, 1  ;;  %v485_v11 = vrot.slane %v374_v46, 7  ;;  %v1025_v4 = vrot.slane %v3688_v56, 2  ;;  %v796_v63 = vsel %vm733_vm1, %v794_v45, %v795_v37 }
 0x134   : > { %v1648_v9 = vadd.f32 %v1575_v62, %v1404_v39  ;;  %v486_v43 = vrot.slane %v375_v8, 7  ;;  %v863_v52 = vadd.f32 %v796_v63, %v633_v31  ;;  %v1210_v60 = vmul.f32 %v2526_v24, %v3609_v41 }
 0x135   : > { %v3696_v61 = vsel %vm442_vm0, %v408_v6, %v485_v11  ;;  %v1026_v14 = vsel %vm963_vm2, %v1024_v38, %v1025_v4  ;;  %v1211_v0 = vmul.f32 %v2526_v24, %v3606_v13  ;;  %v1454_v34 = vmul.f32 %v2531_v28, %v3609_v41 }
 0x136   : > { %v1714_v2 = vadd.f32 %v1684_v22, %v1648_v9  ;;  %v3702_v32 = vsel %vm442_vm0, %v485_v11, %v486_v43  ;;  %v1093_v49 = vadd.f32 %v1026_v14, %v863_v52  ;;  %v1332_v54 = vrot.slane %v1210_v60, 1 }
 0x137   : > { %v1455_v57 = vmul.f32 %v2531_v28, %v3606_v13  ;;  %v3712_v7 = vmul.f32 %v2533_v29, %v3696_v61  ;;  %v1333_v47 = vrot.slane %v1211_v0, 1  ;;  %v1576_v3 = vrot.slane %v1454_v34, 2  ;;  %v267_v0 = vld [vmem:[%s2504_s27 + $0xf8] sm:$0xff] }
 0x138   : > { %v1945_v44 = vadd.f32 %v1879_v15, %v1714_v2  ;;  %v1764_v22 = vmul.f32 %v2535_v30, %v3696_v61  ;;  %v1161_v10 = vadd.f32 %v1129_v5, %v1093_v49  ;;  %v1765_v20 = vmul.f32 %v2535_v30, %v3702_v32 }
 0x139   : > { %v1577_v36 = vrot.slane %v1455_v57, 2  ;;  %v1995_v62 = vmul.f32 %v3627_v58, %v3696_v61  ;;  %v1334_v27 = vsel %vm733_vm1, %v1332_v54, %v1333_v47  ;;  %v3723_v15 = vmul.f32 %v3627_v58, %v3702_v32 }
 0x13a   : > { %v2176_v35 = vadd.f32 %v2110_v21, %v1945_v44  ;;  %v1880_v55 = vrot.slane %v1764_v22, 1  ;;  %v1405_v51 = vadd.f32 %v1334_v27, %v1161_v10  ;;  %v1881_v12 = vrot.slane %v1765_v20, 1 }
 0x13b   : > { %v1578_v59 = vsel %vm963_vm2, %v1576_v3, %v1577_v36  ;;  %v2111_v46 = vrot.slane %v1995_v62, 2  ;;  %v2238_v31 = vadd.f32 %v3636_v26, %v2175_v48  ;;  %v2112_v1 = vrot.slane %v3723_v15, 2 }
 0x13c   : > { %2208 = vst [vmem:[%s2675_s9 + $0xc8] sm:$0xff] %v2176_v35  ;;  %v553_v56 = vrot.slane %v375_v8, 5  ;;  %v2307_v21 = vadd.f32 %v3644_v42, %v2276_v23  ;;  %v2277_v39 = vmul.f32 %v2176_v35, %v2176_v35  ;;  %v1649_v45 = vadd.f32 %v1578_v59, %v1405_v51 }
 0x13d   : > { %v681_v6 = vmul.f32 %v2516_v17, %v3542_v53  ;;  %v3733_v11 = vsel %vm733_vm1, %v1880_v55, %v1881_v12  ;;  %v3736_v38 = vsel %vm963_vm2, %v2111_v46, %v2112_v1  ;;  %v634_v26 = vmul.f32 %v2514_v16, %v3516_v40 }
 0x13e   : > { %v911_v48 = vmul.f32 %v2518_v18, %v3542_v53  ;;  %v1715_v42 = vadd.f32 %v3712_v7, %v1649_v45  ;;  %v3744_v23 = vsel %vm442_vm0, %v486_v43, %v553_v56  ;;  %v1212_v9 = vmul.f32 %v2526_v24, %v3640_v50  ;;  %v266_v53 = vld [vmem:[%s2504_s27 + $0xf0] sm:$0xff]  ;;  %s235_s27 = scalar_lea.vmem %s3941_s5, %s2420_s24 }
 0x13f   : > { %v797_v8 = vrot.slane %v681_v6, 1  ;;  %v1130_v5 = vmul.f32 %v2520_v19, %v3606_v13  ;;  %v1456_v52 = vmul.f32 %v2531_v28, %v3640_v50  ;;  %v1766_v40 = vmul.f32 %v2535_v30, %v3744_v23 }
 0x140   : > { %v1027_v63 = vrot.slane %v911_v48, 2  ;;  %v1946_v14 = vadd.f32 %v3733_v11, %v1715_v42  ;;  %v1335_v60 = vrot.slane %v1212_v9, 1  ;;  %v1997_v2 = vmul.f32 %v3627_v58, %v3744_v23 }
 0x141   : > { %v798_v43 = vsel %vm733_vm1, %v795_v37, %v797_v8  ;;  %v1579_v54 = vrot.slane %v1456_v52, 2  ;;  %v1883_v57 = vrot.slane %v1766_v40, 1  ;;  %v2239_v44 = vadd.f32 %v2238_v31, %v2176_v35 }
 0x142   : > { %v864_v34 = vadd.f32 %v798_v43, %v634_v26  ;;  %v1028_v49 = vsel %vm963_vm2, %v1025_v4, %v1027_v63  ;;  %v2177_v3 = vadd.f32 %v3736_v38, %v1946_v14  ;;  %v306_v22 = vmul.f32 %v3570_v33, %v266_v53 }
 0x143   : > { %v3763_v10 = vadd.f32 %v2307_v21, %v2277_v39  ;;  %v3767_v37 = vmul.f32 %v2533_v29, %v3702_v32  ;;  %v307_v62 = vmul.f32 %v3570_v33, %v267_v0  ;;  %v1336_v27 = vsel %vm733_vm1, %v1333_v47, %v1335_v60 }
 0x144   : > { %v1094_v20 = vadd.f32 %v1028_v49, %v864_v34  ;;  %2209 = vst [vmem:[%s2675_s9 + $0xd0] sm:$0xff] %v2177_v3  ;;  %v1580_v4 = vsel %vm963_vm2, %v1577_v36, %v1579_v54  ;;  %v2114_v55 = vrot.slane %v1997_v2, 2  ;;  %v344_v35 = vadd.f32 %v3582_v25, %v306_v22 }
 0x145   : > { %v3775_v51 = vsel %vm733_vm1, %v1881_v12, %v1883_v57  ;;  %v345_v59 = vadd.f32 %v3582_v25, %v307_v62  ;;  %v682_v46 = vmul.f32 %v2516_v17, %v3609_v41  ;;  %v635_v33 = vmul.f32 %v2514_v16, %v3609_v41 }
 0x146   : > { %v1162_v15 = vadd.f32 %v1130_v5, %v1094_v20  ;;  %v376_v31 = vmax.f32 %v344_v35, 0.0  ;;  %v3784_v47 = vmul.f32 %v2516_v17, %v3606_v13  ;;  %v912_v36 = vmul.f32 %v2518_v18, %v3609_v41 }
 0x147   : > { %v377_v21 = vmax.f32 %v345_v59, 0.0  ;;  %v799_v12 = vrot.slane %v682_v46, 1  ;;  %v3790_v25 = vmul.f32 %v2518_v18, %v3606_v13  ;;  %v3794_v42 = vsel %vm963_vm2, %v2112_v1, %v2114_v55 }
 0x148   : > { %v1406_v56 = vadd.f32 %v1336_v27, %v1162_v15  ;;  %v409_v39 = vrot.slane %v376_v31, 1  ;;  %v488_v45 = vrot.slane %v376_v31, 7  ;;  %v800_v6 = vrot.slane %v3784_v47, 1 }
 0x149   : > { %v1029_v26 = vrot.slane %v912_v36, 2  ;;  %v489_v8 = vrot.slane %v377_v21, 7  ;;  %v1030_v9 = vrot.slane %v3790_v25, 2  ;;  %v1131_v63 = vmul.f32 %v2520_v19, %v3696_v61 }
 0x14a   : > { %v1650_v48 = vadd.f32 %v1580_v4, %v1406_v56  ;;  %v801_v41 = vsel %vm733_vm1, %v799_v12, %v800_v6  ;;  %v1213_v5 = vmul.f32 %v2526_v24, %v3696_v61  ;;  %v3804_v52 = vmul.f32 %v2526_v24, %v3702_v32 }
 0x14b   : > { %v3808_v1 = vsel %vm442_vm0, %v409_v39, %v488_v45  ;;  %v865_v53 = vadd.f32 %v801_v41, %v635_v33  ;;  %v1031_v14 = vsel %vm963_vm2, %v1029_v26, %v1030_v9  ;;  %v1457_v2 = vmul.f32 %v2531_v28, %v3696_v61 }
 0x14c   : > { %v1716_v40 = vadd.f32 %v3767_v37, %v1650_v48  ;;  %v1337_v43 = vrot.slane %v1213_v5, 1  ;;  %v1338_v60 = vrot.slane %v3804_v52, 1  ;;  %v1458_v0 = vmul.f32 %v2531_v28, %v3702_v32 }
 0x14d   : > { %v3818_v49 = vsel %vm442_vm0, %v488_v45, %v489_v8  ;;  %v1095_v54 = vadd.f32 %v1031_v14, %v865_v53  ;;  %v1767_v57 = vmul.f32 %v2535_v30, %v3808_v1  ;;  %v1581_v20 = vrot.slane %v1457_v2, 2 }
 0x14e   : > { %v1947_v34 = vadd.f32 %v3775_v51, %v1716_v40  ;;  %v1339_v22 = vsel %vm733_vm1, %v1337_v43, %v1338_v60  ;;  %v1582_v62 = vrot.slane %v1458_v0, 2  ;;  %v3825_v27 = vmul.f32 %v2535_v30, %v3818_v49 }
 0x14f   : > { %v2278_v4 = vmul.f32 %v2177_v3, %v2177_v3  ;;  %v1163_v35 = vadd.f32 %v1131_v63, %v1095_v54  ;;  %v1998_v15 = vmul.f32 %v3627_v58, %v3808_v1  ;;  %v1885_v46 = vrot.slane %v1767_v57, 1 }
 0x150   : > { %v2178_v55 = vadd.f32 %v3794_v42, %v1947_v34  ;;  %v1583_v59 = vsel %vm963_vm2, %v1581_v20, %v1582_v62  ;;  %v1886_v31 = vrot.slane %v3825_v27, 1  ;;  %v3834_v33 = vmul.f32 %v3627_v58, %v3818_v49 }
 0x151   : > { %v2240_v47 = vadd.f32 %v2239_v44, %v2177_v3  ;;  %v1407_v36 = vadd.f32 %v1339_v22, %v1163_v35  ;;  %v1687_v56 = vmul.f32 %v2533_v29, %v3808_v1  ;;  %v2116_v12 = vrot.slane %v1998_v15, 2 }
 0x152   : > { %2210 = vst [vmem:[%s2675_s9 + $0xd8] sm:$0xff] %v2178_v55  ;;  %v2117_v25 = vrot.slane %v3834_v33, 2  ;;  %v554_v39 = vrot.slane %v377_v21, 5  ;;  %v3841_v45 = vadd.f32 %v3763_v10, %v2278_v4  ;;  %v684_v48 = vmul.f32 %v2516_v17, %v3640_v50 }
 0x153   : > { %v1651_v26 = vadd.f32 %v1583_v59, %v1407_v36  ;;  %v914_v41 = vmul.f32 %v2518_v18, %v3640_v50  ;;  %v1887_v44 = vsel %vm733_vm1, %v1885_v46, %v1886_v31  ;;  %v636_v3 = vmul.f32 %v2514_v16, %v3606_v13 }
 0x154   : > { %v1215_v21 = vmul.f32 %v2526_v24, %v3744_v23  ;;  %v1459_v10 = vmul.f32 %v2531_v28, %v3744_v23  ;;  %v3856_v63 = vadd.f32 %v2240_v47, %v2178_v55  ;;  %v802_v52 = vrot.slane %v684_v48, 1 }
 0x155   : > { %v1717_v5 = vadd.f32 %v1687_v56, %v1651_v26  ;;  %v1032_v40 = vrot.slane %v914_v41, 2  ;;  %v2118_v50 = vsel %vm963_vm2, %v2116_v12, %v2117_v25  ;;  %v602_v53 = vsel %vm442_vm0, %v489_v8, %v554_v39 }
 0x156   : > { %v1340_v14 = vrot.slane %v1215_v21, 1  ;;  %v1584_v43 = vrot.slane %v1459_v10, 2  ;;  %v803_v2 = vsel %vm733_vm1, %v800_v6, %v802_v52  ;;  %v1769_v34 = vmul.f32 %v2535_v30, %v602_v53 }
 0x157   : > { %v1948_v13 = vadd.f32 %v1887_v44, %v1717_v5  ;;  %v1033_v0 = vsel %vm963_vm2, %v1030_v9, %v1032_v40  ;;  %v2279_v54 = vmul.f32 %v2178_v55, %v2178_v55  ;;  %v866_v57 = vadd.f32 %v803_v2, %v636_v3 }
 0x158   : > { %v1132_v22 = vmul.f32 %v2520_v19, %v3702_v32  ;;  %v1688_v20 = vmul.f32 %v2533_v29, %v3818_v49  ;;  %v2000_v8 = vmul.f32 %v3627_v58, %v602_v53  ;;  %v685_v35 = vmul.f32 %v2516_v17, %v3696_v61 }
 0x159   : > { %v2179_v4 = vadd.f32 %v2118_v50, %v1948_v13  ;;  %v686_v6 = vmul.f32 %v2516_v17, %v3702_v32  ;;  %v1096_v9 = vadd.f32 %v1033_v0, %v866_v57  ;;  %v637_v30 = vmul.f32 %v2514_v16, %v3696_v61 }
 0x15a   : > { %v915_v55 = vmul.f32 %v2518_v18, %v3696_v61  ;;  %v916_v15 = vmul.f32 %v2518_v18, %v3702_v32  ;;  %v1341_v29 = vsel %vm733_vm1, %v1338_v60, %v1340_v14  ;;  %v1585_v58 = vsel %vm963_vm2, %v1582_v62, %v1584_v43 }
 0x15b   : > { %2211 = vst [vmem:[%s2675_s9 + $0xe0] sm:$0xff] %v2179_v4  ;;  %v1888_v59 = vrot.slane %v1769_v34, 1  ;;  %v804_v46 = vrot.slane %v685_v35, 1  ;;  %v1164_v47 = vadd.f32 %v1132_v22, %v1096_v9  ;;  %v805_v36 = vrot.slane %v686_v6, 1 }
 0x15c   : > { %v1034_v56 = vrot.slane %v915_v55, 2  ;;  %v1035_v12 = vrot.slane %v916_v15, 2  ;;  %v2119_v39 = vrot.slane %v2000_v8, 2  ;;  %v1133_v26 = vmul.f32 %v2520_v19, %v3808_v1 }
 0x15d   : > { %v1216_v61 = vmul.f32 %v2526_v24, %v3808_v1  ;;  %v1217_v48 = vmul.f32 %v2526_v24, %v3818_v49  ;;  %v1408_v41 = vadd.f32 %v1341_v29, %v1164_v47  ;;  %v806_v60 = vsel %vm733_vm1, %v804_v46, %v805_v36 }
 0x15e   : > { %v1036_v62 = vsel %vm963_vm2, %v1034_v56, %v1035_v12  ;;  %v1460_v44 = vmul.f32 %v2531_v28, %v3808_v1  ;;  %v867_v3 = vadd.f32 %v806_v60, %v637_v30  ;;  %v1461_v5 = vmul.f32 %v2531_v28, %v3818_v49 }
 0x15f   : > { %v1342_v21 = vrot.slane %v1216_v61, 1  ;;  %v1343_v10 = vrot.slane %v1217_v48, 1  ;;  %v1652_v52 = vadd.f32 %v1585_v58, %v1408_v41  ;;  %v1889_v40 = vsel %vm733_vm1, %v1886_v31, %v1888_v59 }
 0x160   : > { %v1586_v50 = vrot.slane %v1460_v44, 2  ;;  %v687_v14 = vmul.f32 %v2516_v17, %v3744_v23  ;;  %v1097_v43 = vadd.f32 %v1036_v62, %v867_v3  ;;  %v1587_v13 = vrot.slane %v1461_v5, 2 }
 0x161   : > { %v638_v1 = vmul.f32 %v2514_v16, %v3702_v32  ;;  %v917_v2 = vmul.f32 %v2518_v18, %v3744_v23  ;;  %v1718_v0 = vadd.f32 %v1688_v20, %v1652_v52  ;;  %v1344_v34 = vsel %vm733_vm1, %v1342_v21, %v1343_v10 }
 0x162   : > { %v807_v57 = vrot.slane %v687_v14, 1  ;;  %v1218_v27 = vmul.f32 %v2526_v24, %v602_v53  ;;  %v2120_v31 = vsel %vm963_vm2, %v2117_v25, %v2119_v39  ;;  %v1165_v22 = vadd.f32 %v1133_v26, %v1097_v43 }
 0x163   : > { %v1037_v17 = vrot.slane %v917_v2, 2  ;;  %v1462_v8 = vmul.f32 %v2531_v28, %v602_v53  ;;  %v1949_v35 = vadd.f32 %v1889_v40, %v1718_v0  ;;  %v1588_v16 = vsel %vm963_vm2, %v1586_v50, %v1587_v13 }
 0x164   : > { %v808_v18 = vsel %vm733_vm1, %v805_v36, %v807_v57  ;;  %v1345_v32 = vrot.slane %v1218_v27, 1  ;;  %v1409_v23 = vadd.f32 %v1344_v34, %v1165_v22  ;;  %v1134_v24 = vmul.f32 %v2520_v19, %v3818_v49 }
 0x165   : > { %v868_v20 = vadd.f32 %v808_v18, %v638_v1  ;;  %v1038_v6 = vsel %vm963_vm2, %v1035_v12, %v1037_v17  ;;  %v2180_v33 = vadd.f32 %v2120_v31, %v1949_v35  ;;  %v1589_v25 = vrot.slane %v1462_v8, 2 }
 0x166   : > { %v2310_v9 = vadd.f32 %v3841_v45, %v2279_v54  ;;  %v2280_v30 = vmul.f32 %v2179_v4, %v2179_v4  ;;  %v1653_v55 = vadd.f32 %v1588_v16, %v1409_v23  ;;  %v1346_v53 = vsel %vm733_vm1, %v1343_v10, %v1345_v32 }
 0x167   : > { %v1098_v28 = vadd.f32 %v1038_v6, %v868_v20  ;;  %2212 = vst [vmem:[%s2675_s9 + $0xe8] sm:$0xff] %v2180_v33  ;;  %v2242_v15 = vadd.f32 %v3856_v63, %v2179_v4  ;;  %v1590_v59 = vsel %vm963_vm2, %v1587_v13, %v1589_v25  ;;  %v2281_v49 = vmul.f32 %v2180_v33, %v2180_v33 }
 0x168   : > { %v1719_v29 = vadd.f32 %v3712_v7, %v1653_v55  ;;  %v2311_v19 = vadd.f32 %v2310_v9, %v2280_v30 }
 0x169   : > { %v1166_v58 = vadd.f32 %v1134_v24, %v1098_v28  ;;  %v2243_v54 = vadd.f32 %v2242_v15, %v2180_v33 }
 0x16a   : > { %v1950_v46 = vadd.f32 %v3733_v11, %v1719_v29  ;;  %v2312_v56 = vadd.f32 %v2311_v19, %v2281_v49 }
 0x16b   : > { %v1410_v45 = vadd.f32 %v1346_v53, %v1166_v58 }
 0x16c   : > { %v2181_v47 = vadd.f32 %v3736_v38, %v1950_v46 }
 0x16d   : > { %v1654_v36 = vadd.f32 %v1590_v59, %v1410_v45 }
 0x16e   : > { %2213 = vst [vmem:[%s2675_s9 + $0xf0] sm:$0xff] %v2181_v47  ;;  %v2282_v12 = vmul.f32 %v2181_v47, %v2181_v47  ;;  %v2244_v4 = vadd.f32 %v2243_v54, %v2181_v47 }
 0x16f   : > { %v1720_v63 = vadd.f32 %v3767_v37, %v1654_v36 }
 0x170   : > { %v2313_v39 = vadd.f32 %v2312_v56, %v2282_v12 }
 0x171   : > { %v1951_v7 = vadd.f32 %v3775_v51, %v1720_v63 }
 0x173   : > { %v2182_v26 = vadd.f32 %v3794_v42, %v1951_v7 }
 0x175   : > { %2214 = vst [vmem:[%s2675_s9 + $0xf8] sm:$0xff] %v2182_v26  ;;  %v2245_v61 = vadd.f32 %v2244_v4, %v2182_v26  ;;  %v2283_v11 = vmul.f32 %v2182_v26, %v2182_v26 }
 0x177   : > { %v2246_v48 = vrot.slane %v2245_v61, 4  ;;  %v2314_v41 = vadd.f32 %v2313_v39, %v2283_v11 }
 0x179   : > { %v2247_v60 = vadd.f32 %v2246_v48, %v2245_v61  ;;  %v2315_v38 = vrot.slane %v2314_v41, 4 }
 0x17b   : > { %v2248_v62 = vrot.slane %v2247_v60, 2  ;;  %v2316_v44 = vadd.f32 %v2315_v38, %v2314_v41 }
 0x17d   : > { %v2249_v3 = vadd.f32 %v2248_v62, %v2247_v60  ;;  %v2317_v21 = vrot.slane %v2316_v44, 2 }
 0x17f   : > { %v2250_v10 = vrot.slane %v2249_v3, 1  ;;  %v2318_v37 = vadd.f32 %v2317_v21, %v2316_v44 }
 0x181   : > { %v2251_v5 = vadd.f32 %v2250_v10, %v2249_v3  ;;  %v2319_v51 = vrot.slane %v2318_v37, 1 }
 0x183   : > { %v2320_v52 = vadd.f32 %v2319_v51, %v2318_v37 }
 0x185   : > { %v2321_v42 = vsel %vm442_vm0, %v2251_v5, %v2320_v52 }
 0x186   : > { %v2323_v40 = vsel %vm2322_vm3, %v2321_v42, 0.0 }
 0x187   : > { %2324 = vst [vmem:[%s235_s27] sm:$0xff] %v2323_v40 }
 0x188 PF: > { %s16_s18 = sadd.s32 1, %s2448_s18  }
 0x189   : > { %p13_p4 = scmp.ge.s32.totalorder %s16_s18, 4  }
 0x18b   :  { %15 = sbr.rel (!%p13_p4) target bundleno = 1 (0x1), region = 78 }

</bundles_post_ra>
